<compile_context>
chip_gen: v5e
topology: v5e:2x2
jax: 0.10.0
libtpu: 0.0.40
codegen_flags: <defaults>
</compile_context>

<pallas_src>
import functools

import jax
import jax.numpy as jnp
from jax.experimental import pallas as pl
from jax.experimental.pallas import tpu as pltpu

LEAKY_SLOPE = 0.01    # nn.LeakyReLU default
BN_EPS = 1e-5         # nn.BatchNorm1d default
CONV1_K = 51
CONV1_PAD = 25
K1P = 64              # conv1 im2col contraction (51 taps -> padded to 64)
C1P = 8               # conv1 output channels padded 4 -> 8
NCLASS = 10
NCLASS_P = 128        # class logits padded to a lane-dense 128 for the store


def _round_up(x, m):
    return ((x + m - 1) // m) * m


# ---------------------------------------------------------------------------
# The single fused kernel
# ---------------------------------------------------------------------------
def _fused_kernel(xcol_ref,
                  c1w, c1b, c2w, c2b, c3w, c3b, c4w, c4b,
                  r1w1, r1b1, r1w2, r1b2, r1w3, r1b3,
                  r2w1, r2b1, r2w2, r2b2, r2w3, r2b3,
                  fw1, fb1, fw2, fb2, fw3, fb3,
                  o_ref,
                  pool1, pool2, pool3, pool4,
                  pad2, pad3, pad4, padr1a, padr1b, padr2a, padr2b,
                  *, G, L, nclass):
    f32, bf16 = jnp.float32, jnp.bfloat16

    def lrelu(a):
        return jnp.where(a >= 0.0, a, LEAKY_SLOPE * a)

    def relu(a):
        return jnp.maximum(a, 0.0)

    def conv_taps(pad_ref, w_ref, b_ref, lout):
        """Same-length Conv1d (+folded BN/bias) from a zero-halo VMEM buffer.

        pad_ref: (G, lout + k - 1, Cin) f32, w_ref: (k, Cin, Cout) bf16.
        Returns f32 (G*lout, Cout)."""
        k = w_ref.shape[0]
        cin = pad_ref.shape[-1]
        cout = w_ref.shape[-1]
        acc = jnp.zeros((G * lout, cout), f32)
        for t in range(k):
            lhs = pad_ref[:, pl.ds(t, lout), :].reshape(G * lout, cin)
            acc = acc + jnp.dot(lhs.astype(bf16), w_ref[t],
                                preferred_element_type=f32)
        return acc + b_ref[...]

    def maxpool2(v, pool_ref):
        """Fused MaxPool1d(2,2): pairs of adjacent rows never cross a batch
        element because every per-element length is even."""
        pool_ref[...] = v
        mh = v.shape[0] // 2
        return jnp.maximum(pool_ref[pl.ds(0, mh, 2), :],
                           pool_ref[pl.ds(1, mh, 2), :])

    def fill_padded(pad_ref, v, lout, halo):
        """Write v:(G*lout, C) into the interior of a zeroed halo buffer."""
        cin = pad_ref.shape[-1]
        pad_ref[...] = jnp.zeros(pad_ref.shape, f32)
        pad_ref[:, pl.ds(halo, lout), :] = v.reshape(G, lout, cin)

    # ---- conv1 (+BN+LeakyReLU): one im2col matmul, MaxPool fused ----------
    a1 = jnp.dot(xcol_ref[...], c1w[...],
                 preferred_element_type=f32) + c1b[...]
    y1 = maxpool2(lrelu(a1), pool1)                      # (G*L/2, 8)

    # ---- conv2 / conv3 / conv4 (+BN+LeakyReLU+MaxPool) --------------------
    L2 = L // 2
    fill_padded(pad2, y1, L2, 2)
    y2 = maxpool2(lrelu(conv_taps(pad2, c2w, c2b, L2)), pool2)   # (G*L/4, 16)

    L3 = L // 4
    fill_padded(pad3, y2, L3, 5)
    y3 = maxpool2(lrelu(conv_taps(pad3, c3w, c3b, L3)), pool3)   # (G*L/8, 32)

    L4 = L // 8
    fill_padded(pad4, y3, L4, 5)
    y4 = maxpool2(lrelu(conv_taps(pad4, c4w, c4b, L4)), pool4)   # (G*L/16, 64)

    # ---- residual block 1: 64 -> 128 (shortcut 1x1 conv fused) -----------
    Lr = L // 16
    fill_padded(padr1a, y4, Lr, 1)
    h = relu(conv_taps(padr1a, r1w1, r1b1, Lr))                  # (G*Lr, 128)
    fill_padded(padr1b, h, Lr, 1)
    sc = jnp.dot(y4.astype(bf16), r1w3[...],
                 preferred_element_type=f32) + r1b3[...]
    z1 = relu(conv_taps(padr1b, r1w2, r1b2, Lr) + sc)            # (G*Lr, 128)

    # ---- residual block 2: 128 -> 256 -------------------------------------
    fill_padded(padr2a, z1, Lr, 1)
    h = relu(conv_taps(padr2a, r2w1, r2b1, Lr))                  # (G*Lr, 256)
    fill_padded(padr2b, h, Lr, 1)
    sc = jnp.dot(z1.astype(bf16), r2w3[...],
                 preferred_element_type=f32) + r2b3[...]
    z2 = relu(conv_taps(padr2b, r2w2, r2b2, Lr) + sc)            # (G*Lr, 256)

    # ---- AdaptiveAvgPool1d(1): matmul with a constant averaging matrix ----
    Mr = G * Lr
    e_i = jax.lax.broadcasted_iota(jnp.int32, (G, Mr), 0)
    r_i = jax.lax.broadcasted_iota(jnp.int32, (G, Mr), 1)
    d = r_i - e_i * Lr
    pmat = jnp.where((d >= 0) & (d < Lr), 1.0 / Lr, 0.0).astype(f32)
    feat = jnp.dot(pmat, z2, preferred_element_type=f32)         # (G, 256)

    # ---- fc1 stack (+folded BN + LeakyReLU) + softmax(dim=1) --------------
    h = lrelu(jnp.dot(feat.astype(bf16), fw1[...],
                      preferred_element_type=f32) + fb1[...])
    h = lrelu(jnp.dot(h.astype(bf16), fw2[...],
                      preferred_element_type=f32) + fb2[...])
    z = jnp.dot(h.astype(bf16), fw3[...],
                preferred_element_type=f32) + fb3[...]
    col = jax.lax.broadcasted_iota(jnp.int32, z.shape, 1)
    z = jnp.where(col < nclass, z, -1e30)                        # mask pad cols
    z = z - jnp.max(z, axis=-1, keepdims=True)
    e = jnp.exp(z)
    inv = 1.0 / jnp.sum(e, axis=-1, keepdims=True)               # one recip/row
    o_ref[...] = (e * inv).astype(o_ref.dtype)


# ---------------------------------------------------------------------------
# Parameter prep: fold BN, transpose/pad/cast ONCE at init time
# ---------------------------------------------------------------------------
def _fold_bn(gamma, beta, mean, var):
    scale = gamma / jnp.sqrt(var + BN_EPS)
    return scale, beta - mean * scale


def _pack_conv_taps(w, b, scale, shift, cinp, coutp):
    """PyTorch (Cout,Cin,k) -> (k, Cinp, Coutp) bf16, bias (1,Coutp) f32."""
    cout, cin, k = w.shape
    wf = w * scale[:, None, None]
    bf = b * scale + shift
    wk = jnp.transpose(wf, (2, 1, 0))
    wk = jnp.pad(wk, ((0, 0), (0, cinp - cin), (0, coutp - cout)))
    bk = jnp.pad(bf, (0, coutp - cout)).reshape(1, coutp)
    return wk.astype(jnp.bfloat16), bk.astype(jnp.float32)


def _pack_conv_im2col(w, b, scale, shift, kp, coutp):
    """Pack taps into the contraction dim: (Cout,Cin,k) -> (kp, Coutp).
    (Only used for conv1 where Cin == 1, so tap order matches the wrapper's
    window gather.)"""
    cout, cin, k = w.shape
    wf = w * scale[:, None, None]
    bf = b * scale + shift
    wk = jnp.transpose(wf, (2, 1, 0)).reshape(k * cin, cout)
    wk = jnp.pad(wk, ((0, kp - k * cin), (0, coutp - cout)))
    bk = jnp.pad(bf, (0, coutp - cout)).reshape(1, coutp)
    return wk.astype(jnp.bfloat16), bk.astype(jnp.float32)


def _pack_linear(w, b, scale, shift, finp, foutp):
    """PyTorch (Fout,Fin) -> (Finp, Foutp) bf16, bias (1,Foutp) f32."""
    fout, fin = w.shape
    wf = (w * scale[:, None]).T
    bf = b * scale + shift
    wk = jnp.pad(wf, ((0, finp - fin), (0, foutp - fout)))
    bk = jnp.pad(bf, (0, foutp - fout)).reshape(1, foutp)
    return wk.astype(jnp.bfloat16), bk.astype(jnp.float32)


def _rand_conv_bn(key, cin, cout, k):
    ks = jax.random.split(key, 6)
    w = 0.1 * jax.random.normal(ks[0], (cout, cin, k), jnp.float32)
    b = 0.05 * jax.random.normal(ks[1], (cout,), jnp.float32)
    gamma = 1.0 + 0.1 * jax.random.normal(ks[2], (cout,), jnp.float32)
    beta = 0.05 * jax.random.normal(ks[3], (cout,), jnp.float32)
    mean = 0.05 * jax.random.normal(ks[4], (cout,), jnp.float32)
    var = jax.random.uniform(ks[5], (cout,), jnp.float32, 0.5, 1.5)
    scale, shift = _fold_bn(gamma, beta, mean, var)
    return w, b, scale, shift


def _rand_linear_bn(key, fin, fout, bn=True):
    ks = jax.random.split(key, 6)
    w = 0.1 * jax.random.normal(ks[0], (fout, fin), jnp.float32)
    b = 0.05 * jax.random.normal(ks[1], (fout,), jnp.float32)
    if bn:
        gamma = 1.0 + 0.1 * jax.random.normal(ks[2], (fout,), jnp.float32)
        beta = 0.05 * jax.random.normal(ks[3], (fout,), jnp.float32)
        mean = 0.05 * jax.random.normal(ks[4], (fout,), jnp.float32)
        var = jax.random.uniform(ks[5], (fout,), jnp.float32, 0.5, 1.5)
        scale, shift = _fold_bn(gamma, beta, mean, var)
    else:
        scale = jnp.ones((fout,), jnp.float32)
        shift = jnp.zeros((fout,), jnp.float32)
    return w, b, scale, shift


def init_params(key):
    ks = jax.random.split(key, 9)
    P = {}

    # conv1: im2col-packed (taps in the contraction dim, tiny weight)
    w, b, s, sh = _rand_conv_bn(ks[0], 1, 4, CONV1_K)
    wk, bk = _pack_conv_im2col(w, b, s, sh, K1P, C1P)
    P["c1"] = dict(w=wk, b=bk)

    # conv2/3/4: tap-packed with minimal channel padding
    for i, (cin, cinp, cout, coutp, k) in enumerate(
            [(4, C1P, 16, 16, 5), (16, 16, 32, 32, 11), (32, 32, 64, 64, 11)]):
        w, b, s, sh = _rand_conv_bn(ks[1 + i], cin, cout, k)
        wk, bk = _pack_conv_taps(w, b, s, sh, cinp, coutp)
        P[f"c{i + 2}"] = dict(w=wk, b=bk)

    def res_params(key, cin, cout):
        k1, k2, k3 = jax.random.split(key, 3)
        w1, b1, s1, sh1 = _rand_conv_bn(k1, cin, cout, 3)
        w2, b2, s2, sh2 = _rand_conv_bn(k2, cout, cout, 3)
        kk = jax.random.split(k3, 2)
        w3 = 0.1 * jax.random.normal(kk[0], (cout, cin, 1), jnp.float32)
        b3 = 0.05 * jax.random.normal(kk[1], (cout,), jnp.float32)
        one = jnp.ones((cout,), jnp.float32)
        zero = jnp.zeros((cout,), jnp.float32)
        w1k, b1k = _pack_conv_taps(w1, b1, s1, sh1, cin, cout)
        w2k, b2k = _pack_conv_taps(w2, b2, s2, sh2, cout, cout)
        w3k, b3k = _pack_conv_taps(w3, b3, one, zero, cin, cout)  # no BN on shortcut
        return dict(w1=w1k, b1=b1k, w2=w2k, b2=b2k, w3=w3k[0], b3=b3k)

    P["r1"] = res_params(ks[4], 64, 128)
    P["r2"] = res_params(ks[5], 128, 256)

    # fc1: Linear(256,128)+BN+LReLU, Linear(128,64)+BN+LReLU, Linear(64,10)
    w, b, s, sh = _rand_linear_bn(ks[6], 256, 128, bn=True)
    w1k, b1k = _pack_linear(w, b, s, sh, 256, 128)
    w, b, s, sh = _rand_linear_bn(ks[7], 128, 64, bn=True)
    w2k, b2k = _pack_linear(w, b, s, sh, 128, 64)
    w, b, s, sh = _rand_linear_bn(ks[8], 64, NCLASS, bn=False)
    w3k, b3k = _pack_linear(w, b, s, sh, 64, NCLASS_P)
    P["fc"] = dict(w1=w1k, b1=b1k, w2=w2k, b2=b2k, w3=w3k, b3=b3k)
    return P


# ---------------------------------------------------------------------------
# Full forward pass: ONE pallas_call, grid over batch groups
# ---------------------------------------------------------------------------
def forward(params, x, *, group=8):
    """x: (N, 1, L) f32 in PyTorch NCL layout -> (N, 10) softmax probs."""
    N, cin, L = x.shape
    assert cin == 1, "classifier expects a single input channel"
    assert L % 128 == 0, "input length must be a multiple of 128"
    assert group % 8 == 0, "batch group must be a multiple of 8"
    G = group if N >= group else N          # whole batch in one step if small
    Np = _round_up(N, G)

    # conv1 im2col on the (tiny) raw input: 51 taps -> contraction dim.
    xsq = jnp.pad(x[:, 0, :], ((0, Np - N), (CONV1_PAD, CONV1_PAD)))
    win = jnp.arange(L)[:, None] + jnp.arange(CONV1_K)[None, :]   # (L, 51)
    xcol = jnp.pad(xsq[:, win], ((0, 0), (0, 0), (0, K1P - CONV1_K)))
    xcol = xcol.astype(jnp.bfloat16).reshape(Np * L, K1P)

    P = params
    weights = [
        P["c1"]["w"], P["c1"]["b"], P["c2"]["w"], P["c2"]["b"],
        P["c3"]["w"], P["c3"]["b"], P["c4"]["w"], P["c4"]["b"],
        P["r1"]["w1"], P["r1"]["b1"], P["r1"]["w2"], P["r1"]["b2"],
        P["r1"]["w3"], P["r1"]["b3"],
        P["r2"]["w1"], P["r2"]["b1"], P["r2"]["w2"], P["r2"]["b2"],
        P["r2"]["w3"], P["r2"]["b3"],
        P["fc"]["w1"], P["fc"]["b1"], P["fc"]["w2"], P["fc"]["b2"],
        P["fc"]["w3"], P["fc"]["b3"],
    ]

    def _whole(a):                                    # weights: loaded once
        return pl.BlockSpec(a.shape, lambda n, _nd=a.ndim: (0,) * _nd)

    in_specs = ([pl.BlockSpec((G * L, K1P), lambda n: (n, 0))]
                + [_whole(a) for a in weights])

    L2, L3, L4, Lr = L // 2, L // 4, L // 8, L // 16
    scratch = [
        pltpu.VMEM((G * L, C1P), jnp.float32),        # pool1
        pltpu.VMEM((G * L2, 16), jnp.float32),        # pool2
        pltpu.VMEM((G * L3, 32), jnp.float32),        # pool3
        pltpu.VMEM((G * L4, 64), jnp.float32),        # pool4
        pltpu.VMEM((G, L2 + 4, C1P), jnp.float32),    # conv2 halo buffer (p=2)
        pltpu.VMEM((G, L3 + 10, 16), jnp.float32),    # conv3 halo buffer (p=5)
        pltpu.VMEM((G, L4 + 10, 32), jnp.float32),    # conv4 halo buffer (p=5)
        pltpu.VMEM((G, Lr + 2, 64), jnp.float32),     # res1 conv1 (p=1)
        pltpu.VMEM((G, Lr + 2, 128), jnp.float32),    # res1 conv2
        pltpu.VMEM((G, Lr + 2, 128), jnp.float32),    # res2 conv1
        pltpu.VMEM((G, Lr + 2, 256), jnp.float32),    # res2 conv2
    ]

    kernel = functools.partial(_fused_kernel, G=G, L=L, nclass=NCLASS)
    out = pl.pallas_call(
        kernel,
        out_shape=jax.ShapeDtypeStruct((Np, NCLASS_P), jnp.float32),
        grid=(Np // G,),
        in_specs=in_specs,
        out_specs=pl.BlockSpec((G, NCLASS_P), lambda n: (n, 0)),
        scratch_shapes=scratch,
        compiler_params=pltpu.CompilerParams(
            dimension_semantics=("parallel",),        # batch groups shard cores
            vmem_limit_bytes=32 * 1024 * 1024),
    )(xcol, *weights)
    return out[:N, :NCLASS]


if __name__ == "__main__":
    key = jax.random.PRNGKey(0)
    kp, kx = jax.random.split(key)
    params = init_params(kp)

    # input: (batch=2, channels=1, length=128); length = 128 * 1 (4 maxpools)
    x = jax.random.normal(kx, (2, 1, 128), jnp.float32)

    fwd = jax.jit(forward)
    out = jax.block_until_ready(fwd(params, x))

    assert out.shape == (2, 10)
    assert bool(jnp.all(jnp.isfinite(out)))
    # rows of a softmax sum to 1
    assert bool(jnp.allclose(jnp.sum(out, axis=1), 1.0, atol=1e-3))
    print("KERNEL_OK")
</pallas_src>

<mosaic_0001>
module attributes {stable_mosaic.version = 11 : i64} {
  func.func @_fused_kernel(%arg0: i32, %arg1: memref<256x64xbf16, #tpu.memory_space<vmem>>, %arg2: memref<64x8xbf16, #tpu.memory_space<vmem>>, %arg3: memref<1x8xf32, #tpu.memory_space<vmem>>, %arg4: memref<5x8x16xbf16, #tpu.memory_space<vmem>>, %arg5: memref<1x16xf32, #tpu.memory_space<vmem>>, %arg6: memref<11x16x32xbf16, #tpu.memory_space<vmem>>, %arg7: memref<1x32xf32, #tpu.memory_space<vmem>>, %arg8: memref<11x32x64xbf16, #tpu.memory_space<vmem>>, %arg9: memref<1x64xf32, #tpu.memory_space<vmem>>, %arg10: memref<3x64x128xbf16, #tpu.memory_space<vmem>>, %arg11: memref<1x128xf32, #tpu.memory_space<vmem>>, %arg12: memref<3x128x128xbf16, #tpu.memory_space<vmem>>, %arg13: memref<1x128xf32, #tpu.memory_space<vmem>>, %arg14: memref<64x128xbf16, #tpu.memory_space<vmem>>, %arg15: memref<1x128xf32, #tpu.memory_space<vmem>>, %arg16: memref<3x128x256xbf16, #tpu.memory_space<vmem>>, %arg17: memref<1x256xf32, #tpu.memory_space<vmem>>, %arg18: memref<3x256x256xbf16, #tpu.memory_space<vmem>>, %arg19: memref<1x256xf32, #tpu.memory_space<vmem>>, %arg20: memref<128x256xbf16, #tpu.memory_space<vmem>>, %arg21: memref<1x256xf32, #tpu.memory_space<vmem>>, %arg22: memref<256x128xbf16, #tpu.memory_space<vmem>>, %arg23: memref<1x128xf32, #tpu.memory_space<vmem>>, %arg24: memref<128x64xbf16, #tpu.memory_space<vmem>>, %arg25: memref<1x64xf32, #tpu.memory_space<vmem>>, %arg26: memref<64x128xbf16, #tpu.memory_space<vmem>>, %arg27: memref<1x128xf32, #tpu.memory_space<vmem>>, %arg28: memref<2x128xf32, #tpu.memory_space<vmem>>, %arg29: memref<256x8xf32, #tpu.memory_space<vmem>>, %arg30: memref<128x16xf32, #tpu.memory_space<vmem>>, %arg31: memref<64x32xf32, #tpu.memory_space<vmem>>, %arg32: memref<32x64xf32, #tpu.memory_space<vmem>>, %arg33: memref<2x68x8xf32, #tpu.memory_space<vmem>>, %arg34: memref<2x42x16xf32, #tpu.memory_space<vmem>>, %arg35: memref<2x26x32xf32, #tpu.memory_space<vmem>>, %arg36: memref<2x10x64xf32, #tpu.memory_space<vmem>>, %arg37: memref<2x10x128xf32, #tpu.memory_space<vmem>>, %arg38: memref<2x10x128xf32, #tpu.memory_space<vmem>>, %arg39: memref<2x10x256xf32, #tpu.memory_space<vmem>>) attributes {dimension_semantics = [#tpu.dimension_semantics<parallel>], iteration_bounds = array<i64: 1>, scalar_prefetch = 0 : i64, scratch_operands = 11 : i64, tpu.core_type = #tpu.core_type<tc>, window_params = [{transform_indices = @transform_0, window_bounds = array<i64: 256, 64>}, {pipeline_mode = #tpu.pipeline_mode<synchronous>, transform_indices = @transform_1, window_bounds = array<i64: 64, 8>}, {pipeline_mode = #tpu.pipeline_mode<synchronous>, transform_indices = @transform_2, window_bounds = array<i64: 1, 8>}, {pipeline_mode = #tpu.pipeline_mode<synchronous>, transform_indices = @transform_3, window_bounds = array<i64: 5, 8, 16>}, {pipeline_mode = #tpu.pipeline_mode<synchronous>, transform_indices = @transform_4, window_bounds = array<i64: 1, 16>}, {pipeline_mode = #tpu.pipeline_mode<synchronous>, transform_indices = @transform_5, window_bounds = array<i64: 11, 16, 32>}, {pipeline_mode = #tpu.pipeline_mode<synchronous>, transform_indices = @transform_6, window_bounds = array<i64: 1, 32>}, {pipeline_mode = #tpu.pipeline_mode<synchronous>, transform_indices = @transform_7, window_bounds = array<i64: 11, 32, 64>}, {pipeline_mode = #tpu.pipeline_mode<synchronous>, transform_indices = @transform_8, window_bounds = array<i64: 1, 64>}, {pipeline_mode = #tpu.pipeline_mode<synchronous>, transform_indices = @transform_9, window_bounds = array<i64: 3, 64, 128>}, {pipeline_mode = #tpu.pipeline_mode<synchronous>, transform_indices = @transform_10, window_bounds = array<i64: 1, 128>}, {pipeline_mode = #tpu.pipeline_mode<synchronous>, transform_indices = @transform_11, window_bounds = array<i64: 3, 128, 128>}, {pipeline_mode = #tpu.pipeline_mode<synchronous>, transform_indices = @transform_12, window_bounds = array<i64: 1, 128>}, {pipeline_mode = #tpu.pipeline_mode<synchronous>, transform_indices = @transform_13, window_bounds = array<i64: 64, 128>}, {pipeline_mode = #tpu.pipeline_mode<synchronous>, transform_indices = @transform_14, window_bounds = array<i64: 1, 128>}, {pipeline_mode = #tpu.pipeline_mode<synchronous>, transform_indices = @transform_15, window_bounds = array<i64: 3, 128, 256>}, {pipeline_mode = #tpu.pipeline_mode<synchronous>, transform_indices = @transform_16, window_bounds = array<i64: 1, 256>}, {pipeline_mode = #tpu.pipeline_mode<synchronous>, transform_indices = @transform_17, window_bounds = array<i64: 3, 256, 256>}, {pipeline_mode = #tpu.pipeline_mode<synchronous>, transform_indices = @transform_18, window_bounds = array<i64: 1, 256>}, {pipeline_mode = #tpu.pipeline_mode<synchronous>, transform_indices = @transform_19, window_bounds = array<i64: 128, 256>}, {pipeline_mode = #tpu.pipeline_mode<synchronous>, transform_indices = @transform_20, window_bounds = array<i64: 1, 256>}, {pipeline_mode = #tpu.pipeline_mode<synchronous>, transform_indices = @transform_21, window_bounds = array<i64: 256, 128>}, {pipeline_mode = #tpu.pipeline_mode<synchronous>, transform_indices = @transform_22, window_bounds = array<i64: 1, 128>}, {pipeline_mode = #tpu.pipeline_mode<synchronous>, transform_indices = @transform_23, window_bounds = array<i64: 128, 64>}, {pipeline_mode = #tpu.pipeline_mode<synchronous>, transform_indices = @transform_24, window_bounds = array<i64: 1, 64>}, {pipeline_mode = #tpu.pipeline_mode<synchronous>, transform_indices = @transform_25, window_bounds = array<i64: 64, 128>}, {pipeline_mode = #tpu.pipeline_mode<synchronous>, transform_indices = @transform_26, window_bounds = array<i64: 1, 128>}, {transform_indices = @transform_27, window_bounds = array<i64: 2, 128>}]} {
    %c0 = arith.constant 0 : index
    %c0_0 = arith.constant 0 : index
    %0 = vector.load %arg1[%c0, %c0_0] : memref<256x64xbf16, #tpu.memory_space<vmem>>, vector<256x64xbf16>
    %c0_1 = arith.constant 0 : index
    %c0_2 = arith.constant 0 : index
    %1 = vector.load %arg2[%c0_1, %c0_2] : memref<64x8xbf16, #tpu.memory_space<vmem>>, vector<64x8xbf16>
    %cst = arith.constant dense<0.000000e+00> : vector<256x8xf32>
    %2 = tpu.matmul %0, %1, %cst {dimension_numbers = #tpu.dot_dimension_numbers<[1], [0], [0], [1], [0, 0, 1, 1], [], []>} : vector<256x64xbf16>, vector<64x8xbf16>, vector<256x8xf32> -> vector<256x8xf32>
    %c0_3 = arith.constant 0 : index
    %c0_4 = arith.constant 0 : index
    %3 = vector.load %arg3[%c0_3, %c0_4] : memref<1x8xf32, #tpu.memory_space<vmem>>, vector<1x8xf32>
    %4 = vector.broadcast %3 : vector<1x8xf32> to vector<256x8xf32>
    %5 = arith.addf %2, %4 : vector<256x8xf32>
    %cst_5 = arith.constant 0.000000e+00 : f32
    %6 = vector.broadcast %cst_5 : f32 to vector<256x8xf32>
    %7 = arith.cmpf oge, %5, %6 : vector<256x8xf32>
    %cst_6 = arith.constant 0.00999999977 : f32
    %8 = vector.broadcast %cst_6 : f32 to vector<256x8xf32>
    %9 = arith.mulf %8, %5 : vector<256x8xf32>
    %10 = arith.select %7, %5, %9 : vector<256x8xi1>, vector<256x8xf32>
    %c0_7 = arith.constant 0 : index
    %c0_8 = arith.constant 0 : index
    %11 = vector.load %arg29[%c0_7, %c0_8] : memref<256x8xf32, #tpu.memory_space<vmem>>, vector<256x8xf32>
    tpu.vector_store %arg29[%c0_7, %c0_8], %10 {strides = array<i32>} : memref<256x8xf32, #tpu.memory_space<vmem>>, vector<256x8xf32>,
    %c0_9 = arith.constant 0 : index
    %c0_10 = arith.constant 0 : index
    %12 = tpu.strided_load %arg29[%c0_9, %c0_10] {strides = array<i32: 2, 1>} : memref<256x8xf32, #tpu.memory_space<vmem>>, vector<128x8xf32>
    %c1 = arith.constant 1 : index
    %c0_11 = arith.constant 0 : index
    %13 = tpu.strided_load %arg29[%c1, %c0_11] {strides = array<i32: 2, 1>} : memref<256x8xf32, #tpu.memory_space<vmem>>, vector<128x8xf32>
    %14 = arith.maximumf %12, %13 : vector<128x8xf32>
    %cst_12 = arith.constant 0.000000e+00 : f32
    %15 = vector.broadcast %cst_12 : f32 to vector<2x68x8xf32>
    %c0_13 = arith.constant 0 : index
    %c0_14 = arith.constant 0 : index
    %c0_15 = arith.constant 0 : index
    %16 = vector.load %arg33[%c0_13, %c0_14, %c0_15] : memref<2x68x8xf32, #tpu.memory_space<vmem>>, vector<2x68x8xf32>
    tpu.vector_store %arg33[%c0_13, %c0_14, %c0_15], %15 {strides = array<i32>} : memref<2x68x8xf32, #tpu.memory_space<vmem>>, vector<2x68x8xf32>,
    %17 = vector.shape_cast %14 : vector<128x8xf32> to vector<2x64x8xf32>
    %c0_16 = arith.constant 0 : index
    %c2 = arith.constant 2 : index
    %c0_17 = arith.constant 0 : index
    %18 = vector.load %arg33[%c0_16, %c2, %c0_17] : memref<2x68x8xf32, #tpu.memory_space<vmem>>, vector<2x64x8xf32>
    tpu.vector_store %arg33[%c0_16, %c2, %c0_17], %17 {strides = array<i32>} : memref<2x68x8xf32, #tpu.memory_space<vmem>>, vector<2x64x8xf32>,
    %cst_18 = arith.constant 0.000000e+00 : f32
    %19 = vector.broadcast %cst_18 : f32 to vector<128x16xf32>
    %c0_19 = arith.constant 0 : index
    %c0_20 = arith.constant 0 : index
    %c0_21 = arith.constant 0 : index
    %20 = vector.load %arg33[%c0_19, %c0_20, %c0_21] : memref<2x68x8xf32, #tpu.memory_space<vmem>>, vector<2x64x8xf32>
    %21 = vector.shape_cast %20 : vector<2x64x8xf32> to vector<128x8xf32>
    %22 = arith.truncf %21 : vector<128x8xf32> to vector<128x8xbf16>
    %c0_22 = arith.constant 0 : index
    %c0_23 = arith.constant 0 : index
    %c0_24 = arith.constant 0 : index
    %23 = vector.load %arg4[%c0_22, %c0_23, %c0_24] : memref<5x8x16xbf16, #tpu.memory_space<vmem>>, vector<1x8x16xbf16>
    %24 = vector.shape_cast %23 : vector<1x8x16xbf16> to vector<8x16xbf16>
    %cst_25 = arith.constant dense<0.000000e+00> : vector<128x16xf32>
    %25 = tpu.matmul %22, %24, %cst_25 {dimension_numbers = #tpu.dot_dimension_numbers<[1], [0], [0], [1], [0, 0, 1, 1], [], []>} : vector<128x8xbf16>, vector<8x16xbf16>, vector<128x16xf32> -> vector<128x16xf32>
    %26 = arith.addf %19, %25 : vector<128x16xf32>
    %c0_26 = arith.constant 0 : index
    %c1_27 = arith.constant 1 : index
    %c0_28 = arith.constant 0 : index
    %27 = vector.load %arg33[%c0_26, %c1_27, %c0_28] : memref<2x68x8xf32, #tpu.memory_space<vmem>>, vector<2x64x8xf32>
    %28 = vector.shape_cast %27 : vector<2x64x8xf32> to vector<128x8xf32>
    %29 = arith.truncf %28 : vector<128x8xf32> to vector<128x8xbf16>
    %c1_29 = arith.constant 1 : index
    %c0_30 = arith.constant 0 : index
    %c0_31 = arith.constant 0 : index
    %30 = vector.load %arg4[%c1_29, %c0_30, %c0_31] : memref<5x8x16xbf16, #tpu.memory_space<vmem>>, vector<1x8x16xbf16>
    %31 = vector.shape_cast %30 : vector<1x8x16xbf16> to vector<8x16xbf16>
    %cst_32 = arith.constant dense<0.000000e+00> : vector<128x16xf32>
    %32 = tpu.matmul %29, %31, %cst_32 {dimension_numbers = #tpu.dot_dimension_numbers<[1], [0], [0], [1], [0, 0, 1, 1], [], []>} : vector<128x8xbf16>, vector<8x16xbf16>, vector<128x16xf32> -> vector<128x16xf32>
    %33 = arith.addf %26, %32 : vector<128x16xf32>
    %c0_33 = arith.constant 0 : index
    %c2_34 = arith.constant 2 : index
    %c0_35 = arith.constant 0 : index
    %34 = vector.load %arg33[%c0_33, %c2_34, %c0_35] : memref<2x68x8xf32, #tpu.memory_space<vmem>>, vector<2x64x8xf32>
    %35 = vector.shape_cast %34 : vector<2x64x8xf32> to vector<128x8xf32>
    %36 = arith.truncf %35 : vector<128x8xf32> to vector<128x8xbf16>
    %c2_36 = arith.constant 2 : index
    %c0_37 = arith.constant 0 : index
    %c0_38 = arith.constant 0 : index
    %37 = vector.load %arg4[%c2_36, %c0_37, %c0_38] : memref<5x8x16xbf16, #tpu.memory_space<vmem>>, vector<1x8x16xbf16>
    %38 = vector.shape_cast %37 : vector<1x8x16xbf16> to vector<8x16xbf16>
    %cst_39 = arith.constant dense<0.000000e+00> : vector<128x16xf32>
    %39 = tpu.matmul %36, %38, %cst_39 {dimension_numbers = #tpu.dot_dimension_numbers<[1], [0], [0], [1], [0, 0, 1, 1], [], []>} : vector<128x8xbf16>, vector<8x16xbf16>, vector<128x16xf32> -> vector<128x16xf32>
    %40 = arith.addf %33, %39 : vector<128x16xf32>
    %c0_40 = arith.constant 0 : index
    %c3 = arith.constant 3 : index
    %c0_41 = arith.constant 0 : index
    %41 = vector.load %arg33[%c0_40, %c3, %c0_41] : memref<2x68x8xf32, #tpu.memory_space<vmem>>, vector<2x64x8xf32>
    %42 = vector.shape_cast %41 : vector<2x64x8xf32> to vector<128x8xf32>
    %43 = arith.truncf %42 : vector<128x8xf32> to vector<128x8xbf16>
    %c3_42 = arith.constant 3 : index
    %c0_43 = arith.constant 0 : index
    %c0_44 = arith.constant 0 : index
    %44 = vector.load %arg4[%c3_42, %c0_43, %c0_44] : memref<5x8x16xbf16, #tpu.memory_space<vmem>>, vector<1x8x16xbf16>
    %45 = vector.shape_cast %44 : vector<1x8x16xbf16> to vector<8x16xbf16>
    %cst_45 = arith.constant dense<0.000000e+00> : vector<128x16xf32>
    %46 = tpu.matmul %43, %45, %cst_45 {dimension_numbers = #tpu.dot_dimension_numbers<[1], [0], [0], [1], [0, 0, 1, 1], [], []>} : vector<128x8xbf16>, vector<8x16xbf16>, vector<128x16xf32> -> vector<128x16xf32>
    %47 = arith.addf %40, %46 : vector<128x16xf32>
    %c0_46 = arith.constant 0 : index
    %c4 = arith.constant 4 : index
    %c0_47 = arith.constant 0 : index
    %48 = vector.load %arg33[%c0_46, %c4, %c0_47] : memref<2x68x8xf32, #tpu.memory_space<vmem>>, vector<2x64x8xf32>
    %49 = vector.shape_cast %48 : vector<2x64x8xf32> to vector<128x8xf32>
    %50 = arith.truncf %49 : vector<128x8xf32> to vector<128x8xbf16>
    %c4_48 = arith.constant 4 : index
    %c0_49 = arith.constant 0 : index
    %c0_50 = arith.constant 0 : index
    %51 = vector.load %arg4[%c4_48, %c0_49, %c0_50] : memref<5x8x16xbf16, #tpu.memory_space<vmem>>, vector<1x8x16xbf16>
    %52 = vector.shape_cast %51 : vector<1x8x16xbf16> to vector<8x16xbf16>
    %cst_51 = arith.constant dense<0.000000e+00> : vector<128x16xf32>
    %53 = tpu.matmul %50, %52, %cst_51 {dimension_numbers = #tpu.dot_dimension_numbers<[1], [0], [0], [1], [0, 0, 1, 1], [], []>} : vector<128x8xbf16>, vector<8x16xbf16>, vector<128x16xf32> -> vector<128x16xf32>
    %54 = arith.addf %47, %53 : vector<128x16xf32>
    %c0_52 = arith.constant 0 : index
    %c0_53 = arith.constant 0 : index
    %55 = vector.load %arg5[%c0_52, %c0_53] : memref<1x16xf32, #tpu.memory_space<vmem>>, vector<1x16xf32>
    %56 = vector.broadcast %55 : vector<1x16xf32> to vector<128x16xf32>
    %57 = arith.addf %54, %56 : vector<128x16xf32>
    %cst_54 = arith.constant 0.000000e+00 : f32
    %58 = vector.broadcast %cst_54 : f32 to vector<128x16xf32>
    %59 = arith.cmpf oge, %57, %58 : vector<128x16xf32>
    %cst_55 = arith.constant 0.00999999977 : f32
    %60 = vector.broadcast %cst_55 : f32 to vector<128x16xf32>
    %61 = arith.mulf %60, %57 : vector<128x16xf32>
    %62 = arith.select %59, %57, %61 : vector<128x16xi1>, vector<128x16xf32>
    %c0_56 = arith.constant 0 : index
    %c0_57 = arith.constant 0 : index
    %63 = vector.load %arg30[%c0_56, %c0_57] : memref<128x16xf32, #tpu.memory_space<vmem>>, vector<128x16xf32>
    tpu.vector_store %arg30[%c0_56, %c0_57], %62 {strides = array<i32>} : memref<128x16xf32, #tpu.memory_space<vmem>>, vector<128x16xf32>,
    %c0_58 = arith.constant 0 : index
    %c0_59 = arith.constant 0 : index
    %64 = tpu.strided_load %arg30[%c0_58, %c0_59] {strides = array<i32: 2, 1>} : memref<128x16xf32, #tpu.memory_space<vmem>>, vector<64x16xf32>
    %c1_60 = arith.constant 1 : index
    %c0_61 = arith.constant 0 : index
    %65 = tpu.strided_load %arg30[%c1_60, %c0_61] {strides = array<i32: 2, 1>} : memref<128x16xf32, #tpu.memory_space<vmem>>, vector<64x16xf32>
    %66 = arith.maximumf %64, %65 : vector<64x16xf32>
    %cst_62 = arith.constant 0.000000e+00 : f32
    %67 = vector.broadcast %cst_62 : f32 to vector<2x42x16xf32>
    %c0_63 = arith.constant 0 : index
    %c0_64 = arith.constant 0 : index
    %c0_65 = arith.constant 0 : index
    %68 = vector.load %arg34[%c0_63, %c0_64, %c0_65] : memref<2x42x16xf32, #tpu.memory_space<vmem>>, vector<2x42x16xf32>
    tpu.vector_store %arg34[%c0_63, %c0_64, %c0_65], %67 {strides = array<i32>} : memref<2x42x16xf32, #tpu.memory_space<vmem>>, vector<2x42x16xf32>,
    %69 = vector.shape_cast %66 : vector<64x16xf32> to vector<2x32x16xf32>
    %c0_66 = arith.constant 0 : index
    %c5 = arith.constant 5 : index
    %c0_67 = arith.constant 0 : index
    %70 = vector.load %arg34[%c0_66, %c5, %c0_67] : memref<2x42x16xf32, #tpu.memory_space<vmem>>, vector<2x32x16xf32>
    tpu.vector_store %arg34[%c0_66, %c5, %c0_67], %69 {strides = array<i32>} : memref<2x42x16xf32, #tpu.memory_space<vmem>>, vector<2x32x16xf32>,
    %cst_68 = arith.constant 0.000000e+00 : f32
    %71 = vector.broadcast %cst_68 : f32 to vector<64x32xf32>
    %c0_69 = arith.constant 0 : index
    %c0_70 = arith.constant 0 : index
    %c0_71 = arith.constant 0 : index
    %72 = vector.load %arg34[%c0_69, %c0_70, %c0_71] : memref<2x42x16xf32, #tpu.memory_space<vmem>>, vector<2x32x16xf32>
    %73 = vector.shape_cast %72 : vector<2x32x16xf32> to vector<64x16xf32>
    %74 = arith.truncf %73 : vector<64x16xf32> to vector<64x16xbf16>
    %c0_72 = arith.constant 0 : index
    %c0_73 = arith.constant 0 : index
    %c0_74 = arith.constant 0 : index
    %75 = vector.load %arg6[%c0_72, %c0_73, %c0_74] : memref<11x16x32xbf16, #tpu.memory_space<vmem>>, vector<1x16x32xbf16>
    %76 = vector.shape_cast %75 : vector<1x16x32xbf16> to vector<16x32xbf16>
    %cst_75 = arith.constant dense<0.000000e+00> : vector<64x32xf32>
    %77 = tpu.matmul %74, %76, %cst_75 {dimension_numbers = #tpu.dot_dimension_numbers<[1], [0], [0], [1], [0, 0, 1, 1], [], []>} : vector<64x16xbf16>, vector<16x32xbf16>, vector<64x32xf32> -> vector<64x32xf32>
    %78 = arith.addf %71, %77 : vector<64x32xf32>
    %c0_76 = arith.constant 0 : index
    %c1_77 = arith.constant 1 : index
    %c0_78 = arith.constant 0 : index
    %79 = vector.load %arg34[%c0_76, %c1_77, %c0_78] : memref<2x42x16xf32, #tpu.memory_space<vmem>>, vector<2x32x16xf32>
    %80 = vector.shape_cast %79 : vector<2x32x16xf32> to vector<64x16xf32>
    %81 = arith.truncf %80 : vector<64x16xf32> to vector<64x16xbf16>
    %c1_79 = arith.constant 1 : index
    %c0_80 = arith.constant 0 : index
    %c0_81 = arith.constant 0 : index
    %82 = vector.load %arg6[%c1_79, %c0_80, %c0_81] : memref<11x16x32xbf16, #tpu.memory_space<vmem>>, vector<1x16x32xbf16>
    %83 = vector.shape_cast %82 : vector<1x16x32xbf16> to vector<16x32xbf16>
    %cst_82 = arith.constant dense<0.000000e+00> : vector<64x32xf32>
    %84 = tpu.matmul %81, %83, %cst_82 {dimension_numbers = #tpu.dot_dimension_numbers<[1], [0], [0], [1], [0, 0, 1, 1], [], []>} : vector<64x16xbf16>, vector<16x32xbf16>, vector<64x32xf32> -> vector<64x32xf32>
    %85 = arith.addf %78, %84 : vector<64x32xf32>
    %c0_83 = arith.constant 0 : index
    %c2_84 = arith.constant 2 : index
    %c0_85 = arith.constant 0 : index
    %86 = vector.load %arg34[%c0_83, %c2_84, %c0_85] : memref<2x42x16xf32, #tpu.memory_space<vmem>>, vector<2x32x16xf32>
    %87 = vector.shape_cast %86 : vector<2x32x16xf32> to vector<64x16xf32>
    %88 = arith.truncf %87 : vector<64x16xf32> to vector<64x16xbf16>
    %c2_86 = arith.constant 2 : index
    %c0_87 = arith.constant 0 : index
    %c0_88 = arith.constant 0 : index
    %89 = vector.load %arg6[%c2_86, %c0_87, %c0_88] : memref<11x16x32xbf16, #tpu.memory_space<vmem>>, vector<1x16x32xbf16>
    %90 = vector.shape_cast %89 : vector<1x16x32xbf16> to vector<16x32xbf16>
    %cst_89 = arith.constant dense<0.000000e+00> : vector<64x32xf32>
    %91 = tpu.matmul %88, %90, %cst_89 {dimension_numbers = #tpu.dot_dimension_numbers<[1], [0], [0], [1], [0, 0, 1, 1], [], []>} : vector<64x16xbf16>, vector<16x32xbf16>, vector<64x32xf32> -> vector<64x32xf32>
    %92 = arith.addf %85, %91 : vector<64x32xf32>
    %c0_90 = arith.constant 0 : index
    %c3_91 = arith.constant 3 : index
    %c0_92 = arith.constant 0 : index
    %93 = vector.load %arg34[%c0_90, %c3_91, %c0_92] : memref<2x42x16xf32, #tpu.memory_space<vmem>>, vector<2x32x16xf32>
    %94 = vector.shape_cast %93 : vector<2x32x16xf32> to vector<64x16xf32>
    %95 = arith.truncf %94 : vector<64x16xf32> to vector<64x16xbf16>
    %c3_93 = arith.constant 3 : index
    %c0_94 = arith.constant 0 : index
    %c0_95 = arith.constant 0 : index
    %96 = vector.load %arg6[%c3_93, %c0_94, %c0_95] : memref<11x16x32xbf16, #tpu.memory_space<vmem>>, vector<1x16x32xbf16>
    %97 = vector.shape_cast %96 : vector<1x16x32xbf16> to vector<16x32xbf16>
    %cst_96 = arith.constant dense<0.000000e+00> : vector<64x32xf32>
    %98 = tpu.matmul %95, %97, %cst_96 {dimension_numbers = #tpu.dot_dimension_numbers<[1], [0], [0], [1], [0, 0, 1, 1], [], []>} : vector<64x16xbf16>, vector<16x32xbf16>, vector<64x32xf32> -> vector<64x32xf32>
    %99 = arith.addf %92, %98 : vector<64x32xf32>
    %c0_97 = arith.constant 0 : index
    %c4_98 = arith.constant 4 : index
    %c0_99 = arith.constant 0 : index
    %100 = vector.load %arg34[%c0_97, %c4_98, %c0_99] : memref<2x42x16xf32, #tpu.memory_space<vmem>>, vector<2x32x16xf32>
    %101 = vector.shape_cast %100 : vector<2x32x16xf32> to vector<64x16xf32>
    %102 = arith.truncf %101 : vector<64x16xf32> to vector<64x16xbf16>
    %c4_100 = arith.constant 4 : index
    %c0_101 = arith.constant 0 : index
    %c0_102 = arith.constant 0 : index
    %103 = vector.load %arg6[%c4_100, %c0_101, %c0_102] : memref<11x16x32xbf16, #tpu.memory_space<vmem>>, vector<1x16x32xbf16>
    %104 = vector.shape_cast %103 : vector<1x16x32xbf16> to vector<16x32xbf16>
    %cst_103 = arith.constant dense<0.000000e+00> : vector<64x32xf32>
    %105 = tpu.matmul %102, %104, %cst_103 {dimension_numbers = #tpu.dot_dimension_numbers<[1], [0], [0], [1], [0, 0, 1, 1], [], []>} : vector<64x16xbf16>, vector<16x32xbf16>, vector<64x32xf32> -> vector<64x32xf32>
    %106 = arith.addf %99, %105 : vector<64x32xf32>
    %c0_104 = arith.constant 0 : index
    %c5_105 = arith.constant 5 : index
    %c0_106 = arith.constant 0 : index
    %107 = vector.load %arg34[%c0_104, %c5_105, %c0_106] : memref<2x42x16xf32, #tpu.memory_space<vmem>>, vector<2x32x16xf32>
    %108 = vector.shape_cast %107 : vector<2x32x16xf32> to vector<64x16xf32>
    %109 = arith.truncf %108 : vector<64x16xf32> to vector<64x16xbf16>
    %c5_107 = arith.constant 5 : index
    %c0_108 = arith.constant 0 : index
    %c0_109 = arith.constant 0 : index
    %110 = vector.load %arg6[%c5_107, %c0_108, %c0_109] : memref<11x16x32xbf16, #tpu.memory_space<vmem>>, vector<1x16x32xbf16>
    %111 = vector.shape_cast %110 : vector<1x16x32xbf16> to vector<16x32xbf16>
    %cst_110 = arith.constant dense<0.000000e+00> : vector<64x32xf32>
    %112 = tpu.matmul %109, %111, %cst_110 {dimension_numbers = #tpu.dot_dimension_numbers<[1], [0], [0], [1], [0, 0, 1, 1], [], []>} : vector<64x16xbf16>, vector<16x32xbf16>, vector<64x32xf32> -> vector<64x32xf32>
    %113 = arith.addf %106, %112 : vector<64x32xf32>
    %c0_111 = arith.constant 0 : index
    %c6 = arith.constant 6 : index
    %c0_112 = arith.constant 0 : index
    %114 = vector.load %arg34[%c0_111, %c6, %c0_112] : memref<2x42x16xf32, #tpu.memory_space<vmem>>, vector<2x32x16xf32>
    %115 = vector.shape_cast %114 : vector<2x32x16xf32> to vector<64x16xf32>
    %116 = arith.truncf %115 : vector<64x16xf32> to vector<64x16xbf16>
    %c6_113 = arith.constant 6 : index
    %c0_114 = arith.constant 0 : index
    %c0_115 = arith.constant 0 : index
    %117 = vector.load %arg6[%c6_113, %c0_114, %c0_115] : memref<11x16x32xbf16, #tpu.memory_space<vmem>>, vector<1x16x32xbf16>
    %118 = vector.shape_cast %117 : vector<1x16x32xbf16> to vector<16x32xbf16>
    %cst_116 = arith.constant dense<0.000000e+00> : vector<64x32xf32>
    %119 = tpu.matmul %116, %118, %cst_116 {dimension_numbers = #tpu.dot_dimension_numbers<[1], [0], [0], [1], [0, 0, 1, 1], [], []>} : vector<64x16xbf16>, vector<16x32xbf16>, vector<64x32xf32> -> vector<64x32xf32>
    %120 = arith.addf %113, %119 : vector<64x32xf32>
    %c0_117 = arith.constant 0 : index
    %c7 = arith.constant 7 : index
    %c0_118 = arith.constant 0 : index
    %121 = vector.load %arg34[%c0_117, %c7, %c0_118] : memref<2x42x16xf32, #tpu.memory_space<vmem>>, vector<2x32x16xf32>
    %122 = vector.shape_cast %121 : vector<2x32x16xf32> to vector<64x16xf32>
    %123 = arith.truncf %122 : vector<64x16xf32> to vector<64x16xbf16>
    %c7_119 = arith.constant 7 : index
    %c0_120 = arith.constant 0 : index
    %c0_121 = arith.constant 0 : index
    %124 = vector.load %arg6[%c7_119, %c0_120, %c0_121] : memref<11x16x32xbf16, #tpu.memory_space<vmem>>, vector<1x16x32xbf16>
    %125 = vector.shape_cast %124 : vector<1x16x32xbf16> to vector<16x32xbf16>
    %cst_122 = arith.constant dense<0.000000e+00> : vector<64x32xf32>
    %126 = tpu.matmul %123, %125, %cst_122 {dimension_numbers = #tpu.dot_dimension_numbers<[1], [0], [0], [1], [0, 0, 1, 1], [], []>} : vector<64x16xbf16>, vector<16x32xbf16>, vector<64x32xf32> -> vector<64x32xf32>
    %127 = arith.addf %120, %126 : vector<64x32xf32>
    %c0_123 = arith.constant 0 : index
    %c8 = arith.constant 8 : index
    %c0_124 = arith.constant 0 : index
    %128 = vector.load %arg34[%c0_123, %c8, %c0_124] : memref<2x42x16xf32, #tpu.memory_space<vmem>>, vector<2x32x16xf32>
    %129 = vector.shape_cast %128 : vector<2x32x16xf32> to vector<64x16xf32>
    %130 = arith.truncf %129 : vector<64x16xf32> to vector<64x16xbf16>
    %c8_125 = arith.constant 8 : index
    %c0_126 = arith.constant 0 : index
    %c0_127 = arith.constant 0 : index
    %131 = vector.load %arg6[%c8_125, %c0_126, %c0_127] : memref<11x16x32xbf16, #tpu.memory_space<vmem>>, vector<1x16x32xbf16>
    %132 = vector.shape_cast %131 : vector<1x16x32xbf16> to vector<16x32xbf16>
    %cst_128 = arith.constant dense<0.000000e+00> : vector<64x32xf32>
    %133 = tpu.matmul %130, %132, %cst_128 {dimension_numbers = #tpu.dot_dimension_numbers<[1], [0], [0], [1], [0, 0, 1, 1], [], []>} : vector<64x16xbf16>, vector<16x32xbf16>, vector<64x32xf32> -> vector<64x32xf32>
    %134 = arith.addf %127, %133 : vector<64x32xf32>
    %c0_129 = arith.constant 0 : index
    %c9 = arith.constant 9 : index
    %c0_130 = arith.constant 0 : index
    %135 = vector.load %arg34[%c0_129, %c9, %c0_130] : memref<2x42x16xf32, #tpu.memory_space<vmem>>, vector<2x32x16xf32>
    %136 = vector.shape_cast %135 : vector<2x32x16xf32> to vector<64x16xf32>
    %137 = arith.truncf %136 : vector<64x16xf32> to vector<64x16xbf16>
    %c9_131 = arith.constant 9 : index
    %c0_132 = arith.constant 0 : index
    %c0_133 = arith.constant 0 : index
    %138 = vector.load %arg6[%c9_131, %c0_132, %c0_133] : memref<11x16x32xbf16, #tpu.memory_space<vmem>>, vector<1x16x32xbf16>
    %139 = vector.shape_cast %138 : vector<1x16x32xbf16> to vector<16x32xbf16>
    %cst_134 = arith.constant dense<0.000000e+00> : vector<64x32xf32>
    %140 = tpu.matmul %137, %139, %cst_134 {dimension_numbers = #tpu.dot_dimension_numbers<[1], [0], [0], [1], [0, 0, 1, 1], [], []>} : vector<64x16xbf16>, vector<16x32xbf16>, vector<64x32xf32> -> vector<64x32xf32>
    %141 = arith.addf %134, %140 : vector<64x32xf32>
    %c0_135 = arith.constant 0 : index
    %c10 = arith.constant 10 : index
    %c0_136 = arith.constant 0 : index
    %142 = vector.load %arg34[%c0_135, %c10, %c0_136] : memref<2x42x16xf32, #tpu.memory_space<vmem>>, vector<2x32x16xf32>
    %143 = vector.shape_cast %142 : vector<2x32x16xf32> to vector<64x16xf32>
    %144 = arith.truncf %143 : vector<64x16xf32> to vector<64x16xbf16>
    %c10_137 = arith.constant 10 : index
    %c0_138 = arith.constant 0 : index
    %c0_139 = arith.constant 0 : index
    %145 = vector.load %arg6[%c10_137, %c0_138, %c0_139] : memref<11x16x32xbf16, #tpu.memory_space<vmem>>, vector<1x16x32xbf16>
    %146 = vector.shape_cast %145 : vector<1x16x32xbf16> to vector<16x32xbf16>
    %cst_140 = arith.constant dense<0.000000e+00> : vector<64x32xf32>
    %147 = tpu.matmul %144, %146, %cst_140 {dimension_numbers = #tpu.dot_dimension_numbers<[1], [0], [0], [1], [0, 0, 1, 1], [], []>} : vector<64x16xbf16>, vector<16x32xbf16>, vector<64x32xf32> -> vector<64x32xf32>
    %148 = arith.addf %141, %147 : vector<64x32xf32>
    %c0_141 = arith.constant 0 : index
    %c0_142 = arith.constant 0 : index
    %149 = vector.load %arg7[%c0_141, %c0_142] : memref<1x32xf32, #tpu.memory_space<vmem>>, vector<1x32xf32>
    %150 = vector.broadcast %149 : vector<1x32xf32> to vector<64x32xf32>
    %151 = arith.addf %148, %150 : vector<64x32xf32>
    %cst_143 = arith.constant 0.000000e+00 : f32
    %152 = vector.broadcast %cst_143 : f32 to vector<64x32xf32>
    %153 = arith.cmpf oge, %151, %152 : vector<64x32xf32>
    %cst_144 = arith.constant 0.00999999977 : f32
    %154 = vector.broadcast %cst_144 : f32 to vector<64x32xf32>
    %155 = arith.mulf %154, %151 : vector<64x32xf32>
    %156 = arith.select %153, %151, %155 : vector<64x32xi1>, vector<64x32xf32>
    %c0_145 = arith.constant 0 : index
    %c0_146 = arith.constant 0 : index
    %157 = vector.load %arg31[%c0_145, %c0_146] : memref<64x32xf32, #tpu.memory_space<vmem>>, vector<64x32xf32>
    tpu.vector_store %arg31[%c0_145, %c0_146], %156 {strides = array<i32>} : memref<64x32xf32, #tpu.memory_space<vmem>>, vector<64x32xf32>,
    %c0_147 = arith.constant 0 : index
    %c0_148 = arith.constant 0 : index
    %158 = tpu.strided_load %arg31[%c0_147, %c0_148] {strides = array<i32: 2, 1>} : memref<64x32xf32, #tpu.memory_space<vmem>>, vector<32x32xf32>
    %c1_149 = arith.constant 1 : index
    %c0_150 = arith.constant 0 : index
    %159 = tpu.strided_load %arg31[%c1_149, %c0_150] {strides = array<i32: 2, 1>} : memref<64x32xf32, #tpu.memory_space<vmem>>, vector<32x32xf32>
    %160 = arith.maximumf %158, %159 : vector<32x32xf32>
    %cst_151 = arith.constant 0.000000e+00 : f32
    %161 = vector.broadcast %cst_151 : f32 to vector<2x26x32xf32>
    %c0_152 = arith.constant 0 : index
    %c0_153 = arith.constant 0 : index
    %c0_154 = arith.constant 0 : index
    %162 = vector.load %arg35[%c0_152, %c0_153, %c0_154] : memref<2x26x32xf32, #tpu.memory_space<vmem>>, vector<2x26x32xf32>
    tpu.vector_store %arg35[%c0_152, %c0_153, %c0_154], %161 {strides = array<i32>} : memref<2x26x32xf32, #tpu.memory_space<vmem>>, vector<2x26x32xf32>,
    %163 = vector.shape_cast %160 : vector<32x32xf32> to vector<2x16x32xf32>
    %c0_155 = arith.constant 0 : index
    %c5_156 = arith.constant 5 : index
    %c0_157 = arith.constant 0 : index
    %164 = vector.load %arg35[%c0_155, %c5_156, %c0_157] : memref<2x26x32xf32, #tpu.memory_space<vmem>>, vector<2x16x32xf32>
    tpu.vector_store %arg35[%c0_155, %c5_156, %c0_157], %163 {strides = array<i32>} : memref<2x26x32xf32, #tpu.memory_space<vmem>>, vector<2x16x32xf32>,
    %cst_158 = arith.constant 0.000000e+00 : f32
    %165 = vector.broadcast %cst_158 : f32 to vector<32x64xf32>
    %c0_159 = arith.constant 0 : index
    %c0_160 = arith.constant 0 : index
    %c0_161 = arith.constant 0 : index
    %166 = vector.load %arg35[%c0_159, %c0_160, %c0_161] : memref<2x26x32xf32, #tpu.memory_space<vmem>>, vector<2x16x32xf32>
    %167 = vector.shape_cast %166 : vector<2x16x32xf32> to vector<32x32xf32>
    %168 = arith.truncf %167 : vector<32x32xf32> to vector<32x32xbf16>
    %c0_162 = arith.constant 0 : index
    %c0_163 = arith.constant 0 : index
    %c0_164 = arith.constant 0 : index
    %169 = vector.load %arg8[%c0_162, %c0_163, %c0_164] : memref<11x32x64xbf16, #tpu.memory_space<vmem>>, vector<1x32x64xbf16>
    %170 = vector.shape_cast %169 : vector<1x32x64xbf16> to vector<32x64xbf16>
    %cst_165 = arith.constant dense<0.000000e+00> : vector<32x64xf32>
    %171 = tpu.matmul %168, %170, %cst_165 {dimension_numbers = #tpu.dot_dimension_numbers<[1], [0], [0], [1], [0, 0, 1, 1], [], []>} : vector<32x32xbf16>, vector<32x64xbf16>, vector<32x64xf32> -> vector<32x64xf32>
    %172 = arith.addf %165, %171 : vector<32x64xf32>
    %c0_166 = arith.constant 0 : index
    %c1_167 = arith.constant 1 : index
    %c0_168 = arith.constant 0 : index
    %173 = vector.load %arg35[%c0_166, %c1_167, %c0_168] : memref<2x26x32xf32, #tpu.memory_space<vmem>>, vector<2x16x32xf32>
    %174 = vector.shape_cast %173 : vector<2x16x32xf32> to vector<32x32xf32>
    %175 = arith.truncf %174 : vector<32x32xf32> to vector<32x32xbf16>
    %c1_169 = arith.constant 1 : index
    %c0_170 = arith.constant 0 : index
    %c0_171 = arith.constant 0 : index
    %176 = vector.load %arg8[%c1_169, %c0_170, %c0_171] : memref<11x32x64xbf16, #tpu.memory_space<vmem>>, vector<1x32x64xbf16>
    %177 = vector.shape_cast %176 : vector<1x32x64xbf16> to vector<32x64xbf16>
    %cst_172 = arith.constant dense<0.000000e+00> : vector<32x64xf32>
    %178 = tpu.matmul %175, %177, %cst_172 {dimension_numbers = #tpu.dot_dimension_numbers<[1], [0], [0], [1], [0, 0, 1, 1], [], []>} : vector<32x32xbf16>, vector<32x64xbf16>, vector<32x64xf32> -> vector<32x64xf32>
    %179 = arith.addf %172, %178 : vector<32x64xf32>
    %c0_173 = arith.constant 0 : index
    %c2_174 = arith.constant 2 : index
    %c0_175 = arith.constant 0 : index
    %180 = vector.load %arg35[%c0_173, %c2_174, %c0_175] : memref<2x26x32xf32, #tpu.memory_space<vmem>>, vector<2x16x32xf32>
    %181 = vector.shape_cast %180 : vector<2x16x32xf32> to vector<32x32xf32>
    %182 = arith.truncf %181 : vector<32x32xf32> to vector<32x32xbf16>
    %c2_176 = arith.constant 2 : index
    %c0_177 = arith.constant 0 : index
    %c0_178 = arith.constant 0 : index
    %183 = vector.load %arg8[%c2_176, %c0_177, %c0_178] : memref<11x32x64xbf16, #tpu.memory_space<vmem>>, vector<1x32x64xbf16>
    %184 = vector.shape_cast %183 : vector<1x32x64xbf16> to vector<32x64xbf16>
    %cst_179 = arith.constant dense<0.000000e+00> : vector<32x64xf32>
    %185 = tpu.matmul %182, %184, %cst_179 {dimension_numbers = #tpu.dot_dimension_numbers<[1], [0], [0], [1], [0, 0, 1, 1], [], []>} : vector<32x32xbf16>, vector<32x64xbf16>, vector<32x64xf32> -> vector<32x64xf32>
    %186 = arith.addf %179, %185 : vector<32x64xf32>
    %c0_180 = arith.constant 0 : index
    %c3_181 = arith.constant 3 : index
    %c0_182 = arith.constant 0 : index
    %187 = vector.load %arg35[%c0_180, %c3_181, %c0_182] : memref<2x26x32xf32, #tpu.memory_space<vmem>>, vector<2x16x32xf32>
    %188 = vector.shape_cast %187 : vector<2x16x32xf32> to vector<32x32xf32>
    %189 = arith.truncf %188 : vector<32x32xf32> to vector<32x32xbf16>
    %c3_183 = arith.constant 3 : index
    %c0_184 = arith.constant 0 : index
    %c0_185 = arith.constant 0 : index
    %190 = vector.load %arg8[%c3_183, %c0_184, %c0_185] : memref<11x32x64xbf16, #tpu.memory_space<vmem>>, vector<1x32x64xbf16>
    %191 = vector.shape_cast %190 : vector<1x32x64xbf16> to vector<32x64xbf16>
    %cst_186 = arith.constant dense<0.000000e+00> : vector<32x64xf32>
    %192 = tpu.matmul %189, %191, %cst_186 {dimension_numbers = #tpu.dot_dimension_numbers<[1], [0], [0], [1], [0, 0, 1, 1], [], []>} : vector<32x32xbf16>, vector<32x64xbf16>, vector<32x64xf32> -> vector<32x64xf32>
    %193 = arith.addf %186, %192 : vector<32x64xf32>
    %c0_187 = arith.constant 0 : index
    %c4_188 = arith.constant 4 : index
    %c0_189 = arith.constant 0 : index
    %194 = vector.load %arg35[%c0_187, %c4_188, %c0_189] : memref<2x26x32xf32, #tpu.memory_space<vmem>>, vector<2x16x32xf32>
    %195 = vector.shape_cast %194 : vector<2x16x32xf32> to vector<32x32xf32>
    %196 = arith.truncf %195 : vector<32x32xf32> to vector<32x32xbf16>
    %c4_190 = arith.constant 4 : index
    %c0_191 = arith.constant 0 : index
    %c0_192 = arith.constant 0 : index
    %197 = vector.load %arg8[%c4_190, %c0_191, %c0_192] : memref<11x32x64xbf16, #tpu.memory_space<vmem>>, vector<1x32x64xbf16>
    %198 = vector.shape_cast %197 : vector<1x32x64xbf16> to vector<32x64xbf16>
    %cst_193 = arith.constant dense<0.000000e+00> : vector<32x64xf32>
    %199 = tpu.matmul %196, %198, %cst_193 {dimension_numbers = #tpu.dot_dimension_numbers<[1], [0], [0], [1], [0, 0, 1, 1], [], []>} : vector<32x32xbf16>, vector<32x64xbf16>, vector<32x64xf32> -> vector<32x64xf32>
    %200 = arith.addf %193, %199 : vector<32x64xf32>
    %c0_194 = arith.constant 0 : index
    %c5_195 = arith.constant 5 : index
    %c0_196 = arith.constant 0 : index
    %201 = vector.load %arg35[%c0_194, %c5_195, %c0_196] : memref<2x26x32xf32, #tpu.memory_space<vmem>>, vector<2x16x32xf32>
    %202 = vector.shape_cast %201 : vector<2x16x32xf32> to vector<32x32xf32>
    %203 = arith.truncf %202 : vector<32x32xf32> to vector<32x32xbf16>
    %c5_197 = arith.constant 5 : index
    %c0_198 = arith.constant 0 : index
    %c0_199 = arith.constant 0 : index
    %204 = vector.load %arg8[%c5_197, %c0_198, %c0_199] : memref<11x32x64xbf16, #tpu.memory_space<vmem>>, vector<1x32x64xbf16>
    %205 = vector.shape_cast %204 : vector<1x32x64xbf16> to vector<32x64xbf16>
    %cst_200 = arith.constant dense<0.000000e+00> : vector<32x64xf32>
    %206 = tpu.matmul %203, %205, %cst_200 {dimension_numbers = #tpu.dot_dimension_numbers<[1], [0], [0], [1], [0, 0, 1, 1], [], []>} : vector<32x32xbf16>, vector<32x64xbf16>, vector<32x64xf32> -> vector<32x64xf32>
    %207 = arith.addf %200, %206 : vector<32x64xf32>
    %c0_201 = arith.constant 0 : index
    %c6_202 = arith.constant 6 : index
    %c0_203 = arith.constant 0 : index
    %208 = vector.load %arg35[%c0_201, %c6_202, %c0_203] : memref<2x26x32xf32, #tpu.memory_space<vmem>>, vector<2x16x32xf32>
    %209 = vector.shape_cast %208 : vector<2x16x32xf32> to vector<32x32xf32>
    %210 = arith.truncf %209 : vector<32x32xf32> to vector<32x32xbf16>
    %c6_204 = arith.constant 6 : index
    %c0_205 = arith.constant 0 : index
    %c0_206 = arith.constant 0 : index
    %211 = vector.load %arg8[%c6_204, %c0_205, %c0_206] : memref<11x32x64xbf16, #tpu.memory_space<vmem>>, vector<1x32x64xbf16>
    %212 = vector.shape_cast %211 : vector<1x32x64xbf16> to vector<32x64xbf16>
    %cst_207 = arith.constant dense<0.000000e+00> : vector<32x64xf32>
    %213 = tpu.matmul %210, %212, %cst_207 {dimension_numbers = #tpu.dot_dimension_numbers<[1], [0], [0], [1], [0, 0, 1, 1], [], []>} : vector<32x32xbf16>, vector<32x64xbf16>, vector<32x64xf32> -> vector<32x64xf32>
    %214 = arith.addf %207, %213 : vector<32x64xf32>
    %c0_208 = arith.constant 0 : index
    %c7_209 = arith.constant 7 : index
    %c0_210 = arith.constant 0 : index
    %215 = vector.load %arg35[%c0_208, %c7_209, %c0_210] : memref<2x26x32xf32, #tpu.memory_space<vmem>>, vector<2x16x32xf32>
    %216 = vector.shape_cast %215 : vector<2x16x32xf32> to vector<32x32xf32>
    %217 = arith.truncf %216 : vector<32x32xf32> to vector<32x32xbf16>
    %c7_211 = arith.constant 7 : index
    %c0_212 = arith.constant 0 : index
    %c0_213 = arith.constant 0 : index
    %218 = vector.load %arg8[%c7_211, %c0_212, %c0_213] : memref<11x32x64xbf16, #tpu.memory_space<vmem>>, vector<1x32x64xbf16>
    %219 = vector.shape_cast %218 : vector<1x32x64xbf16> to vector<32x64xbf16>
    %cst_214 = arith.constant dense<0.000000e+00> : vector<32x64xf32>
    %220 = tpu.matmul %217, %219, %cst_214 {dimension_numbers = #tpu.dot_dimension_numbers<[1], [0], [0], [1], [0, 0, 1, 1], [], []>} : vector<32x32xbf16>, vector<32x64xbf16>, vector<32x64xf32> -> vector<32x64xf32>
    %221 = arith.addf %214, %220 : vector<32x64xf32>
    %c0_215 = arith.constant 0 : index
    %c8_216 = arith.constant 8 : index
    %c0_217 = arith.constant 0 : index
    %222 = vector.load %arg35[%c0_215, %c8_216, %c0_217] : memref<2x26x32xf32, #tpu.memory_space<vmem>>, vector<2x16x32xf32>
    %223 = vector.shape_cast %222 : vector<2x16x32xf32> to vector<32x32xf32>
    %224 = arith.truncf %223 : vector<32x32xf32> to vector<32x32xbf16>
    %c8_218 = arith.constant 8 : index
    %c0_219 = arith.constant 0 : index
    %c0_220 = arith.constant 0 : index
    %225 = vector.load %arg8[%c8_218, %c0_219, %c0_220] : memref<11x32x64xbf16, #tpu.memory_space<vmem>>, vector<1x32x64xbf16>
    %226 = vector.shape_cast %225 : vector<1x32x64xbf16> to vector<32x64xbf16>
    %cst_221 = arith.constant dense<0.000000e+00> : vector<32x64xf32>
    %227 = tpu.matmul %224, %226, %cst_221 {dimension_numbers = #tpu.dot_dimension_numbers<[1], [0], [0], [1], [0, 0, 1, 1], [], []>} : vector<32x32xbf16>, vector<32x64xbf16>, vector<32x64xf32> -> vector<32x64xf32>
    %228 = arith.addf %221, %227 : vector<32x64xf32>
    %c0_222 = arith.constant 0 : index
    %c9_223 = arith.constant 9 : index
    %c0_224 = arith.constant 0 : index
    %229 = vector.load %arg35[%c0_222, %c9_223, %c0_224] : memref<2x26x32xf32, #tpu.memory_space<vmem>>, vector<2x16x32xf32>
    %230 = vector.shape_cast %229 : vector<2x16x32xf32> to vector<32x32xf32>
    %231 = arith.truncf %230 : vector<32x32xf32> to vector<32x32xbf16>
    %c9_225 = arith.constant 9 : index
    %c0_226 = arith.constant 0 : index
    %c0_227 = arith.constant 0 : index
    %232 = vector.load %arg8[%c9_225, %c0_226, %c0_227] : memref<11x32x64xbf16, #tpu.memory_space<vmem>>, vector<1x32x64xbf16>
    %233 = vector.shape_cast %232 : vector<1x32x64xbf16> to vector<32x64xbf16>
    %cst_228 = arith.constant dense<0.000000e+00> : vector<32x64xf32>
    %234 = tpu.matmul %231, %233, %cst_228 {dimension_numbers = #tpu.dot_dimension_numbers<[1], [0], [0], [1], [0, 0, 1, 1], [], []>} : vector<32x32xbf16>, vector<32x64xbf16>, vector<32x64xf32> -> vector<32x64xf32>
    %235 = arith.addf %228, %234 : vector<32x64xf32>
    %c0_229 = arith.constant 0 : index
    %c10_230 = arith.constant 10 : index
    %c0_231 = arith.constant 0 : index
    %236 = vector.load %arg35[%c0_229, %c10_230, %c0_231] : memref<2x26x32xf32, #tpu.memory_space<vmem>>, vector<2x16x32xf32>
    %237 = vector.shape_cast %236 : vector<2x16x32xf32> to vector<32x32xf32>
    %238 = arith.truncf %237 : vector<32x32xf32> to vector<32x32xbf16>
    %c10_232 = arith.constant 10 : index
    %c0_233 = arith.constant 0 : index
    %c0_234 = arith.constant 0 : index
    %239 = vector.load %arg8[%c10_232, %c0_233, %c0_234] : memref<11x32x64xbf16, #tpu.memory_space<vmem>>, vector<1x32x64xbf16>
    %240 = vector.shape_cast %239 : vector<1x32x64xbf16> to vector<32x64xbf16>
    %cst_235 = arith.constant dense<0.000000e+00> : vector<32x64xf32>
    %241 = tpu.matmul %238, %240, %cst_235 {dimension_numbers = #tpu.dot_dimension_numbers<[1], [0], [0], [1], [0, 0, 1, 1], [], []>} : vector<32x32xbf16>, vector<32x64xbf16>, vector<32x64xf32> -> vector<32x64xf32>
    %242 = arith.addf %235, %241 : vector<32x64xf32>
    %c0_236 = arith.constant 0 : index
    %c0_237 = arith.constant 0 : index
    %243 = vector.load %arg9[%c0_236, %c0_237] : memref<1x64xf32, #tpu.memory_space<vmem>>, vector<1x64xf32>
    %244 = vector.broadcast %243 : vector<1x64xf32> to vector<32x64xf32>
    %245 = arith.addf %242, %244 : vector<32x64xf32>
    %cst_238 = arith.constant 0.000000e+00 : f32
    %246 = vector.broadcast %cst_238 : f32 to vector<32x64xf32>
    %247 = arith.cmpf oge, %245, %246 : vector<32x64xf32>
    %cst_239 = arith.constant 0.00999999977 : f32
    %248 = vector.broadcast %cst_239 : f32 to vector<32x64xf32>
    %249 = arith.mulf %248, %245 : vector<32x64xf32>
    %250 = arith.select %247, %245, %249 : vector<32x64xi1>, vector<32x64xf32>
    %c0_240 = arith.constant 0 : index
    %c0_241 = arith.constant 0 : index
    %251 = vector.load %arg32[%c0_240, %c0_241] : memref<32x64xf32, #tpu.memory_space<vmem>>, vector<32x64xf32>
    tpu.vector_store %arg32[%c0_240, %c0_241], %250 {strides = array<i32>} : memref<32x64xf32, #tpu.memory_space<vmem>>, vector<32x64xf32>,
    %c0_242 = arith.constant 0 : index
    %c0_243 = arith.constant 0 : index
    %252 = tpu.strided_load %arg32[%c0_242, %c0_243] {strides = array<i32: 2, 1>} : memref<32x64xf32, #tpu.memory_space<vmem>>, vector<16x64xf32>
    %c1_244 = arith.constant 1 : index
    %c0_245 = arith.constant 0 : index
    %253 = tpu.strided_load %arg32[%c1_244, %c0_245] {strides = array<i32: 2, 1>} : memref<32x64xf32, #tpu.memory_space<vmem>>, vector<16x64xf32>
    %254 = arith.maximumf %252, %253 : vector<16x64xf32>
    %cst_246 = arith.constant 0.000000e+00 : f32
    %255 = vector.broadcast %cst_246 : f32 to vector<2x10x64xf32>
    %c0_247 = arith.constant 0 : index
    %c0_248 = arith.constant 0 : index
    %c0_249 = arith.constant 0 : index
    %256 = vector.load %arg36[%c0_247, %c0_248, %c0_249] : memref<2x10x64xf32, #tpu.memory_space<vmem>>, vector<2x10x64xf32>
    tpu.vector_store %arg36[%c0_247, %c0_248, %c0_249], %255 {strides = array<i32>} : memref<2x10x64xf32, #tpu.memory_space<vmem>>, vector<2x10x64xf32>,
    %257 = vector.shape_cast %254 : vector<16x64xf32> to vector<2x8x64xf32>
    %c0_250 = arith.constant 0 : index
    %c1_251 = arith.constant 1 : index
    %c0_252 = arith.constant 0 : index
    %258 = vector.load %arg36[%c0_250, %c1_251, %c0_252] : memref<2x10x64xf32, #tpu.memory_space<vmem>>, vector<2x8x64xf32>
    tpu.vector_store %arg36[%c0_250, %c1_251, %c0_252], %257 {strides = array<i32>} : memref<2x10x64xf32, #tpu.memory_space<vmem>>, vector<2x8x64xf32>,
    %cst_253 = arith.constant 0.000000e+00 : f32
    %259 = vector.broadcast %cst_253 : f32 to vector<16x128xf32>
    %c0_254 = arith.constant 0 : index
    %c0_255 = arith.constant 0 : index
    %c0_256 = arith.constant 0 : index
    %260 = vector.load %arg36[%c0_254, %c0_255, %c0_256] : memref<2x10x64xf32, #tpu.memory_space<vmem>>, vector<2x8x64xf32>
    %261 = vector.shape_cast %260 : vector<2x8x64xf32> to vector<16x64xf32>
    %262 = arith.truncf %261 : vector<16x64xf32> to vector<16x64xbf16>
    %c0_257 = arith.constant 0 : index
    %c0_258 = arith.constant 0 : index
    %c0_259 = arith.constant 0 : index
    %263 = vector.load %arg10[%c0_257, %c0_258, %c0_259] : memref<3x64x128xbf16, #tpu.memory_space<vmem>>, vector<1x64x128xbf16>
    %264 = vector.shape_cast %263 : vector<1x64x128xbf16> to vector<64x128xbf16>
    %cst_260 = arith.constant dense<0.000000e+00> : vector<16x128xf32>
    %265 = tpu.matmul %262, %264, %cst_260 {dimension_numbers = #tpu.dot_dimension_numbers<[1], [0], [0], [1], [0, 0, 1, 1], [], []>} : vector<16x64xbf16>, vector<64x128xbf16>, vector<16x128xf32> -> vector<16x128xf32>
    %266 = arith.addf %259, %265 : vector<16x128xf32>
    %c0_261 = arith.constant 0 : index
    %c1_262 = arith.constant 1 : index
    %c0_263 = arith.constant 0 : index
    %267 = vector.load %arg36[%c0_261, %c1_262, %c0_263] : memref<2x10x64xf32, #tpu.memory_space<vmem>>, vector<2x8x64xf32>
    %268 = vector.shape_cast %267 : vector<2x8x64xf32> to vector<16x64xf32>
    %269 = arith.truncf %268 : vector<16x64xf32> to vector<16x64xbf16>
    %c1_264 = arith.constant 1 : index
    %c0_265 = arith.constant 0 : index
    %c0_266 = arith.constant 0 : index
    %270 = vector.load %arg10[%c1_264, %c0_265, %c0_266] : memref<3x64x128xbf16, #tpu.memory_space<vmem>>, vector<1x64x128xbf16>
    %271 = vector.shape_cast %270 : vector<1x64x128xbf16> to vector<64x128xbf16>
    %cst_267 = arith.constant dense<0.000000e+00> : vector<16x128xf32>
    %272 = tpu.matmul %269, %271, %cst_267 {dimension_numbers = #tpu.dot_dimension_numbers<[1], [0], [0], [1], [0, 0, 1, 1], [], []>} : vector<16x64xbf16>, vector<64x128xbf16>, vector<16x128xf32> -> vector<16x128xf32>
    %273 = arith.addf %266, %272 : vector<16x128xf32>
    %c0_268 = arith.constant 0 : index
    %c2_269 = arith.constant 2 : index
    %c0_270 = arith.constant 0 : index
    %274 = vector.load %arg36[%c0_268, %c2_269, %c0_270] : memref<2x10x64xf32, #tpu.memory_space<vmem>>, vector<2x8x64xf32>
    %275 = vector.shape_cast %274 : vector<2x8x64xf32> to vector<16x64xf32>
    %276 = arith.truncf %275 : vector<16x64xf32> to vector<16x64xbf16>
    %c2_271 = arith.constant 2 : index
    %c0_272 = arith.constant 0 : index
    %c0_273 = arith.constant 0 : index
    %277 = vector.load %arg10[%c2_271, %c0_272, %c0_273] : memref<3x64x128xbf16, #tpu.memory_space<vmem>>, vector<1x64x128xbf16>
    %278 = vector.shape_cast %277 : vector<1x64x128xbf16> to vector<64x128xbf16>
    %cst_274 = arith.constant dense<0.000000e+00> : vector<16x128xf32>
    %279 = tpu.matmul %276, %278, %cst_274 {dimension_numbers = #tpu.dot_dimension_numbers<[1], [0], [0], [1], [0, 0, 1, 1], [], []>} : vector<16x64xbf16>, vector<64x128xbf16>, vector<16x128xf32> -> vector<16x128xf32>
    %280 = arith.addf %273, %279 : vector<16x128xf32>
    %c0_275 = arith.constant 0 : index
    %c0_276 = arith.constant 0 : index
    %281 = vector.load %arg11[%c0_275, %c0_276] : memref<1x128xf32, #tpu.memory_space<vmem>>, vector<1x128xf32>
    %282 = vector.broadcast %281 : vector<1x128xf32> to vector<16x128xf32>
    %283 = arith.addf %280, %282 : vector<16x128xf32>
    %cst_277 = arith.constant 0.000000e+00 : f32
    %284 = vector.broadcast %cst_277 : f32 to vector<16x128xf32>
    %285 = arith.maximumf %283, %284 : vector<16x128xf32>
    %cst_278 = arith.constant 0.000000e+00 : f32
    %286 = vector.broadcast %cst_278 : f32 to vector<2x10x128xf32>
    %c0_279 = arith.constant 0 : index
    %c0_280 = arith.constant 0 : index
    %c0_281 = arith.constant 0 : index
    %287 = vector.load %arg37[%c0_279, %c0_280, %c0_281] : memref<2x10x128xf32, #tpu.memory_space<vmem>>, vector<2x10x128xf32>
    tpu.vector_store %arg37[%c0_279, %c0_280, %c0_281], %286 {strides = array<i32>} : memref<2x10x128xf32, #tpu.memory_space<vmem>>, vector<2x10x128xf32>,
    %288 = vector.shape_cast %285 : vector<16x128xf32> to vector<2x8x128xf32>
    %c0_282 = arith.constant 0 : index
    %c1_283 = arith.constant 1 : index
    %c0_284 = arith.constant 0 : index
    %289 = vector.load %arg37[%c0_282, %c1_283, %c0_284] : memref<2x10x128xf32, #tpu.memory_space<vmem>>, vector<2x8x128xf32>
    tpu.vector_store %arg37[%c0_282, %c1_283, %c0_284], %288 {strides = array<i32>} : memref<2x10x128xf32, #tpu.memory_space<vmem>>, vector<2x8x128xf32>,
    %290 = arith.truncf %254 : vector<16x64xf32> to vector<16x64xbf16>
    %c0_285 = arith.constant 0 : index
    %c0_286 = arith.constant 0 : index
    %291 = vector.load %arg14[%c0_285, %c0_286] : memref<64x128xbf16, #tpu.memory_space<vmem>>, vector<64x128xbf16>
    %cst_287 = arith.constant dense<0.000000e+00> : vector<16x128xf32>
    %292 = tpu.matmul %290, %291, %cst_287 {dimension_numbers = #tpu.dot_dimension_numbers<[1], [0], [0], [1], [0, 0, 1, 1], [], []>} : vector<16x64xbf16>, vector<64x128xbf16>, vector<16x128xf32> -> vector<16x128xf32>
    %c0_288 = arith.constant 0 : index
    %c0_289 = arith.constant 0 : index
    %293 = vector.load %arg15[%c0_288, %c0_289] : memref<1x128xf32, #tpu.memory_space<vmem>>, vector<1x128xf32>
    %294 = vector.broadcast %293 : vector<1x128xf32> to vector<16x128xf32>
    %295 = arith.addf %292, %294 : vector<16x128xf32>
    %cst_290 = arith.constant 0.000000e+00 : f32
    %296 = vector.broadcast %cst_290 : f32 to vector<16x128xf32>
    %c0_291 = arith.constant 0 : index
    %c0_292 = arith.constant 0 : index
    %c0_293 = arith.constant 0 : index
    %297 = vector.load %arg37[%c0_291, %c0_292, %c0_293] : memref<2x10x128xf32, #tpu.memory_space<vmem>>, vector<2x8x128xf32>
    %298 = vector.shape_cast %297 : vector<2x8x128xf32> to vector<16x128xf32>
    %299 = arith.truncf %298 : vector<16x128xf32> to vector<16x128xbf16>
    %c0_294 = arith.constant 0 : index
    %c0_295 = arith.constant 0 : index
    %c0_296 = arith.constant 0 : index
    %300 = vector.load %arg12[%c0_294, %c0_295, %c0_296] : memref<3x128x128xbf16, #tpu.memory_space<vmem>>, vector<1x128x128xbf16>
    %301 = vector.shape_cast %300 : vector<1x128x128xbf16> to vector<128x128xbf16>
    %cst_297 = arith.constant dense<0.000000e+00> : vector<16x128xf32>
    %302 = tpu.matmul %299, %301, %cst_297 {dimension_numbers = #tpu.dot_dimension_numbers<[1], [0], [0], [1], [0, 0, 1, 1], [], []>} : vector<16x128xbf16>, vector<128x128xbf16>, vector<16x128xf32> -> vector<16x128xf32>
    %303 = arith.addf %296, %302 : vector<16x128xf32>
    %c0_298 = arith.constant 0 : index
    %c1_299 = arith.constant 1 : index
    %c0_300 = arith.constant 0 : index
    %304 = vector.load %arg37[%c0_298, %c1_299, %c0_300] : memref<2x10x128xf32, #tpu.memory_space<vmem>>, vector<2x8x128xf32>
    %305 = vector.shape_cast %304 : vector<2x8x128xf32> to vector<16x128xf32>
    %306 = arith.truncf %305 : vector<16x128xf32> to vector<16x128xbf16>
    %c1_301 = arith.constant 1 : index
    %c0_302 = arith.constant 0 : index
    %c0_303 = arith.constant 0 : index
    %307 = vector.load %arg12[%c1_301, %c0_302, %c0_303] : memref<3x128x128xbf16, #tpu.memory_space<vmem>>, vector<1x128x128xbf16>
    %308 = vector.shape_cast %307 : vector<1x128x128xbf16> to vector<128x128xbf16>
    %cst_304 = arith.constant dense<0.000000e+00> : vector<16x128xf32>
    %309 = tpu.matmul %306, %308, %cst_304 {dimension_numbers = #tpu.dot_dimension_numbers<[1], [0], [0], [1], [0, 0, 1, 1], [], []>} : vector<16x128xbf16>, vector<128x128xbf16>, vector<16x128xf32> -> vector<16x128xf32>
    %310 = arith.addf %303, %309 : vector<16x128xf32>
    %c0_305 = arith.constant 0 : index
    %c2_306 = arith.constant 2 : index
    %c0_307 = arith.constant 0 : index
    %311 = vector.load %arg37[%c0_305, %c2_306, %c0_307] : memref<2x10x128xf32, #tpu.memory_space<vmem>>, vector<2x8x128xf32>
    %312 = vector.shape_cast %311 : vector<2x8x128xf32> to vector<16x128xf32>
    %313 = arith.truncf %312 : vector<16x128xf32> to vector<16x128xbf16>
    %c2_308 = arith.constant 2 : index
    %c0_309 = arith.constant 0 : index
    %c0_310 = arith.constant 0 : index
    %314 = vector.load %arg12[%c2_308, %c0_309, %c0_310] : memref<3x128x128xbf16, #tpu.memory_space<vmem>>, vector<1x128x128xbf16>
    %315 = vector.shape_cast %314 : vector<1x128x128xbf16> to vector<128x128xbf16>
    %cst_311 = arith.constant dense<0.000000e+00> : vector<16x128xf32>
    %316 = tpu.matmul %313, %315, %cst_311 {dimension_numbers = #tpu.dot_dimension_numbers<[1], [0], [0], [1], [0, 0, 1, 1], [], []>} : vector<16x128xbf16>, vector<128x128xbf16>, vector<16x128xf32> -> vector<16x128xf32>
    %317 = arith.addf %310, %316 : vector<16x128xf32>
    %c0_312 = arith.constant 0 : index
    %c0_313 = arith.constant 0 : index
    %318 = vector.load %arg13[%c0_312, %c0_313] : memref<1x128xf32, #tpu.memory_space<vmem>>, vector<1x128xf32>
    %319 = vector.broadcast %318 : vector<1x128xf32> to vector<16x128xf32>
    %320 = arith.addf %317, %319 : vector<16x128xf32>
    %321 = arith.addf %320, %295 : vector<16x128xf32>
    %cst_314 = arith.constant 0.000000e+00 : f32
    %322 = vector.broadcast %cst_314 : f32 to vector<16x128xf32>
    %323 = arith.maximumf %321, %322 : vector<16x128xf32>
    %cst_315 = arith.constant 0.000000e+00 : f32
    %324 = vector.broadcast %cst_315 : f32 to vector<2x10x128xf32>
    %c0_316 = arith.constant 0 : index
    %c0_317 = arith.constant 0 : index
    %c0_318 = arith.constant 0 : index
    %325 = vector.load %arg38[%c0_316, %c0_317, %c0_318] : memref<2x10x128xf32, #tpu.memory_space<vmem>>, vector<2x10x128xf32>
    tpu.vector_store %arg38[%c0_316, %c0_317, %c0_318], %324 {strides = array<i32>} : memref<2x10x128xf32, #tpu.memory_space<vmem>>, vector<2x10x128xf32>,
    %326 = vector.shape_cast %323 : vector<16x128xf32> to vector<2x8x128xf32>
    %c0_319 = arith.constant 0 : index
    %c1_320 = arith.constant 1 : index
    %c0_321 = arith.constant 0 : index
    %327 = vector.load %arg38[%c0_319, %c1_320, %c0_321] : memref<2x10x128xf32, #tpu.memory_space<vmem>>, vector<2x8x128xf32>
    tpu.vector_store %arg38[%c0_319, %c1_320, %c0_321], %326 {strides = array<i32>} : memref<2x10x128xf32, #tpu.memory_space<vmem>>, vector<2x8x128xf32>,
    %cst_322 = arith.constant 0.000000e+00 : f32
    %328 = vector.broadcast %cst_322 : f32 to vector<16x256xf32>
    %c0_323 = arith.constant 0 : index
    %c0_324 = arith.constant 0 : index
    %c0_325 = arith.constant 0 : index
    %329 = vector.load %arg38[%c0_323, %c0_324, %c0_325] : memref<2x10x128xf32, #tpu.memory_space<vmem>>, vector<2x8x128xf32>
    %330 = vector.shape_cast %329 : vector<2x8x128xf32> to vector<16x128xf32>
    %331 = arith.truncf %330 : vector<16x128xf32> to vector<16x128xbf16>
    %c0_326 = arith.constant 0 : index
    %c0_327 = arith.constant 0 : index
    %c0_328 = arith.constant 0 : index
    %332 = vector.load %arg16[%c0_326, %c0_327, %c0_328] : memref<3x128x256xbf16, #tpu.memory_space<vmem>>, vector<1x128x256xbf16>
    %333 = vector.shape_cast %332 : vector<1x128x256xbf16> to vector<128x256xbf16>
    %cst_329 = arith.constant dense<0.000000e+00> : vector<16x256xf32>
    %334 = tpu.matmul %331, %333, %cst_329 {dimension_numbers = #tpu.dot_dimension_numbers<[1], [0], [0], [1], [0, 0, 1, 1], [], []>} : vector<16x128xbf16>, vector<128x256xbf16>, vector<16x256xf32> -> vector<16x256xf32>
    %335 = arith.addf %328, %334 : vector<16x256xf32>
    %c0_330 = arith.constant 0 : index
    %c1_331 = arith.constant 1 : index
    %c0_332 = arith.constant 0 : index
    %336 = vector.load %arg38[%c0_330, %c1_331, %c0_332] : memref<2x10x128xf32, #tpu.memory_space<vmem>>, vector<2x8x128xf32>
    %337 = vector.shape_cast %336 : vector<2x8x128xf32> to vector<16x128xf32>
    %338 = arith.truncf %337 : vector<16x128xf32> to vector<16x128xbf16>
    %c1_333 = arith.constant 1 : index
    %c0_334 = arith.constant 0 : index
    %c0_335 = arith.constant 0 : index
    %339 = vector.load %arg16[%c1_333, %c0_334, %c0_335] : memref<3x128x256xbf16, #tpu.memory_space<vmem>>, vector<1x128x256xbf16>
    %340 = vector.shape_cast %339 : vector<1x128x256xbf16> to vector<128x256xbf16>
    %cst_336 = arith.constant dense<0.000000e+00> : vector<16x256xf32>
    %341 = tpu.matmul %338, %340, %cst_336 {dimension_numbers = #tpu.dot_dimension_numbers<[1], [0], [0], [1], [0, 0, 1, 1], [], []>} : vector<16x128xbf16>, vector<128x256xbf16>, vector<16x256xf32> -> vector<16x256xf32>
    %342 = arith.addf %335, %341 : vector<16x256xf32>
    %c0_337 = arith.constant 0 : index
    %c2_338 = arith.constant 2 : index
    %c0_339 = arith.constant 0 : index
    %343 = vector.load %arg38[%c0_337, %c2_338, %c0_339] : memref<2x10x128xf32, #tpu.memory_space<vmem>>, vector<2x8x128xf32>
    %344 = vector.shape_cast %343 : vector<2x8x128xf32> to vector<16x128xf32>
    %345 = arith.truncf %344 : vector<16x128xf32> to vector<16x128xbf16>
    %c2_340 = arith.constant 2 : index
    %c0_341 = arith.constant 0 : index
    %c0_342 = arith.constant 0 : index
    %346 = vector.load %arg16[%c2_340, %c0_341, %c0_342] : memref<3x128x256xbf16, #tpu.memory_space<vmem>>, vector<1x128x256xbf16>
    %347 = vector.shape_cast %346 : vector<1x128x256xbf16> to vector<128x256xbf16>
    %cst_343 = arith.constant dense<0.000000e+00> : vector<16x256xf32>
    %348 = tpu.matmul %345, %347, %cst_343 {dimension_numbers = #tpu.dot_dimension_numbers<[1], [0], [0], [1], [0, 0, 1, 1], [], []>} : vector<16x128xbf16>, vector<128x256xbf16>, vector<16x256xf32> -> vector<16x256xf32>
    %349 = arith.addf %342, %348 : vector<16x256xf32>
    %c0_344 = arith.constant 0 : index
    %c0_345 = arith.constant 0 : index
    %350 = vector.load %arg17[%c0_344, %c0_345] : memref<1x256xf32, #tpu.memory_space<vmem>>, vector<1x256xf32>
    %351 = vector.broadcast %350 : vector<1x256xf32> to vector<16x256xf32>
    %352 = arith.addf %349, %351 : vector<16x256xf32>
    %cst_346 = arith.constant 0.000000e+00 : f32
    %353 = vector.broadcast %cst_346 : f32 to vector<16x256xf32>
    %354 = arith.maximumf %352, %353 : vector<16x256xf32>
    %cst_347 = arith.constant 0.000000e+00 : f32
    %355 = vector.broadcast %cst_347 : f32 to vector<2x10x256xf32>
    %c0_348 = arith.constant 0 : index
    %c0_349 = arith.constant 0 : index
    %c0_350 = arith.constant 0 : index
    %356 = vector.load %arg39[%c0_348, %c0_349, %c0_350] : memref<2x10x256xf32, #tpu.memory_space<vmem>>, vector<2x10x256xf32>
    tpu.vector_store %arg39[%c0_348, %c0_349, %c0_350], %355 {strides = array<i32>} : memref<2x10x256xf32, #tpu.memory_space<vmem>>, vector<2x10x256xf32>,
    %357 = vector.shape_cast %354 : vector<16x256xf32> to vector<2x8x256xf32>
    %c0_351 = arith.constant 0 : index
    %c1_352 = arith.constant 1 : index
    %c0_353 = arith.constant 0 : index
    %358 = vector.load %arg39[%c0_351, %c1_352, %c0_353] : memref<2x10x256xf32, #tpu.memory_space<vmem>>, vector<2x8x256xf32>
    tpu.vector_store %arg39[%c0_351, %c1_352, %c0_353], %357 {strides = array<i32>} : memref<2x10x256xf32, #tpu.memory_space<vmem>>, vector<2x8x256xf32>,
    %359 = arith.truncf %323 : vector<16x128xf32> to vector<16x128xbf16>
    %c0_354 = arith.constant 0 : index
    %c0_355 = arith.constant 0 : index
    %360 = vector.load %arg20[%c0_354, %c0_355] : memref<128x256xbf16, #tpu.memory_space<vmem>>, vector<128x256xbf16>
    %cst_356 = arith.constant dense<0.000000e+00> : vector<16x256xf32>
    %361 = tpu.matmul %359, %360, %cst_356 {dimension_numbers = #tpu.dot_dimension_numbers<[1], [0], [0], [1], [0, 0, 1, 1], [], []>} : vector<16x128xbf16>, vector<128x256xbf16>, vector<16x256xf32> -> vector<16x256xf32>
    %c0_357 = arith.constant 0 : index
    %c0_358 = arith.constant 0 : index
    %362 = vector.load %arg21[%c0_357, %c0_358] : memref<1x256xf32, #tpu.memory_space<vmem>>, vector<1x256xf32>
    %363 = vector.broadcast %362 : vector<1x256xf32> to vector<16x256xf32>
    %364 = arith.addf %361, %363 : vector<16x256xf32>
    %cst_359 = arith.constant 0.000000e+00 : f32
    %365 = vector.broadcast %cst_359 : f32 to vector<16x256xf32>
    %c0_360 = arith.constant 0 : index
    %c0_361 = arith.constant 0 : index
    %c0_362 = arith.constant 0 : index
    %366 = vector.load %arg39[%c0_360, %c0_361, %c0_362] : memref<2x10x256xf32, #tpu.memory_space<vmem>>, vector<2x8x256xf32>
    %367 = vector.shape_cast %366 : vector<2x8x256xf32> to vector<16x256xf32>
    %368 = arith.truncf %367 : vector<16x256xf32> to vector<16x256xbf16>
    %c0_363 = arith.constant 0 : index
    %c0_364 = arith.constant 0 : index
    %c0_365 = arith.constant 0 : index
    %369 = vector.load %arg18[%c0_363, %c0_364, %c0_365] : memref<3x256x256xbf16, #tpu.memory_space<vmem>>, vector<1x256x256xbf16>
    %370 = vector.shape_cast %369 : vector<1x256x256xbf16> to vector<256x256xbf16>
    %cst_366 = arith.constant dense<0.000000e+00> : vector<16x256xf32>
    %371 = tpu.matmul %368, %370, %cst_366 {dimension_numbers = #tpu.dot_dimension_numbers<[1], [0], [0], [1], [0, 0, 1, 1], [], []>} : vector<16x256xbf16>, vector<256x256xbf16>, vector<16x256xf32> -> vector<16x256xf32>
    %372 = arith.addf %365, %371 : vector<16x256xf32>
    %c0_367 = arith.constant 0 : index
    %c1_368 = arith.constant 1 : index
    %c0_369 = arith.constant 0 : index
    %373 = vector.load %arg39[%c0_367, %c1_368, %c0_369] : memref<2x10x256xf32, #tpu.memory_space<vmem>>, vector<2x8x256xf32>
    %374 = vector.shape_cast %373 : vector<2x8x256xf32> to vector<16x256xf32>
    %375 = arith.truncf %374 : vector<16x256xf32> to vector<16x256xbf16>
    %c1_370 = arith.constant 1 : index
    %c0_371 = arith.constant 0 : index
    %c0_372 = arith.constant 0 : index
    %376 = vector.load %arg18[%c1_370, %c0_371, %c0_372] : memref<3x256x256xbf16, #tpu.memory_space<vmem>>, vector<1x256x256xbf16>
    %377 = vector.shape_cast %376 : vector<1x256x256xbf16> to vector<256x256xbf16>
    %cst_373 = arith.constant dense<0.000000e+00> : vector<16x256xf32>
    %378 = tpu.matmul %375, %377, %cst_373 {dimension_numbers = #tpu.dot_dimension_numbers<[1], [0], [0], [1], [0, 0, 1, 1], [], []>} : vector<16x256xbf16>, vector<256x256xbf16>, vector<16x256xf32> -> vector<16x256xf32>
    %379 = arith.addf %372, %378 : vector<16x256xf32>
    %c0_374 = arith.constant 0 : index
    %c2_375 = arith.constant 2 : index
    %c0_376 = arith.constant 0 : index
    %380 = vector.load %arg39[%c0_374, %c2_375, %c0_376] : memref<2x10x256xf32, #tpu.memory_space<vmem>>, vector<2x8x256xf32>
    %381 = vector.shape_cast %380 : vector<2x8x256xf32> to vector<16x256xf32>
    %382 = arith.truncf %381 : vector<16x256xf32> to vector<16x256xbf16>
    %c2_377 = arith.constant 2 : index
    %c0_378 = arith.constant 0 : index
    %c0_379 = arith.constant 0 : index
    %383 = vector.load %arg18[%c2_377, %c0_378, %c0_379] : memref<3x256x256xbf16, #tpu.memory_space<vmem>>, vector<1x256x256xbf16>
    %384 = vector.shape_cast %383 : vector<1x256x256xbf16> to vector<256x256xbf16>
    %cst_380 = arith.constant dense<0.000000e+00> : vector<16x256xf32>
    %385 = tpu.matmul %382, %384, %cst_380 {dimension_numbers = #tpu.dot_dimension_numbers<[1], [0], [0], [1], [0, 0, 1, 1], [], []>} : vector<16x256xbf16>, vector<256x256xbf16>, vector<16x256xf32> -> vector<16x256xf32>
    %386 = arith.addf %379, %385 : vector<16x256xf32>
    %c0_381 = arith.constant 0 : index
    %c0_382 = arith.constant 0 : index
    %387 = vector.load %arg19[%c0_381, %c0_382] : memref<1x256xf32, #tpu.memory_space<vmem>>, vector<1x256xf32>
    %388 = vector.broadcast %387 : vector<1x256xf32> to vector<16x256xf32>
    %389 = arith.addf %386, %388 : vector<16x256xf32>
    %390 = arith.addf %389, %364 : vector<16x256xf32>
    %cst_383 = arith.constant 0.000000e+00 : f32
    %391 = vector.broadcast %cst_383 : f32 to vector<16x256xf32>
    %392 = arith.maximumf %390, %391 : vector<16x256xf32>
    %393 = tpu.iota {dimensions = array<i32: 0>} : vector<2x16xi32>
    %394 = tpu.iota {dimensions = array<i32: 1>} : vector<2x16xi32>
    %c8_i32 = arith.constant 8 : i32
    %395 = vector.broadcast %c8_i32 : i32 to vector<2x16xi32>
    %396 = arith.muli %393, %395 : vector<2x16xi32>
    %397 = arith.subi %394, %396 : vector<2x16xi32>
    %c0_i32 = arith.constant 0 : i32
    %398 = vector.broadcast %c0_i32 : i32 to vector<2x16xi32>
    %399 = arith.cmpi sge, %397, %398 : vector<2x16xi32>
    %c8_i32_384 = arith.constant 8 : i32
    %400 = vector.broadcast %c8_i32_384 : i32 to vector<2x16xi32>
    %401 = arith.cmpi slt, %397, %400 : vector<2x16xi32>
    %402 = arith.andi %399, %401 : vector<2x16xi1>
    %cst_385 = arith.constant 1.250000e-01 : f32
    %cst_386 = arith.constant 0.000000e+00 : f32
    %403 = vector.broadcast %cst_385 : f32 to vector<2x16xf32>
    %404 = vector.broadcast %cst_386 : f32 to vector<2x16xf32>
    %405 = arith.select %402, %403, %404 : vector<2x16xi1>, vector<2x16xf32>
    %cst_387 = arith.constant dense<0.000000e+00> : vector<2x256xf32>
    %406 = tpu.matmul %405, %392, %cst_387 {dimension_numbers = #tpu.dot_dimension_numbers<[1], [0], [0], [1], [0, 0, 1, 1], [], []>} : vector<2x16xf32>, vector<16x256xf32>, vector<2x256xf32> -> vector<2x256xf32>
    %407 = arith.truncf %406 : vector<2x256xf32> to vector<2x256xbf16>
    %c0_388 = arith.constant 0 : index
    %c0_389 = arith.constant 0 : index
    %408 = vector.load %arg22[%c0_388, %c0_389] : memref<256x128xbf16, #tpu.memory_space<vmem>>, vector<256x128xbf16>
    %cst_390 = arith.constant dense<0.000000e+00> : vector<2x128xf32>
    %409 = tpu.matmul %407, %408, %cst_390 {dimension_numbers = #tpu.dot_dimension_numbers<[1], [0], [0], [1], [0, 0, 1, 1], [], []>} : vector<2x256xbf16>, vector<256x128xbf16>, vector<2x128xf32> -> vector<2x128xf32>
    %c0_391 = arith.constant 0 : index
    %c0_392 = arith.constant 0 : index
    %410 = vector.load %arg23[%c0_391, %c0_392] : memref<1x128xf32, #tpu.memory_space<vmem>>, vector<1x128xf32>
    %411 = vector.broadcast %410 : vector<1x128xf32> to vector<2x128xf32>
    %412 = arith.addf %409, %411 : vector<2x128xf32>
    %cst_393 = arith.constant 0.000000e+00 : f32
    %413 = vector.broadcast %cst_393 : f32 to vector<2x128xf32>
    %414 = arith.cmpf oge, %412, %413 : vector<2x128xf32>
    %cst_394 = arith.constant 0.00999999977 : f32
    %415 = vector.broadcast %cst_394 : f32 to vector<2x128xf32>
    %416 = arith.mulf %415, %412 : vector<2x128xf32>
    %417 = arith.select %414, %412, %416 : vector<2x128xi1>, vector<2x128xf32>
    %418 = arith.truncf %417 : vector<2x128xf32> to vector<2x128xbf16>
    %c0_395 = arith.constant 0 : index
    %c0_396 = arith.constant 0 : index
    %419 = vector.load %arg24[%c0_395, %c0_396] : memref<128x64xbf16, #tpu.memory_space<vmem>>, vector<128x64xbf16>
    %cst_397 = arith.constant dense<0.000000e+00> : vector<2x64xf32>
    %420 = tpu.matmul %418, %419, %cst_397 {dimension_numbers = #tpu.dot_dimension_numbers<[1], [0], [0], [1], [0, 0, 1, 1], [], []>} : vector<2x128xbf16>, vector<128x64xbf16>, vector<2x64xf32> -> vector<2x64xf32>
    %c0_398 = arith.constant 0 : index
    %c0_399 = arith.constant 0 : index
    %421 = vector.load %arg25[%c0_398, %c0_399] : memref<1x64xf32, #tpu.memory_space<vmem>>, vector<1x64xf32>
    %422 = vector.broadcast %421 : vector<1x64xf32> to vector<2x64xf32>
    %423 = arith.addf %420, %422 : vector<2x64xf32>
    %cst_400 = arith.constant 0.000000e+00 : f32
    %424 = vector.broadcast %cst_400 : f32 to vector<2x64xf32>
    %425 = arith.cmpf oge, %423, %424 : vector<2x64xf32>
    %cst_401 = arith.constant 0.00999999977 : f32
    %426 = vector.broadcast %cst_401 : f32 to vector<2x64xf32>
    %427 = arith.mulf %426, %423 : vector<2x64xf32>
    %428 = arith.select %425, %423, %427 : vector<2x64xi1>, vector<2x64xf32>
    %429 = arith.truncf %428 : vector<2x64xf32> to vector<2x64xbf16>
    %c0_402 = arith.constant 0 : index
    %c0_403 = arith.constant 0 : index
    %430 = vector.load %arg26[%c0_402, %c0_403] : memref<64x128xbf16, #tpu.memory_space<vmem>>, vector<64x128xbf16>
    %cst_404 = arith.constant dense<0.000000e+00> : vector<2x128xf32>
    %431 = tpu.matmul %429, %430, %cst_404 {dimension_numbers = #tpu.dot_dimension_numbers<[1], [0], [0], [1], [0, 0, 1, 1], [], []>} : vector<2x64xbf16>, vector<64x128xbf16>, vector<2x128xf32> -> vector<2x128xf32>
    %c0_405 = arith.constant 0 : index
    %c0_406 = arith.constant 0 : index
    %432 = vector.load %arg27[%c0_405, %c0_406] : memref<1x128xf32, #tpu.memory_space<vmem>>, vector<1x128xf32>
    %433 = vector.broadcast %432 : vector<1x128xf32> to vector<2x128xf32>
    %434 = arith.addf %431, %433 : vector<2x128xf32>
    %435 = tpu.iota {dimensions = array<i32: 1>} : vector<2x128xi32>
    %c10_i32 = arith.constant 10 : i32
    %436 = vector.broadcast %c10_i32 : i32 to vector<2x128xi32>
    %437 = arith.cmpi slt, %435, %436 : vector<2x128xi32>
    %cst_407 = arith.constant -1.000000e+30 : f32
    %438 = vector.broadcast %cst_407 : f32 to vector<2x128xf32>
    %439 = arith.select %437, %434, %438 : vector<2x128xi1>, vector<2x128xf32>
    %cst_408 = arith.constant dense<0xFF800000> : vector<2xf32>
    %440 = vector.multi_reduction <maximumf>, %439, %cst_408 [1] : vector<2x128xf32> to vector<2xf32>
    %441 = vector.shape_cast %440 : vector<2xf32> to vector<2x1xf32>
    %442 = vector.broadcast %441 : vector<2x1xf32> to vector<2x128xf32>
    %443 = arith.subf %439, %442 : vector<2x128xf32>
    %444 = math.exp %443 : vector<2x128xf32>
    %cst_409 = arith.constant dense<0.000000e+00> : vector<2xf32>
    %445 = vector.multi_reduction <add>, %444, %cst_409 [1] : vector<2x128xf32> to vector<2xf32>
    %446 = vector.shape_cast %445 : vector<2xf32> to vector<2x1xf32>
    %cst_410 = arith.constant 1.000000e+00 : f32
    %447 = vector.broadcast %cst_410 : f32 to vector<2x1xf32>
    %448 = arith.divf %447, %446 : vector<2x1xf32>
    %449 = vector.broadcast %448 : vector<2x1xf32> to vector<2x128xf32>
    %450 = arith.mulf %444, %449 : vector<2x128xf32>
    %c0_411 = arith.constant 0 : index
    %c0_412 = arith.constant 0 : index
    %451 = vector.load %arg28[%c0_411, %c0_412] : memref<2x128xf32, #tpu.memory_space<vmem>>, vector<2x128xf32>
    tpu.vector_store %arg28[%c0_411, %c0_412], %450 {strides = array<i32>} : memref<2x128xf32, #tpu.memory_space<vmem>>, vector<2x128xf32>,
    return
  }
  func.func @transform_0(%arg0: i32) -> (i32, i32) {
    %c0_i32 = arith.constant 0 : i32
    %c0_i32_0 = arith.constant 0 : i32
    return %arg0, %c0_i32 : i32, i32
  }
  func.func @transform_1(%arg0: i32) -> (i32, i32) {
    %c0_i32 = arith.constant 0 : i32
    %c0_i32_0 = arith.constant 0 : i32
    %c0_i32_1 = arith.constant 0 : i32
    return %c0_i32, %c0_i32_0 : i32, i32
  }
  func.func @transform_2(%arg0: i32) -> (i32, i32) {
    %c0_i32 = arith.constant 0 : i32
    %c0_i32_0 = arith.constant 0 : i32
    %c0_i32_1 = arith.constant 0 : i32
    return %c0_i32, %c0_i32_0 : i32, i32
  }
  func.func @transform_3(%arg0: i32) -> (i32, i32, i32) {
    %c0_i32 = arith.constant 0 : i32
    %c0_i32_0 = arith.constant 0 : i32
    %c0_i32_1 = arith.constant 0 : i32
    %c0_i32_2 = arith.constant 0 : i32
    return %c0_i32, %c0_i32_0, %c0_i32_1 : i32, i32, i32
  }
  func.func @transform_4(%arg0: i32) -> (i32, i32) {
    %c0_i32 = arith.constant 0 : i32
    %c0_i32_0 = arith.constant 0 : i32
    %c0_i32_1 = arith.constant 0 : i32
    return %c0_i32, %c0_i32_0 : i32, i32
  }
  func.func @transform_5(%arg0: i32) -> (i32, i32, i32) {
    %c0_i32 = arith.constant 0 : i32
    %c0_i32_0 = arith.constant 0 : i32
    %c0_i32_1 = arith.constant 0 : i32
    %c0_i32_2 = arith.constant 0 : i32
    return %c0_i32, %c0_i32_0, %c0_i32_1 : i32, i32, i32
  }
  func.func @transform_6(%arg0: i32) -> (i32, i32) {
    %c0_i32 = arith.constant 0 : i32
    %c0_i32_0 = arith.constant 0 : i32
    %c0_i32_1 = arith.constant 0 : i32
    return %c0_i32, %c0_i32_0 : i32, i32
  }
  func.func @transform_7(%arg0: i32) -> (i32, i32, i32) {
    %c0_i32 = arith.constant 0 : i32
    %c0_i32_0 = arith.constant 0 : i32
    %c0_i32_1 = arith.constant 0 : i32
    %c0_i32_2 = arith.constant 0 : i32
    return %c0_i32, %c0_i32_0, %c0_i32_1 : i32, i32, i32
  }
  func.func @transform_8(%arg0: i32) -> (i32, i32) {
    %c0_i32 = arith.constant 0 : i32
    %c0_i32_0 = arith.constant 0 : i32
    %c0_i32_1 = arith.constant 0 : i32
    return %c0_i32, %c0_i32_0 : i32, i32
  }
  func.func @transform_9(%arg0: i32) -> (i32, i32, i32) {
    %c0_i32 = arith.constant 0 : i32
    %c0_i32_0 = arith.constant 0 : i32
    %c0_i32_1 = arith.constant 0 : i32
    %c0_i32_2 = arith.constant 0 : i32
    return %c0_i32, %c0_i32_0, %c0_i32_1 : i32, i32, i32
  }
  func.func @transform_10(%arg0: i32) -> (i32, i32) {
    %c0_i32 = arith.constant 0 : i32
    %c0_i32_0 = arith.constant 0 : i32
    %c0_i32_1 = arith.constant 0 : i32
    return %c0_i32, %c0_i32_0 : i32, i32
  }
  func.func @transform_11(%arg0: i32) -> (i32, i32, i32) {
    %c0_i32 = arith.constant 0 : i32
    %c0_i32_0 = arith.constant 0 : i32
    %c0_i32_1 = arith.constant 0 : i32
    %c0_i32_2 = arith.constant 0 : i32
    return %c0_i32, %c0_i32_0, %c0_i32_1 : i32, i32, i32
  }
  func.func @transform_12(%arg0: i32) -> (i32, i32) {
    %c0_i32 = arith.constant 0 : i32
    %c0_i32_0 = arith.constant 0 : i32
    %c0_i32_1 = arith.constant 0 : i32
    return %c0_i32, %c0_i32_0 : i32, i32
  }
  func.func @transform_13(%arg0: i32) -> (i32, i32) {
    %c0_i32 = arith.constant 0 : i32
    %c0_i32_0 = arith.constant 0 : i32
    %c0_i32_1 = arith.constant 0 : i32
    return %c0_i32, %c0_i32_0 : i32, i32
  }
  func.func @transform_14(%arg0: i32) -> (i32, i32) {
    %c0_i32 = arith.constant 0 : i32
    %c0_i32_0 = arith.constant 0 : i32
    %c0_i32_1 = arith.constant 0 : i32
    return %c0_i32, %c0_i32_0 : i32, i32
  }
  func.func @transform_15(%arg0: i32) -> (i32, i32, i32) {
    %c0_i32 = arith.constant 0 : i32
    %c0_i32_0 = arith.constant 0 : i32
    %c0_i32_1 = arith.constant 0 : i32
    %c0_i32_2 = arith.constant 0 : i32
    return %c0_i32, %c0_i32_0, %c0_i32_1 : i32, i32, i32
  }
  func.func @transform_16(%arg0: i32) -> (i32, i32) {
    %c0_i32 = arith.constant 0 : i32
    %c0_i32_0 = arith.constant 0 : i32
    %c0_i32_1 = arith.constant 0 : i32
    return %c0_i32, %c0_i32_0 : i32, i32
  }
  func.func @transform_17(%arg0: i32) -> (i32, i32, i32) {
    %c0_i32 = arith.constant 0 : i32
    %c0_i32_0 = arith.constant 0 : i32
    %c0_i32_1 = arith.constant 0 : i32
    %c0_i32_2 = arith.constant 0 : i32
    return %c0_i32, %c0_i32_0, %c0_i32_1 : i32, i32, i32
  }
  func.func @transform_18(%arg0: i32) -> (i32, i32) {
    %c0_i32 = arith.constant 0 : i32
    %c0_i32_0 = arith.constant 0 : i32
    %c0_i32_1 = arith.constant 0 : i32
    return %c0_i32, %c0_i32_0 : i32, i32
  }
  func.func @transform_19(%arg0: i32) -> (i32, i32) {
    %c0_i32 = arith.constant 0 : i32
    %c0_i32_0 = arith.constant 0 : i32
    %c0_i32_1 = arith.constant 0 : i32
    return %c0_i32, %c0_i32_0 : i32, i32
  }
  func.func @transform_20(%arg0: i32) -> (i32, i32) {
    %c0_i32 = arith.constant 0 : i32
    %c0_i32_0 = arith.constant 0 : i32
    %c0_i32_1 = arith.constant 0 : i32
    return %c0_i32, %c0_i32_0 : i32, i32
  }
  func.func @transform_21(%arg0: i32) -> (i32, i32) {
    %c0_i32 = arith.constant 0 : i32
    %c0_i32_0 = arith.constant 0 : i32
    %c0_i32_1 = arith.constant 0 : i32
    return %c0_i32, %c0_i32_0 : i32, i32
  }
  func.func @transform_22(%arg0: i32) -> (i32, i32) {
    %c0_i32 = arith.constant 0 : i32
    %c0_i32_0 = arith.constant 0 : i32
    %c0_i32_1 = arith.constant 0 : i32
    return %c0_i32, %c0_i32_0 : i32, i32
  }
  func.func @transform_23(%arg0: i32) -> (i32, i32) {
    %c0_i32 = arith.constant 0 : i32
    %c0_i32_0 = arith.constant 0 : i32
    %c0_i32_1 = arith.constant 0 : i32
    return %c0_i32, %c0_i32_0 : i32, i32
  }
  func.func @transform_24(%arg0: i32) -> (i32, i32) {
    %c0_i32 = arith.constant 0 : i32
    %c0_i32_0 = arith.constant 0 : i32
    %c0_i32_1 = arith.constant 0 : i32
    return %c0_i32, %c0_i32_0 : i32, i32
  }
  func.func @transform_25(%arg0: i32) -> (i32, i32) {
    %c0_i32 = arith.constant 0 : i32
    %c0_i32_0 = arith.constant 0 : i32
    %c0_i32_1 = arith.constant 0 : i32
    return %c0_i32, %c0_i32_0 : i32, i32
  }
  func.func @transform_26(%arg0: i32) -> (i32, i32) {
    %c0_i32 = arith.constant 0 : i32
    %c0_i32_0 = arith.constant 0 : i32
    %c0_i32_1 = arith.constant 0 : i32
    return %c0_i32, %c0_i32_0 : i32, i32
  }
  func.func @transform_27(%arg0: i32) -> (i32, i32) {
    %c0_i32 = arith.constant 0 : i32
    %c0_i32_0 = arith.constant 0 : i32
    return %arg0, %c0_i32 : i32, i32
  }
}

</mosaic_0001>

<bundles_post_ra>
// kernel: forward.1
= control target key start
LH: loop header
LB: loop body
LE: loop exit
PB: predicated region body
PF: predicated region fallthrough
CT: control target
= control target key end

     0   :  { %s9095_s0 = inlined_call_operand.vmem [shape: bf16[256,64], index: 0, kind: input, shape index: {}]   ;;  %s9096_s1 = inlined_call_operand.vmem [shape: bf16[64,8], index: 1, kind: input, shape index: {}]   ;;  %s9097_s2 = inlined_call_operand.vmem [shape: f32[1,8], index: 2, kind: input, shape index: {}]   ;;  %s9098_s3 = inlined_call_operand.vmem [shape: bf16[5,8,16], index: 3, kind: input, shape index: {}]   ;;  %s9099_s4 = inlined_call_operand.vmem [shape: f32[1,16], index: 4, kind: input, shape index: {}]   ;;  %s9100_s5 = inlined_call_operand.vmem [shape: bf16[11,16,32], index: 5, kind: input, shape index: {}]   ;;  %s9101_s6 = inlined_call_operand.vmem [shape: f32[1,32], index: 6, kind: input, shape index: {}]   ;;  %s9102_s7 = inlined_call_operand.vmem [shape: bf16[11,32,64], index: 7, kind: input, shape index: {}]   ;;  %s9103_s8 = inlined_call_operand.vmem [shape: f32[1,64], index: 8, kind: input, shape index: {}]   ;;  %s9104_s9 = inlined_call_operand.vmem [shape: bf16[3,64,128], index: 9, kind: input, shape index: {}]   ;;  %s9105_s10 = inlined_call_operand.vmem [shape: f32[1,128], index: 10, kind: input, shape index: {}]   ;;  %s9106_s11 = inlined_call_operand.vmem [shape: bf16[3,128,128], index: 11, kind: input, shape index: {}]   ;;  %s9107_s12 = inlined_call_operand.vmem [shape: f32[1,128], index: 12, kind: input, shape index: {}]   ;;  %s9108_s13 = inlined_call_operand.vmem [shape: bf16[64,128], index: 13, kind: input, shape index: {}]   ;;  %s9109_s14 = inlined_call_operand.vmem [shape: f32[1,128], index: 14, kind: input, shape index: {}]   ;;  %s9110_s15 = inlined_call_operand.vmem [shape: bf16[3,128,256], index: 15, kind: input, shape index: {}]   ;;  %s9111_s16 = inlined_call_operand.vmem [shape: f32[1,256], index: 16, kind: input, shape index: {}]   ;;  %s9112_s17 = inlined_call_operand.vmem [shape: bf16[3,256,256], index: 17, kind: input, shape index: {}]   ;;  %s9113_s18 = inlined_call_operand.vmem [shape: f32[1,256], index: 18, kind: input, shape index: {}]   ;;  %s9114_s19 = inlined_call_operand.vmem [shape: bf16[128,256], index: 19, kind: input, shape index: {}]   ;;  %s9115_s20 = inlined_call_operand.vmem [shape: f32[1,256], index: 20, kind: input, shape index: {}]   ;;  %s9116_s21 = inlined_call_operand.vmem [shape: bf16[256,128], index: 21, kind: input, shape index: {}]   ;;  %s9117_s22 = inlined_call_operand.vmem [shape: f32[1,128], index: 22, kind: input, shape index: {}]   ;;  %s9118_s23 = inlined_call_operand.vmem [shape: bf16[128,64], index: 23, kind: input, shape index: {}]   ;;  %s9119_s24 = inlined_call_operand.vmem [shape: f32[1,64], index: 24, kind: input, shape index: {}]   ;;  %s9120_s25 = inlined_call_operand.vmem [shape: bf16[64,128], index: 25, kind: input, shape index: {}]   ;;  %s9121_s26 = inlined_call_operand.vmem [shape: f32[1,128], index: 26, kind: input, shape index: {}]   ;;  %s9122_s27 = inlined_call_operand.hbm [shape: f32[2,128], index: 27, kind: output, shape index: {}]  }
   0x1   :  { %9130 = sst [smem:[#allocation19_spill]] %s9095_s0 }
   0x2   :  { %9131 = sst [smem:[#allocation20_spill]] %s9096_s1 }
   0x3   :  { %9132 = sst [smem:[#allocation21_spill]] %s9097_s2 }
   0x4   :  { %9133 = sst [smem:[#allocation22_spill]] %s9098_s3 }
   0x5   :  { %9134 = sst [smem:[#allocation23_spill]] %s9099_s4 }
   0x6   :  { %9135 = sst [smem:[#allocation24_spill]] %s9100_s5 }
   0x7   :  { %9136 = sst [smem:[#allocation25_spill]] %s9101_s6 }
   0x8   :  { %9137 = sst [smem:[#allocation26_spill]] %s9102_s7 }
   0x9   :  { %9138 = sst [smem:[#allocation27_spill]] %s9103_s8 }
   0xa   :  { %9139 = sst [smem:[#allocation28_spill]] %s9104_s9 }
   0xb   :  { %9140 = sst [smem:[#allocation29_spill]] %s9105_s10 }
   0xc   :  { %9141 = sst [smem:[#allocation30_spill]] %s9106_s11 }
   0xd   :  { %s9142_s8 = sld [smem:[#allocation20_spill]] }
  0x13   :  { %v6527_v0 = vld [vmem:[%s9142_s8 + $0x18] sm:$0xff]  ;;  %v6526_v1 = vld [vmem:[%s9142_s8 + $0x10] sm:$0xff] }
  0x14   :  { %289 = vmatpush.bf16.msra.mxu0 %v6527_v0 }
  0x15   :  { %32 = vsyncpa [#allocation14], 0  ;;  %v6525_v2 = vld [vmem:[%s9142_s8 + $0x8] sm:$0xff]  ;;  %v6524_v3 = vld [vmem:[%s9142_s8] sm:$0xff]  ;;  %s9143_s6 = sld [smem:[#allocation19_spill]]  ;;  %vm236_vm0 = vcmask 523264  }
  0x16   :  { %vm470_vm1 = vcmask 64512   ;;  %v6833_v12 = vmov 0.0   ;;  %s9144_s3 = sld [smem:[#allocation21_spill]]  ;;  %vm692_vm4 = vcmask 1043456  }
  0x17   :  { %582 = vst.msk [vmem:[#allocation6] sm:$0xff] %vm470_vm1, %v6833_v12  ;;  %s9145_s9 = sld [smem:[#allocation22_spill]] }
  0x18   :  { %290 = vmatpush.bf16.msra.mxu0 %v6526_v1  ;;  %583 = vst.msk [vmem:[#allocation6 + $0x8] sm:$0xff] %vm470_vm1, %v6833_v12  ;;  %s9146_s7 = sld [smem:[#allocation24_spill]] }
  0x19   :  { %584 = vst.msk [vmem:[#allocation6 + $0x10] sm:$0xff] %vm470_vm1, %v6833_v12  ;;  %s9147_s28 = sld [smem:[#allocation23_spill]] }
  0x1a   :  { %585 = vst.msk [vmem:[#allocation6 + $0x18] sm:$0xff] %vm470_vm1, %v6833_v12  ;;  %s9151_s11 = sld [smem:[#allocation26_spill]] }
  0x1b   :  { %v6508_v4 = vld [vmem:[%s9143_s6] sm:$0xff]  ;;  %v6509_v5 = vld [vmem:[%s9143_s6 + $0x8] sm:$0xff]  ;;  %v6510_v6 = vld [vmem:[%s9143_s6 + $0x10] sm:$0xff]  ;;  %586 = vst.msk [vmem:[#allocation6 + $0x20] sm:$0xff] %vm470_vm1, %v6833_v12  ;;  %s9152_s8 = sld [smem:[#allocation25_spill]] }
  0x1c   :  { %291 = vmatpush.bf16.msra.mxu0 %v6525_v2  ;;  %v6511_v7 = vld [vmem:[%s9143_s6 + $0x18] sm:$0xff]  ;;  %v6512_v8 = vld [vmem:[%s9143_s6 + $0x20] sm:$0xff]  ;;  %v6513_v9 = vld [vmem:[%s9143_s6 + $0x28] sm:$0xff]  ;;  %587 = vst.msk [vmem:[#allocation6 + $0x28] sm:$0xff] %vm470_vm1, %v6833_v12  ;;  %s9158_s29 = sld [smem:[#allocation30_spill]] }
  0x1d   :  { %v6514_v10 = vld [vmem:[%s9143_s6 + $0x30] sm:$0xff]  ;;  %v6515_v11 = vld [vmem:[%s9143_s6 + $0x38] sm:$0xff]  ;;  %v7034_v13 = vld [vmem:[%s9144_s3] ss:$0 sm:$0xff]  ;;  %588 = vst.msk [vmem:[#allocation6 + $0x30] sm:$0xff] %vm470_vm1, %v6833_v12 }
  0x1e   :  { %589 = vst.msk [vmem:[#allocation6 + $0x38] sm:$0xff] %vm470_vm1, %v6833_v12  ;;  %v6516_v14 = vld [vmem:[%s9143_s6 + $0x40] sm:$0xff]  ;;  %v5160_v27 = vld [vmem:[%s9145_s9 + $0x8] sm:$0xf]  ;;  %v6518_v41 = vld [vmem:[%s9143_s6 + $0x50] sm:$0xff] }
  0x1f   :  { %592 = vst.msk [vmem:[#allocation6 + $0x48] sm:$0xff] %vm470_vm1, %v6833_v12  ;;  %v5143_v23 = vld [vmem:[%s9145_s9 + $0x4] sm:$0xf]  ;;  %v641_v24 = vld [vmem:[%s9145_s9] sm:$0xf]  ;;  %v6517_v28 = vld [vmem:[%s9143_s6 + $0x48] sm:$0xff] }
  0x20   :  { %292 = vmatpush.bf16.msra.mxu0 %v6524_v3  ;;  %593 = vst.msk [vmem:[#allocation6 + $0x50] sm:$0xff] %vm470_vm1, %v6833_v12  ;;  %v694_v25 = vsel %vm692_vm4, %v5143_v23, 0  ;;  %v770_v26 = vsel %vm692_vm4, %v641_v24, 0  ;;  %v872_v29 = vsel %vm692_vm4, %v5160_v27, 0  ;;  %v6519_v53 = vld [vmem:[%s9143_s6 + $0x58] sm:$0xff]  ;;  %v6521_v24 = vld [vmem:[%s9143_s6 + $0x68] sm:$0xff] }
  0x21   :  { %594 = vst.msk [vmem:[#allocation6 + $0x58] sm:$0xff] %vm470_vm1, %v6833_v12  ;;  %703 = vmatpush.bf16.msra.mxu1 %v694_v25  ;;  %779 = vmatpush.bf16.msra.mxu2 %v770_v26 }
  0x22   :  { %595 = vst.msk [vmem:[#allocation6 + $0x60] sm:$0xff] %vm470_vm1, %v6833_v12  ;;  %881 = vmatpush.bf16.msra.mxu3 %v872_v29 }
  0x23   :  { %5127 = vmatmul.msk.bf16.vlgmr.msra.gmra.mxu0 %vm236_vm0, %v6508_v4  ;;  %596 = vst.msk [vmem:[#allocation6 + $0x68] sm:$0xff] %vm470_vm1, %v6833_v12 }
  0x24   :  { %597 = vst.msk [vmem:[#allocation6 + $0x70] sm:$0xff] %vm470_vm1, %v6833_v12 }
  0x25   :  { %598 = vst.msk [vmem:[#allocation6 + $0x78] sm:$0xff] %vm470_vm1, %v6833_v12 }
  0x26   :  { %599 = vst.msk [vmem:[#allocation6 + $0x80] sm:$0xff] %vm470_vm1, %v6833_v12 }
  0x27   :  { %2746 = vst.msk [vmem:[#allocation9] sm:$0xff] %vm236_vm0, %v6833_v12 }
  0x28   :  { %2749 = vst.msk [vmem:[#allocation9 + $0x10] sm:$0xff] %vm236_vm0, %v6833_v12 }
  0x29   :  { %2921 = vst [vmem:[#allocation10] sm:$0xff] %v6833_v12 }
  0x2a   :  { %2922 = vst [vmem:[#allocation10 + $0x8] sm:$0x3] %v6833_v12 }
  0x2b   :  { %2923 = vst [vmem:[#allocation10 + $0x10] sm:$0xff] %v6833_v12 }
  0x2c   :  { %3238 = vst [vmem:[#allocation11] sm:$0xff] %v6833_v12 }
  0x2d   :  { %2924 = vst [vmem:[#allocation10 + $0x18] sm:$0x3] %v6833_v12 }
  0x2e   :  { %3239 = vst [vmem:[#allocation11 + $0x8] sm:$0x3] %v6833_v12 }
  0x2f   :  { %3240 = vst [vmem:[#allocation11 + $0x10] sm:$0xff] %v6833_v12 }
  0x30   :  { %3241 = vst [vmem:[#allocation11 + $0x18] sm:$0x3] %v6833_v12 }
  0x31   :  { %3645 = vst [vmem:[#allocation12 + $0x30] sm:$0xff] %v6833_v12 }
  0x32   :  { %3646 = vst [vmem:[#allocation12] sm:$0xff] %v6833_v12 }
  0x33   :  { %5128 = vmatmul.msk.bf16.gmra.mxu0 %vm236_vm0, %v6509_v5  ;;  %3647 = vst [vmem:[#allocation12 + $0x18] sm:$0x3] %v6833_v12 }
  0x34   :  { %3648 = vst [vmem:[#allocation12 + $0x10] sm:$0x3] %v6833_v12 }
  0x35   :  { %3649 = vst [vmem:[#allocation12 + $0x8] sm:$0xff] %v6833_v12 }
  0x36   :  { %3650 = vst [vmem:[#allocation12 + $0x20] sm:$0xff] %v6833_v12 }
  0x37   :  { %3651 = vst [vmem:[#allocation12 + $0x28] sm:$0x3] %v6833_v12 }
  0x38   :  { %3652 = vst [vmem:[#allocation12 + $0x38] sm:$0x3] %v6833_v12 }
  0x43   :  { %5129 = vmatmul.msk.bf16.gmra.mxu0 %vm236_vm0, %v6510_v6 }
  0x53   :  { %5130 = vmatmul.msk.bf16.gmra.mxu0 %vm236_vm0, %v6511_v7 }
  0x63   :  { %5131 = vmatmul.msk.bf16.gmra.mxu0 %vm236_vm0, %v6512_v8 }
  0x73   :  { %5132 = vmatmul.msk.bf16.gmra.mxu0 %vm236_vm0, %v6513_v9 }
  0x83   :  { %5133 = vmatmul.msk.bf16.gmra.mxu0 %vm236_vm0, %v6514_v10  ;;  %v6520_v10 = vld [vmem:[%s9143_s6 + $0x60] sm:$0xff] }
  0x93   :  { %5134 = vmatmul.msk.bf16.gmra.mxu0 %vm236_vm0, %v6515_v11 }
  0xa0   :  { %v294_v15 = vpop.f32.mrf.mxu0 }
  0xa1   :  { %v295_v16 = vadd.f32 %v7034_v13, %v294_v15 }
  0xa3   :  { %vm374_vm2 = vcmp.ge.f32.partialorder %v295_v16, 0.0  ;;  %v406_v17 = vmul.f32 0.01, %v295_v16  ;;  %5135 = vmatmul.msk.bf16.gmra.mxu0 %vm236_vm0, %v6516_v14 }
  0xa5   :  { %v438_v18 = vsel %vm374_vm2, %v295_v16, %v406_v17  ;;  %vm590_vm2 = vcmask 60416  }
  0xa6   :  { %471 = vst.msk [vmem:[#allocation2] sm:$0xff] %vm470_vm1, %v438_v18 }
  0xa7   :  { %591 = vst.msk [vmem:[#allocation6 + $0x40] sm:$0xf] %vm590_vm2, %v6833_v12 }
  0xa8   :  { %v296_v19 = vpop.f32.mrf.mxu0  ;;  %600 = vst.msk [vmem:[#allocation6 + $0x88] sm:$0xf] %vm590_vm2, %v6833_v12 }
  0xa9   :  { %v297_v20 = vadd.f32 %v7034_v13, %v296_v19 }
  0xab   :  { %vm375_vm3 = vcmp.ge.f32.partialorder %v297_v20, 0.0  ;;  %v407_v21 = vmul.f32 0.01, %v297_v20 }
  0xad   :  { %v439_v22 = vsel %vm375_vm3, %v297_v20, %v407_v21 }
  0xae   :  { %472 = vst.msk [vmem:[#allocation2 + $0x8] sm:$0xff] %vm470_vm1, %v439_v22 }
  0xb0   :  { %v299_v30 = vpop.f32.mrf.mxu0 }
  0xb1   :  { %v300_v31 = vadd.f32 %v7034_v13, %v299_v30 }
  0xb3   :  { %vm376_vm5 = vcmp.ge.f32.partialorder %v300_v31, 0.0  ;;  %v408_v32 = vmul.f32 0.01, %v300_v31  ;;  %5136 = vmatmul.msk.bf16.gmra.mxu0 %vm236_vm0, %v6517_v28 }
  0xb5   :  { %v503_v33 = vld [vmem:[#allocation2] ss:$2 sm:$0xff]  ;;  %v535_v34 = vld [vmem:[#allocation2 + $0x1] ss:$2 sm:$0xff]  ;;  %v440_v35 = vsel %vm376_vm5, %v300_v31, %v408_v32 }
  0xb6   :  { %v566_v36 = vmax.f32 %v503_v33, %v535_v34  ;;  %473 = vst.msk [vmem:[#allocation2 + $0x10] sm:$0xff] %vm470_vm1, %v440_v35 }
  0xb8   :  { %v301_v37 = vpop.f32.mrf.mxu0  ;;  %601 = vst.msk [vmem:[#allocation6 + $0x2] sm:$0xff] %vm470_vm1, %v566_v36 }
  0xb9   :  { %v302_v38 = vadd.f32 %v7034_v13, %v301_v37 }
  0xbb   :  { %vm377_vm6 = vcmp.ge.f32.partialorder %v302_v38, 0.0  ;;  %v409_v39 = vmul.f32 0.01, %v302_v38 }
  0xbd   :  { %v441_v40 = vsel %vm377_vm6, %v302_v38, %v409_v39 }
  0xbe   :  { %474 = vst.msk [vmem:[#allocation2 + $0x18] sm:$0xff] %vm470_vm1, %v441_v40 }
  0xbf   :  { %v642_v54 = vld [vmem:[#allocation6 + $0x1] sm:$0xff] }
  0xc0   :  { %v304_v42 = vpop.f32.mrf.mxu0  ;;  %v617_v55 = vld [vmem:[#allocation6] sm:$0xff] }
  0xc1   :  { %v305_v43 = vadd.f32 %v7034_v13, %v304_v42  ;;  %v821_v56 = vld [vmem:[#allocation6 + $0x2] sm:$0xff] }
  0xc3   :  { %vm378_vm7 = vcmp.ge.f32.partialorder %v305_v43, 0.0  ;;  %v410_v44 = vmul.f32 0.01, %v305_v43  ;;  %5137 = vmatmul.msk.bf16.gmra.mxu0 %vm236_vm0, %v6518_v41 }
  0xc5   :  { %v505_v45 = vld [vmem:[#allocation2 + $0x10] ss:$2 sm:$0xff]  ;;  %v537_v46 = vld [vmem:[#allocation2 + $0x11] ss:$2 sm:$0xff]  ;;  %v442_v47 = vsel %vm378_vm7, %v305_v43, %v410_v44 }
  0xc6   :  { %v567_v48 = vmax.f32 %v505_v45, %v537_v46  ;;  %475 = vst.msk [vmem:[#allocation2 + $0x20] sm:$0xff] %vm470_vm1, %v442_v47  ;;  %v6522_v45 = vld [vmem:[%s9143_s6 + $0x70] sm:$0xff] }
  0xc8   :  { %v306_v49 = vpop.f32.mrf.mxu0  ;;  %602 = vst.msk [vmem:[#allocation6 + $0xa] sm:$0xff] %vm470_vm1, %v567_v48 }
  0xc9   :  { %v307_v50 = vadd.f32 %v7034_v13, %v306_v49 }
  0xcb   :  { %vm379_vm8 = vcmp.ge.f32.partialorder %v307_v50, 0.0  ;;  %v411_v51 = vmul.f32 0.01, %v307_v50 }
  0xcd   :  { %v443_v52 = vsel %vm379_vm8, %v307_v50, %v411_v51 }
  0xce   :  { %476 = vst.msk [vmem:[#allocation2 + $0x28] sm:$0xff] %vm470_vm1, %v443_v52 }
  0xcf   :  { %v643_v57 = vld [vmem:[#allocation6 + $0x9] sm:$0xff] }
  0xd0   :  { %v618_v58 = vld [vmem:[#allocation6 + $0x8] sm:$0xff]  ;;  %v309_v60 = vpop.f32.mrf.mxu0  ;;  %v658_v61 = vpack.c.bf16 %v643_v57, %v642_v54  ;;  %v6523_v57 = vld [vmem:[%s9143_s6 + $0x78] sm:$0xff] }
  0xd1   :  { %v822_v59 = vld [vmem:[#allocation6 + $0xa] sm:$0xff]  ;;  %v633_v62 = vpack.c.bf16 %v618_v58, %v617_v55  ;;  %v310_v0 = vadd.f32 %v7034_v13, %v309_v60 }
  0xd2   :  { %v837_v63 = vpack.c.bf16 %v822_v59, %v821_v56  ;;  %5144 = vmatmul.msk.bf16.vlgmr.msra.gmra.mxu1 %vm470_vm1, %v658_v61 }
  0xd3   :  { %5152 = vmatmul.msk.bf16.vlgmr.msra.gmra.mxu2 %vm470_vm1, %v633_v62  ;;  %vm380_vm9 = vcmp.ge.f32.partialorder %v310_v0, 0.0  ;;  %v412_v1 = vmul.f32 0.01, %v310_v0  ;;  %5138 = vmatmul.msk.bf16.gmra.mxu0 %vm236_vm0, %v6519_v53 }
  0xd4   :  { %5161 = vmatmul.msk.bf16.vlgmr.msra.gmra.mxu3 %vm470_vm1, %v837_v63 }
  0xd5   :  { %v507_v2 = vld [vmem:[#allocation2 + $0x20] ss:$2 sm:$0xff]  ;;  %v539_v3 = vld [vmem:[#allocation2 + $0x21] ss:$2 sm:$0xff]  ;;  %v444_v4 = vsel %vm380_vm9, %v310_v0, %v412_v1 }
  0xd6   :  { %v568_v5 = vmax.f32 %v507_v2, %v539_v3  ;;  %477 = vst.msk [vmem:[#allocation2 + $0x30] sm:$0xff] %vm470_vm1, %v444_v4 }
  0xd8   :  { %603 = vst.msk [vmem:[#allocation6 + $0x12] sm:$0xff] %vm470_vm1, %v568_v5  ;;  %v311_v6 = vpop.f32.mrf.mxu0 }
  0xd9   :  { %v312_v7 = vadd.f32 %v7034_v13, %v311_v6 }
  0xdb   :  { %vm381_vm10 = vcmp.ge.f32.partialorder %v312_v7, 0.0  ;;  %v413_v8 = vmul.f32 0.01, %v312_v7 }
  0xdd   :  { %v445_v9 = vsel %vm381_vm10, %v312_v7, %v413_v8 }
  0xde   :  { %478 = vst.msk [vmem:[#allocation2 + $0x38] sm:$0xff] %vm470_vm1, %v445_v9 }
  0xdf   :  { %v644_v25 = vld [vmem:[#allocation6 + $0x11] sm:$0xff] }
  0xe0   :  { %v314_v11 = vpop.f32.mrf.mxu0  ;;  %v619_v26 = vld [vmem:[#allocation6 + $0x10] sm:$0xff] }
  0xe1   :  { %v315_v14 = vadd.f32 %v7034_v13, %v314_v11  ;;  %v823_v27 = vld [vmem:[#allocation6 + $0x12] sm:$0xff] }
  0xe3   :  { %vm382_vm11 = vcmp.ge.f32.partialorder %v315_v14, 0.0  ;;  %v414_v15 = vmul.f32 0.01, %v315_v14  ;;  %5139 = vmatmul.msk.bf16.gmra.mxu0 %vm236_vm0, %v6520_v10 }
  0xe5   :  { %v509_v16 = vld [vmem:[#allocation2 + $0x30] ss:$2 sm:$0xff]  ;;  %v541_v17 = vld [vmem:[#allocation2 + $0x31] ss:$2 sm:$0xff]  ;;  %v446_v18 = vsel %vm382_vm11, %v315_v14, %v414_v15 }
  0xe6   :  { %v569_v19 = vmax.f32 %v509_v16, %v541_v17  ;;  %479 = vst.msk [vmem:[#allocation2 + $0x40] sm:$0xff] %vm470_vm1, %v446_v18 }
  0xe8   :  { %604 = vst.msk [vmem:[#allocation6 + $0x1a] sm:$0xff] %vm470_vm1, %v569_v19  ;;  %v316_v20 = vpop.f32.mrf.mxu0 }
  0xe9   :  { %v317_v21 = vadd.f32 %v7034_v13, %v316_v20 }
  0xeb   :  { %vm383_vm12 = vcmp.ge.f32.partialorder %v317_v21, 0.0  ;;  %v415_v22 = vmul.f32 0.01, %v317_v21 }
  0xed   :  { %v447_v23 = vsel %vm383_vm12, %v317_v21, %v415_v22 }
  0xee   :  { %480 = vst.msk [vmem:[#allocation2 + $0x48] sm:$0xff] %vm470_vm1, %v447_v23 }
  0xef   :  { %v645_v28 = vld [vmem:[#allocation6 + $0x19] sm:$0xff] }
  0xf0   :  { %v620_v29 = vld [vmem:[#allocation6 + $0x18] sm:$0xff]  ;;  %v319_v31 = vpop.f32.mrf.mxu0  ;;  %v659_v32 = vpack.c.bf16 %v645_v28, %v644_v25 }
  0xf1   :  { %v824_v30 = vld [vmem:[#allocation6 + $0x1a] sm:$0xff]  ;;  %v634_v33 = vpack.c.bf16 %v620_v29, %v619_v26  ;;  %v320_v35 = vadd.f32 %v7034_v13, %v319_v31 }
  0xf2   :  { %v838_v34 = vpack.c.bf16 %v824_v30, %v823_v27  ;;  %5145 = vmatmul.msk.bf16.gmra.mxu1 %vm470_vm1, %v659_v32 }
  0xf3   :  { %5153 = vmatmul.msk.bf16.gmra.mxu2 %vm470_vm1, %v634_v33  ;;  %vm384_vm13 = vcmp.ge.f32.partialorder %v320_v35, 0.0  ;;  %v416_v36 = vmul.f32 0.01, %v320_v35  ;;  %5140 = vmatmul.msk.bf16.gmra.mxu0 %vm236_vm0, %v6521_v24 }
  0xf4   :  { %5162 = vmatmul.msk.bf16.gmra.mxu3 %vm470_vm1, %v838_v34 }
  0xf5   :  { %v511_v37 = vld [vmem:[#allocation2 + $0x40] ss:$2 sm:$0xff]  ;;  %v543_v38 = vld [vmem:[#allocation2 + $0x41] ss:$2 sm:$0xff]  ;;  %v448_v39 = vsel %vm384_vm13, %v320_v35, %v416_v36 }
  0xf6   :  { %v570_v40 = vmax.f32 %v511_v37, %v543_v38  ;;  %481 = vst.msk [vmem:[#allocation2 + $0x50] sm:$0xff] %vm470_vm1, %v448_v39 }
  0xf8   :  { %605 = vst.msk [vmem:[#allocation6 + $0x22] sm:$0xff] %vm470_vm1, %v570_v40  ;;  %v321_v41 = vpop.f32.mrf.mxu0 }
  0xf9   :  { %v322_v42 = vadd.f32 %v7034_v13, %v321_v41 }
  0xfb   :  { %vm385_vm14 = vcmp.ge.f32.partialorder %v322_v42, 0.0  ;;  %v417_v43 = vmul.f32 0.01, %v322_v42 }
  0xfd   :  { %v449_v44 = vsel %vm385_vm14, %v322_v42, %v417_v43 }
  0xfe   :  { %482 = vst.msk [vmem:[#allocation2 + $0x58] sm:$0xff] %vm470_vm1, %v449_v44  ;;  %v5178_v44 = vld [vmem:[%s9145_s9 + $0x10] sm:$0xf] }
  0xff   :  { %v646_v58 = vld [vmem:[#allocation6 + $0x21] sm:$0xff] }
 0x100   :  { %v324_v46 = vpop.f32.mrf.mxu0  ;;  %v621_v59 = vld [vmem:[#allocation6 + $0x20] sm:$0xff] }
 0x101   :  { %v325_v47 = vadd.f32 %v7034_v13, %v324_v46  ;;  %v825_v60 = vld [vmem:[#allocation6 + $0x22] sm:$0xff] }
 0x103   :  { %vm386_vm15 = vcmp.ge.f32.partialorder %v325_v47, 0.0  ;;  %v418_v48 = vmul.f32 0.01, %v325_v47  ;;  %5141 = vmatmul.msk.bf16.gmra.mxu0 %vm236_vm0, %v6522_v45  ;;  %v5169_v45 = vld [vmem:[%s9145_s9 + $0xc] sm:$0xf] }
 0x105   :  { %v513_v49 = vld [vmem:[#allocation2 + $0x50] ss:$2 sm:$0xff]  ;;  %v545_v50 = vld [vmem:[#allocation2 + $0x51] ss:$2 sm:$0xff]  ;;  %v450_v51 = vsel %vm386_vm15, %v325_v47, %v418_v48  ;;  %v1108_v47 = vsel %vm692_vm4, %v5178_v44, 0  ;;  %v990_v48 = vsel %vm692_vm4, %v5169_v45, 0 }
 0x106   :  { %v571_v52 = vmax.f32 %v513_v49, %v545_v50  ;;  %483 = vst.msk [vmem:[#allocation2 + $0x60] sm:$0xff] %vm470_vm1, %v450_v51  ;;  %1117 = vmatpush.bf16.msrb.mxu2 %v1108_v47  ;;  %999 = vmatpush.bf16.msrb.mxu1 %v990_v48 }
 0x108   :  { %606 = vst.msk [vmem:[#allocation6 + $0x2a] sm:$0xff] %vm470_vm1, %v571_v52  ;;  %v326_v53 = vpop.f32.mrf.mxu0 }
 0x109   :  { %v327_v54 = vadd.f32 %v7034_v13, %v326_v53 }
 0x10b   :  { %vm387_vm3 = vcmp.ge.f32.partialorder %v327_v54, 0.0  ;;  %v419_v55 = vmul.f32 0.01, %v327_v54 }
 0x10d   :  { %v451_v56 = vsel %vm387_vm3, %v327_v54, %v419_v55 }
 0x10e   :  { %484 = vst.msk [vmem:[#allocation2 + $0x68] sm:$0xff] %vm470_vm1, %v451_v56 }
 0x10f   :  { %v647_v61 = vld [vmem:[#allocation6 + $0x29] sm:$0xff] }
 0x110   :  { %v622_v62 = vld [vmem:[#allocation6 + $0x28] sm:$0xff]  ;;  %v329_v0 = vpop.f32.mrf.mxu0  ;;  %v660_v1 = vpack.c.bf16 %v647_v61, %v646_v58 }
 0x111   :  { %v826_v63 = vld [vmem:[#allocation6 + $0x2a] sm:$0xff]  ;;  %v635_v2 = vpack.c.bf16 %v622_v62, %v621_v59  ;;  %v330_v4 = vadd.f32 %v7034_v13, %v329_v0 }
 0x112   :  { %v839_v3 = vpack.c.bf16 %v826_v63, %v825_v60  ;;  %5146 = vmatmul.msk.bf16.gmra.mxu1 %vm470_vm1, %v660_v1 }
 0x113   :  { %5154 = vmatmul.msk.bf16.gmra.mxu2 %vm470_vm1, %v635_v2  ;;  %vm388_vm5 = vcmp.ge.f32.partialorder %v330_v4, 0.0  ;;  %v420_v5 = vmul.f32 0.01, %v330_v4  ;;  %5142 = vmatmul.msk.bf16.gmra.mxu0 %vm236_vm0, %v6523_v57 }
 0x114   :  { %5163 = vmatmul.msk.bf16.gmra.mxu3 %vm470_vm1, %v839_v3 }
 0x115   :  { %v515_v6 = vld [vmem:[#allocation2 + $0x60] ss:$2 sm:$0xff]  ;;  %v547_v7 = vld [vmem:[#allocation2 + $0x61] ss:$2 sm:$0xff]  ;;  %v452_v8 = vsel %vm388_vm5, %v330_v4, %v420_v5 }
 0x116   :  { %v572_v9 = vmax.f32 %v515_v6, %v547_v7  ;;  %485 = vst.msk [vmem:[#allocation2 + $0x70] sm:$0xff] %vm470_vm1, %v452_v8 }
 0x118   :  { %607 = vst.msk [vmem:[#allocation6 + $0x32] sm:$0xff] %vm470_vm1, %v572_v9  ;;  %v331_v10 = vpop.f32.mrf.mxu0 }
 0x119   :  { %v332_v11 = vadd.f32 %v7034_v13, %v331_v10 }
 0x11b   :  { %vm389_vm6 = vcmp.ge.f32.partialorder %v332_v11, 0.0  ;;  %v421_v14 = vmul.f32 0.01, %v332_v11 }
 0x11d   :  { %v453_v15 = vsel %vm389_vm6, %v332_v11, %v421_v14 }
 0x11e   :  { %486 = vst.msk [vmem:[#allocation2 + $0x78] sm:$0xff] %vm470_vm1, %v453_v15 }
 0x11f   :  { %v648_v27 = vld [vmem:[#allocation6 + $0x31] sm:$0xff] }
 0x120   :  { %v334_v16 = vpop.f32.mrf.mxu0  ;;  %v623_v28 = vld [vmem:[#allocation6 + $0x30] sm:$0xff] }
 0x121   :  { %v335_v17 = vadd.f32 %v7034_v13, %v334_v16  ;;  %v827_v29 = vld [vmem:[#allocation6 + $0x32] sm:$0xff] }
 0x123   :  { %vm390_vm7 = vcmp.ge.f32.partialorder %v335_v17, 0.0  ;;  %v422_v18 = vmul.f32 0.01, %v335_v17 }
 0x125   :  { %v517_v19 = vld [vmem:[#allocation2 + $0x70] ss:$2 sm:$0xff]  ;;  %v549_v20 = vld [vmem:[#allocation2 + $0x71] ss:$2 sm:$0xff]  ;;  %v454_v21 = vsel %vm390_vm7, %v335_v17, %v422_v18 }
 0x126   :  { %v573_v22 = vmax.f32 %v517_v19, %v549_v20  ;;  %487 = vst.msk [vmem:[#allocation2 + $0x80] sm:$0xff] %vm470_vm1, %v454_v21 }
 0x128   :  { %v336_v23 = vpop.f32.mrf.mxu0  ;;  %608 = vst.msk [vmem:[#allocation6 + $0x3a] sm:$0xff] %vm470_vm1, %v573_v22 }
 0x129   :  { %v337_v24 = vadd.f32 %v7034_v13, %v336_v23 }
 0x12b   :  { %vm391_vm8 = vcmp.ge.f32.partialorder %v337_v24, 0.0  ;;  %v423_v25 = vmul.f32 0.01, %v337_v24 }
 0x12d   :  { %v455_v26 = vsel %vm391_vm8, %v337_v24, %v423_v25 }
 0x12e   :  { %488 = vst.msk [vmem:[#allocation2 + $0x88] sm:$0xff] %vm470_vm1, %v455_v26 }
 0x12f   :  { %v649_v30 = vld [vmem:[#allocation6 + $0x39] sm:$0xff] }
 0x130   :  { %v624_v31 = vld [vmem:[#allocation6 + $0x38] sm:$0xff]  ;;  %v339_v33 = vpop.f32.mrf.mxu0  ;;  %v661_v34 = vpack.c.bf16 %v649_v30, %v648_v27 }
 0x131   :  { %v828_v32 = vld [vmem:[#allocation6 + $0x3a] sm:$0xff]  ;;  %v636_v35 = vpack.c.bf16 %v624_v31, %v623_v28  ;;  %v340_v37 = vadd.f32 %v7034_v13, %v339_v33 }
 0x132   :  { %v840_v36 = vpack.c.bf16 %v828_v32, %v827_v29  ;;  %5147 = vmatmul.msk.bf16.gmra.mxu1 %vm470_vm1, %v661_v34 }
 0x133   :  { %5155 = vmatmul.msk.bf16.gmra.mxu2 %vm470_vm1, %v636_v35  ;;  %vm392_vm9 = vcmp.ge.f32.partialorder %v340_v37, 0.0  ;;  %v424_v38 = vmul.f32 0.01, %v340_v37 }
 0x134   :  { %5164 = vmatmul.msk.bf16.gmra.mxu3 %vm470_vm1, %v840_v36 }
 0x135   :  { %v519_v39 = vld [vmem:[#allocation2 + $0x80] ss:$2 sm:$0xff]  ;;  %v551_v40 = vld [vmem:[#allocation2 + $0x81] ss:$2 sm:$0xff]  ;;  %v456_v41 = vsel %vm392_vm9, %v340_v37, %v424_v38  ;;  %vm1243_vm9 = vcmask 130048  }
 0x136   :  { %v574_v42 = vmax.f32 %v519_v39, %v551_v40  ;;  %489 = vst.msk [vmem:[#allocation2 + $0x90] sm:$0xff] %vm470_vm1, %v456_v41 }
 0x137   :  { %1299 = vst.msk [vmem:[#allocation7] sm:$0xff] %vm1243_vm9, %v6833_v12 }
 0x138   :  { %609 = vst.msk [vmem:[#allocation6 + $0x4a] sm:$0xff] %vm470_vm1, %v574_v42  ;;  %v341_v43 = vpop.f32.mrf.mxu0 }
 0x139   :  { %v342_v46 = vadd.f32 %v7034_v13, %v341_v43  ;;  %1300 = vst.msk [vmem:[#allocation7 + $0x8] sm:$0xff] %vm1243_vm9, %v6833_v12 }
 0x13a   :  { %1301 = vst.msk [vmem:[#allocation7 + $0x10] sm:$0xff] %vm1243_vm9, %v6833_v12 }
 0x13b   :  { %vm393_vm10 = vcmp.ge.f32.partialorder %v342_v46, 0.0  ;;  %v425_v49 = vmul.f32 0.01, %v342_v46  ;;  %1302 = vst.msk [vmem:[#allocation7 + $0x18] sm:$0xff] %vm1243_vm9, %v6833_v12 }
 0x13c   :  { %1303 = vst.msk [vmem:[#allocation7 + $0x20] sm:$0xff] %vm1243_vm9, %v6833_v12 }
 0x13d   :  { %v457_v50 = vsel %vm393_vm10, %v342_v46, %v425_v49  ;;  %1306 = vst.msk [vmem:[#allocation7 + $0x30] sm:$0xff] %vm1243_vm9, %v6833_v12 }
 0x13e   :  { %490 = vst.msk [vmem:[#allocation2 + $0x98] sm:$0xff] %vm470_vm1, %v457_v50 }
 0x13f   :  { %v650_v62 = vld [vmem:[#allocation6 + $0x49] sm:$0xff]  ;;  %1307 = vst.msk [vmem:[#allocation7 + $0x38] sm:$0xff] %vm1243_vm9, %v6833_v12 }
 0x140   :  { %v344_v51 = vpop.f32.mrf.mxu0  ;;  %v625_v63 = vld [vmem:[#allocation6 + $0x48] sm:$0xff]  ;;  %1308 = vst.msk [vmem:[#allocation7 + $0x40] sm:$0xff] %vm1243_vm9, %v6833_v12 }
 0x141   :  { %v345_v52 = vadd.f32 %v7034_v13, %v344_v51  ;;  %v829_v0 = vld [vmem:[#allocation6 + $0x4a] sm:$0xff]  ;;  %1309 = vst.msk [vmem:[#allocation7 + $0x48] sm:$0xff] %vm1243_vm9, %v6833_v12 }
 0x142   :  { %1310 = vst.msk [vmem:[#allocation7 + $0x50] sm:$0xff] %vm1243_vm9, %v6833_v12 }
 0x143   :  { %vm394_vm11 = vcmp.ge.f32.partialorder %v345_v52, 0.0  ;;  %v426_v53 = vmul.f32 0.01, %v345_v52 }
 0x145   :  { %v521_v54 = vld [vmem:[#allocation2 + $0x90] ss:$2 sm:$0xff]  ;;  %v553_v55 = vld [vmem:[#allocation2 + $0x91] ss:$2 sm:$0xff]  ;;  %v458_v56 = vsel %vm394_vm11, %v345_v52, %v426_v53 }
 0x146   :  { %v575_v57 = vmax.f32 %v521_v54, %v553_v55  ;;  %491 = vst.msk [vmem:[#allocation2 + $0xa0] sm:$0xff] %vm470_vm1, %v458_v56 }
 0x148   :  { %610 = vst.msk [vmem:[#allocation6 + $0x52] sm:$0xff] %vm470_vm1, %v575_v57  ;;  %v346_v58 = vpop.f32.mrf.mxu0 }
 0x149   :  { %v347_v59 = vadd.f32 %v7034_v13, %v346_v58 }
 0x14b   :  { %vm395_vm4 = vcmp.ge.f32.partialorder %v347_v59, 0.0  ;;  %v427_v60 = vmul.f32 0.01, %v347_v59 }
 0x14d   :  { %v459_v61 = vsel %vm395_vm4, %v347_v59, %v427_v60 }
 0x14e   :  { %492 = vst.msk [vmem:[#allocation2 + $0xa8] sm:$0xff] %vm470_vm1, %v459_v61 }
 0x14f   :  { %v651_v1 = vld [vmem:[#allocation6 + $0x51] sm:$0xff]  ;;  %v705_v14 = vpop.f32.mrf.mxu1 }
 0x150   :  { %v626_v2 = vld [vmem:[#allocation6 + $0x50] sm:$0xff]  ;;  %v349_v4 = vpop.f32.mrf.mxu0  ;;  %v662_v5 = vpack.c.bf16 %v651_v1, %v650_v62 }
 0x151   :  { %v830_v3 = vld [vmem:[#allocation6 + $0x52] sm:$0xff]  ;;  %v637_v6 = vpack.c.bf16 %v626_v2, %v625_v63  ;;  %v350_v8 = vadd.f32 %v7034_v13, %v349_v4 }
 0x152   :  { %v841_v7 = vpack.c.bf16 %v830_v3, %v829_v0  ;;  %5148 = vmatmul.msk.bf16.gmra.mxu1 %vm470_vm1, %v662_v5 }
 0x153   :  { %5156 = vmatmul.msk.bf16.gmra.mxu2 %vm470_vm1, %v637_v6  ;;  %vm396_vm12 = vcmp.ge.f32.partialorder %v350_v8, 0.0  ;;  %v428_v9 = vmul.f32 0.01, %v350_v8 }
 0x154   :  { %5165 = vmatmul.msk.bf16.gmra.mxu3 %vm470_vm1, %v841_v7 }
 0x155   :  { %v523_v10 = vld [vmem:[#allocation2 + $0xa0] ss:$2 sm:$0xff]  ;;  %v555_v11 = vld [vmem:[#allocation2 + $0xa1] ss:$2 sm:$0xff]  ;;  %v460_v15 = vsel %vm396_vm12, %v350_v8, %v428_v9 }
 0x156   :  { %v781_v16 = vpop.f32.mrf.mxu2  ;;  %v576_v17 = vmax.f32 %v523_v10, %v555_v11  ;;  %493 = vst.msk [vmem:[#allocation2 + $0xb0] sm:$0xff] %vm470_vm1, %v460_v15 }
 0x157   :  { %v7201_v18 = vadd.f32 %v781_v16, %v705_v14  ;;  %v7210_v33 = vpop.f32.mrf.mxu1 }
 0x158   :  { %611 = vst.msk [vmem:[#allocation6 + $0x5a] sm:$0xff] %vm470_vm1, %v576_v17  ;;  %v351_v19 = vpop.f32.mrf.mxu0 }
 0x159   :  { %v352_v20 = vadd.f32 %v7034_v13, %v351_v19 }
 0x15b   :  { %vm397_vm13 = vcmp.ge.f32.partialorder %v352_v20, 0.0  ;;  %v429_v21 = vmul.f32 0.01, %v352_v20 }
 0x15d   :  { %v461_v22 = vsel %vm397_vm13, %v352_v20, %v429_v21  ;;  %vm1304_vm13 = vcmask 123904  }
 0x15e   :  { %494 = vst.msk [vmem:[#allocation2 + $0xb8] sm:$0xff] %vm470_vm1, %v461_v22  ;;  %v7212_v34 = vpop.f32.mrf.mxu2 }
 0x15f   :  { %v652_v36 = vld [vmem:[#allocation6 + $0x59] sm:$0xff] }
 0x160   :  { %v354_v23 = vpop.f32.mrf.mxu0  ;;  %v627_v37 = vld [vmem:[#allocation6 + $0x58] sm:$0xff] }
 0x161   :  { %v355_v24 = vadd.f32 %v7034_v13, %v354_v23  ;;  %v831_v38 = vld [vmem:[#allocation6 + $0x5a] sm:$0xff] }
 0x163   :  { %vm398_vm14 = vcmp.ge.f32.partialorder %v355_v24, 0.0  ;;  %v430_v25 = vmul.f32 0.01, %v355_v24 }
 0x165   :  { %v525_v26 = vld [vmem:[#allocation2 + $0xb0] ss:$2 sm:$0xff]  ;;  %v557_v27 = vld [vmem:[#allocation2 + $0xb1] ss:$2 sm:$0xff]  ;;  %v462_v28 = vsel %vm398_vm14, %v355_v24, %v430_v25 }
 0x166   :  { %v577_v29 = vmax.f32 %v525_v26, %v557_v27  ;;  %495 = vst.msk [vmem:[#allocation2 + $0xc0] sm:$0xff] %vm470_vm1, %v462_v28 }
 0x168   :  { %612 = vst.msk [vmem:[#allocation6 + $0x62] sm:$0xff] %vm470_vm1, %v577_v29  ;;  %v356_v30 = vpop.f32.mrf.mxu0 }
 0x169   :  { %v357_v31 = vadd.f32 %v7034_v13, %v356_v30 }
 0x16b   :  { %vm399_vm15 = vcmp.ge.f32.partialorder %v357_v31, 0.0  ;;  %v431_v32 = vmul.f32 0.01, %v357_v31 }
 0x16d   :  { %v463_v35 = vsel %vm399_vm15, %v357_v31, %v431_v32 }
 0x16e   :  { %496 = vst.msk [vmem:[#allocation2 + $0xc8] sm:$0xff] %vm470_vm1, %v463_v35 }
 0x16f   :  { %v653_v39 = vld [vmem:[#allocation6 + $0x61] sm:$0xff]  ;;  %v710_v50 = vpop.f32.mrf.mxu1 }
 0x170   :  { %v628_v40 = vld [vmem:[#allocation6 + $0x60] sm:$0xff]  ;;  %v359_v42 = vpop.f32.mrf.mxu0  ;;  %v663_v43 = vpack.c.bf16 %v653_v39, %v652_v36 }
 0x171   :  { %v832_v41 = vld [vmem:[#allocation6 + $0x62] sm:$0xff]  ;;  %v638_v44 = vpack.c.bf16 %v628_v40, %v627_v37  ;;  %v360_v46 = vadd.f32 %v7034_v13, %v359_v42 }
 0x172   :  { %v842_v45 = vpack.c.bf16 %v832_v41, %v831_v38  ;;  %5149 = vmatmul.msk.bf16.gmra.mxu1 %vm470_vm1, %v663_v43 }
 0x173   :  { %5157 = vmatmul.msk.bf16.gmra.mxu2 %vm470_vm1, %v638_v44  ;;  %vm400_vm2 = vcmp.ge.f32.partialorder %v360_v46, 0.0  ;;  %v432_v47 = vmul.f32 0.01, %v360_v46 }
 0x174   :  { %5166 = vmatmul.msk.bf16.gmra.mxu3 %vm470_vm1, %v842_v45 }
 0x175   :  { %v527_v48 = vld [vmem:[#allocation2 + $0xc0] ss:$2 sm:$0xff]  ;;  %v559_v49 = vld [vmem:[#allocation2 + $0xc1] ss:$2 sm:$0xff]  ;;  %v464_v51 = vsel %vm400_vm2, %v360_v46, %v432_v47 }
 0x176   :  { %v786_v52 = vpop.f32.mrf.mxu2  ;;  %v578_v53 = vmax.f32 %v527_v48, %v559_v49  ;;  %497 = vst.msk [vmem:[#allocation2 + $0xd0] sm:$0xff] %vm470_vm1, %v464_v51 }
 0x177   :  { %v7220_v54 = vadd.f32 %v786_v52, %v710_v50  ;;  %v7229_v5 = vpop.f32.mrf.mxu1  ;;  %v940_v52 = vld [vmem:[#allocation6 + $0xb] sm:$0xff] }
 0x178   :  { %613 = vst.msk [vmem:[#allocation6 + $0x6a] sm:$0xff] %vm470_vm1, %v578_v53  ;;  %v361_v55 = vpop.f32.mrf.mxu0  ;;  %v1058_v53 = vld [vmem:[#allocation6 + $0xc] sm:$0xff] }
 0x179   :  { %v362_v56 = vadd.f32 %v7034_v13, %v361_v55  ;;  %v939_v55 = vld [vmem:[#allocation6 + $0x3] sm:$0xff] }
 0x17b   :  { %vm401_vm3 = vcmp.ge.f32.partialorder %v362_v56, 0.0  ;;  %v433_v57 = vmul.f32 0.01, %v362_v56 }
 0x17d   :  { %v465_v58 = vsel %vm401_vm3, %v362_v56, %v433_v57  ;;  %v1057_v56 = vld [vmem:[#allocation6 + $0x4] sm:$0xff]  ;;  %v955_v57 = vpack.c.bf16 %v940_v52, %v939_v55 }
 0x17e   :  { %498 = vst.msk [vmem:[#allocation2 + $0xd8] sm:$0xff] %vm470_vm1, %v465_v58  ;;  %v7231_v6 = vpop.f32.mrf.mxu2  ;;  %v1073_v58 = vpack.c.bf16 %v1058_v53, %v1057_v56 }
 0x17f   :  { %v654_v8 = vld [vmem:[#allocation6 + $0x69] sm:$0xff] }
 0x180   :  { %v364_v59 = vpop.f32.mrf.mxu0  ;;  %v629_v9 = vld [vmem:[#allocation6 + $0x68] sm:$0xff] }
 0x181   :  { %v365_v60 = vadd.f32 %v7034_v13, %v364_v59  ;;  %v833_v10 = vld [vmem:[#allocation6 + $0x6a] sm:$0xff] }
 0x183   :  { %vm402_vm5 = vcmp.ge.f32.partialorder %v365_v60, 0.0  ;;  %v434_v61 = vmul.f32 0.01, %v365_v60 }
 0x185   :  { %v529_v62 = vld [vmem:[#allocation2 + $0xd0] ss:$2 sm:$0xff]  ;;  %v561_v63 = vld [vmem:[#allocation2 + $0xd1] ss:$2 sm:$0xff]  ;;  %v466_v0 = vsel %vm402_vm5, %v365_v60, %v434_v61 }
 0x186   :  { %v579_v1 = vmax.f32 %v529_v62, %v561_v63  ;;  %499 = vst.msk [vmem:[#allocation2 + $0xe0] sm:$0xff] %vm470_vm1, %v466_v0  ;;  %v942_v61 = vld [vmem:[#allocation6 + $0x1b] sm:$0xff]  ;;  %v941_v63 = vld [vmem:[#allocation6 + $0x13] sm:$0xff] }
 0x187   :  { %v1060_v62 = vld [vmem:[#allocation6 + $0x1c] sm:$0xff]  ;;  %v1059_v0 = vld [vmem:[#allocation6 + $0x14] sm:$0xff] }
 0x188   :  { %614 = vst.msk [vmem:[#allocation6 + $0x72] sm:$0xff] %vm470_vm1, %v579_v1  ;;  %v366_v2 = vpop.f32.mrf.mxu0  ;;  %v956_v1 = vpack.c.bf16 %v942_v61, %v941_v63 }
 0x189   :  { %v367_v3 = vadd.f32 %v7034_v13, %v366_v2  ;;  %v1074_v2 = vpack.c.bf16 %v1060_v62, %v1059_v0 }
 0x18b   :  { %vm403_vm6 = vcmp.ge.f32.partialorder %v367_v3, 0.0  ;;  %v435_v4 = vmul.f32 0.01, %v367_v3 }
 0x18d   :  { %v467_v7 = vsel %vm403_vm6, %v367_v3, %v435_v4 }
 0x18e   :  { %500 = vst.msk [vmem:[#allocation2 + $0xe8] sm:$0xff] %vm470_vm1, %v467_v7 }
 0x18f   :  { %v655_v11 = vld [vmem:[#allocation6 + $0x71] sm:$0xff]  ;;  %v715_v25 = vpop.f32.mrf.mxu1 }
 0x190   :  { %v630_v14 = vld [vmem:[#allocation6 + $0x70] sm:$0xff]  ;;  %v369_v16 = vpop.f32.mrf.mxu0  ;;  %v664_v17 = vpack.c.bf16 %v655_v11, %v654_v8  ;;  %v1061_v11 = vld [vmem:[#allocation6 + $0x24] sm:$0xff] }
 0x191   :  { %v834_v15 = vld [vmem:[#allocation6 + $0x72] sm:$0xff]  ;;  %v639_v19 = vpack.c.bf16 %v630_v14, %v629_v9  ;;  %v370_v21 = vadd.f32 %v7034_v13, %v369_v16 }
 0x192   :  { %v843_v20 = vpack.c.bf16 %v834_v15, %v833_v10  ;;  %5150 = vmatmul.msk.bf16.gmra.mxu1 %vm470_vm1, %v664_v17  ;;  %v944_v8 = vld [vmem:[#allocation6 + $0x2b] sm:$0xff]  ;;  %v943_v10 = vld [vmem:[#allocation6 + $0x23] sm:$0xff]  ;;  %v945_v16 = vld [vmem:[#allocation6 + $0x33] sm:$0xff] }
 0x193   :  { %5158 = vmatmul.msk.bf16.gmra.mxu2 %vm470_vm1, %v639_v19  ;;  %vm404_vm7 = vcmp.ge.f32.partialorder %v370_v21, 0.0  ;;  %v436_v22 = vmul.f32 0.01, %v370_v21  ;;  %v1062_v9 = vld [vmem:[#allocation6 + $0x2c] sm:$0xff]  ;;  %v957_v14 = vpack.c.bf16 %v944_v8, %v943_v10 }
 0x194   :  { %5167 = vmatmul.msk.bf16.gmra.mxu3 %vm470_vm1, %v843_v20  ;;  %v1075_v15 = vpack.c.bf16 %v1062_v9, %v1061_v11  ;;  %v946_v20 = vld [vmem:[#allocation6 + $0x3b] sm:$0xff]  ;;  %v951_v53 = vld [vmem:[#allocation6 + $0x6b] sm:$0xff]  ;;  %v883_v9 = vpop.f32.mrf.mxu3 }
 0x195   :  { %v531_v23 = vld [vmem:[#allocation2 + $0xe0] ss:$2 sm:$0xff]  ;;  %v563_v24 = vld [vmem:[#allocation2 + $0xe1] ss:$2 sm:$0xff]  ;;  %v468_v26 = vsel %vm404_vm7, %v370_v21, %v436_v22  ;;  %v1063_v21 = vld [vmem:[#allocation6 + $0x34] sm:$0xff] }
 0x196   :  { %v791_v27 = vpop.f32.mrf.mxu2  ;;  %v580_v28 = vmax.f32 %v531_v23, %v563_v24  ;;  %501 = vst.msk [vmem:[#allocation2 + $0xf0] sm:$0xff] %vm470_vm1, %v468_v26  ;;  %v1064_v22 = vld [vmem:[#allocation6 + $0x3c] sm:$0xff]  ;;  %v958_v23 = vpack.c.bf16 %v946_v20, %v945_v16  ;;  %v1069_v55 = vld [vmem:[#allocation6 + $0x6c] sm:$0xff] }
 0x197   :  { %v7239_v29 = vadd.f32 %v791_v27, %v715_v25  ;;  %v7245_v39 = vpop.f32.mrf.mxu1  ;;  %v1076_v24 = vpack.c.bf16 %v1064_v22, %v1063_v21  ;;  %v923_v21 = vadd.f32 %v883_v9, %v7201_v18 }
 0x198   :  { %615 = vst.msk [vmem:[#allocation6 + $0x7a] sm:$0xff] %vm470_vm1, %v580_v28  ;;  %v371_v30 = vpop.f32.mrf.mxu0  ;;  %v948_v28 = vld [vmem:[#allocation6 + $0x53] sm:$0xff] }
 0x199   :  { %v372_v31 = vadd.f32 %v7034_v13, %v371_v30  ;;  %v1066_v30 = vld [vmem:[#allocation6 + $0x54] sm:$0xff] }
 0x19b   :  { %vm405_vm8 = vcmp.ge.f32.partialorder %v372_v31, 0.0  ;;  %v437_v32 = vmul.f32 0.01, %v372_v31 }
 0x19d   :  { %v469_v35 = vsel %vm405_vm8, %v372_v31, %v437_v32  ;;  %v947_v31 = vld [vmem:[#allocation6 + $0x4b] sm:$0xff] }
 0x19e   :  { %502 = vst.msk [vmem:[#allocation2 + $0xf8] sm:$0xff] %vm470_vm1, %v469_v35  ;;  %v7247_v40 = vpop.f32.mrf.mxu2  ;;  %v1065_v32 = vld [vmem:[#allocation6 + $0x4c] sm:$0xff]  ;;  %v959_v35 = vpack.c.bf16 %v948_v28, %v947_v31 }
 0x19f   :  { %v656_v41 = vld [vmem:[#allocation6 + $0x79] sm:$0xff] }
 0x1a0   :  { %v631_v42 = vld [vmem:[#allocation6 + $0x78] sm:$0xff] }
 0x1a1   :  { %v835_v43 = vld [vmem:[#allocation6 + $0x7a] sm:$0xff] }
 0x1a2   :  { %v1070_v52 = vld [vmem:[#allocation6 + $0x74] sm:$0xff] }
 0x1a5   :  { %v533_v36 = vld [vmem:[#allocation2 + $0xf0] ss:$2 sm:$0xff]  ;;  %v565_v37 = vld [vmem:[#allocation2 + $0xf1] ss:$2 sm:$0xff] }
 0x1a6   :  { %v581_v38 = vmax.f32 %v533_v36, %v565_v37  ;;  %v1077_v36 = vpack.c.bf16 %v1066_v30, %v1065_v32 }
 0x1a8   :  { %616 = vst.msk [vmem:[#allocation6 + $0x82] sm:$0xff] %vm470_vm1, %v581_v38 }
 0x1af   :  { %v657_v44 = vld [vmem:[#allocation6 + $0x81] sm:$0xff]  ;;  %v720_v49 = vpop.f32.mrf.mxu1 }
 0x1b0   :  { %v632_v45 = vld [vmem:[#allocation6 + $0x80] sm:$0xff]  ;;  %v665_v46 = vpack.c.bf16 %v657_v44, %v656_v41 }
 0x1b1   :  { %v836_v13 = vld [vmem:[#allocation6 + $0x82] sm:$0xff]  ;;  %v640_v47 = vpack.c.bf16 %v632_v45, %v631_v42 }
 0x1b2   :  { %v844_v48 = vpack.c.bf16 %v836_v13, %v835_v43  ;;  %5151 = vmatmul.msk.bf16.gmra.mxu1 %vm470_vm1, %v665_v46  ;;  %v950_v41 = vld [vmem:[#allocation6 + $0x63] sm:$0xff]  ;;  %v949_v43 = vld [vmem:[#allocation6 + $0x5b] sm:$0xff] }
 0x1b3   :  { %5159 = vmatmul.msk.bf16.gmra.mxu2 %vm470_vm1, %v640_v47  ;;  %v1068_v42 = vld [vmem:[#allocation6 + $0x64] sm:$0xff]  ;;  %v1067_v44 = vld [vmem:[#allocation6 + $0x5c] sm:$0xff]  ;;  %v960_v45 = vpack.c.bf16 %v950_v41, %v949_v43 }
 0x1b4   :  { %5168 = vmatmul.msk.bf16.gmra.mxu3 %vm470_vm1, %v844_v48  ;;  %v1078_v13 = vpack.c.bf16 %v1068_v42, %v1067_v44  ;;  %v953_v62 = vld [vmem:[#allocation6 + $0x7b] sm:$0xff]  ;;  %v954_v0 = vld [vmem:[#allocation6 + $0x83] sm:$0xff] }
 0x1b6   :  { %v796_v50 = vpop.f32.mrf.mxu2 }
 0x1b7   :  { %v7252_v51 = vadd.f32 %v796_v50, %v720_v49  ;;  %v7256_v59 = vpop.f32.mrf.mxu1  ;;  %v6529_v49 = vld [vmem:[%s9146_s7 + $0x8] sm:$0xff]  ;;  %v952_v50 = vld [vmem:[#allocation6 + $0x73] sm:$0xff] }
 0x1b8   :  { %1374 = vmatpush.bf16.msrb.mxu3 %v6529_v49  ;;  %v961_v56 = vpack.c.bf16 %v952_v50, %v951_v53  ;;  %v789_v49 = vadd.f32 %v7231_v6, %v7229_v5 }
 0x1be   :  { %v7258_v60 = vpop.f32.mrf.mxu2 }
 0x1c2   :  { %5170 = vmatmul.msk.bf16.vlgmr.msrb.gmra.mxu1 %vm470_vm1, %v955_v57  ;;  %v1079_v57 = vpack.c.bf16 %v1070_v52, %v1069_v55  ;;  %v6530_v52 = vld [vmem:[%s9146_s7 + $0x10] sm:$0xff] }
 0x1c3   :  { %5179 = vmatmul.msk.bf16.vlgmr.msrb.gmra.mxu2 %vm470_vm1, %v1073_v58  ;;  %v6533_v58 = vld [vmem:[%s9146_s7 + $0x28] sm:$0xff]  ;;  %1483 = vmatpush.bf16.msra.mxu1 %v6530_v52 }
 0x1c4   :  { %1693 = vmatpush.bf16.msrb.mxu0 %v6533_v58 }
 0x1cf   :  { %v725_v3 = vpop.f32.mrf.mxu1 }
 0x1d2   :  { %5171 = vmatmul.msk.bf16.gmra.mxu1 %vm470_vm1, %v956_v1  ;;  %v1071_v1 = vld [vmem:[#allocation6 + $0x7c] sm:$0xff] }
 0x1d3   :  { %5180 = vmatmul.msk.bf16.gmra.mxu2 %vm470_vm1, %v1074_v2  ;;  %v1072_v2 = vld [vmem:[#allocation6 + $0x84] sm:$0xff] }
 0x1d4   :  { %v1080_v8 = vpack.c.bf16 %v1072_v2, %v1071_v1 }
 0x1d6   :  { %v801_v4 = vpop.f32.mrf.mxu2 }
 0x1d7   :  { %v7262_v7 = vadd.f32 %v801_v4, %v725_v3  ;;  %v7266_v17 = vpop.f32.mrf.mxu1  ;;  %v962_v4 = vpack.c.bf16 %v954_v0, %v953_v62 }
 0x1de   :  { %v7268_v19 = vpop.f32.mrf.mxu2 }
 0x1e2   :  { %5172 = vmatmul.msk.bf16.gmra.mxu1 %vm470_vm1, %v957_v14 }
 0x1e3   :  { %5181 = vmatmul.msk.bf16.gmra.mxu2 %vm470_vm1, %v1075_v15  ;;  %v885_v15 = vpop.f32.mrf.mxu3 }
 0x1eb   :  { %v888_v22 = vpop.f32.mrf.mxu3 }
 0x1ef   :  { %v730_v25 = vpop.f32.mrf.mxu1 }
 0x1f2   :  { %5173 = vmatmul.msk.bf16.gmra.mxu1 %vm470_vm1, %v958_v23 }
 0x1f3   :  { %5182 = vmatmul.msk.bf16.gmra.mxu2 %vm470_vm1, %v1076_v24  ;;  %v7328_v24 = vld [vmem:[%s9147_s28] ss:$0 sm:$0xff]  ;;  %s9157_s28 = sld [smem:[#allocation28_spill]] }
 0x1f6   :  { %v806_v26 = vpop.f32.mrf.mxu2 }
 0x1f7   :  { %v7272_v27 = vadd.f32 %v806_v26, %v730_v25  ;;  %v7276_v37 = vpop.f32.mrf.mxu1  ;;  %v784_v26 = vadd.f32 %v7212_v34, %v7210_v33 }
 0x1f9   :  { %v924_v31 = vadd.f32 %v885_v15, %v784_v26 }
 0x1fe   :  { %v7278_v38 = vpop.f32.mrf.mxu2 }
 0x202   :  { %5174 = vmatmul.msk.bf16.gmra.mxu1 %vm470_vm1, %v959_v35 }
 0x203   :  { %5183 = vmatmul.msk.bf16.gmra.mxu2 %vm470_vm1, %v1077_v36  ;;  %v890_v36 = vpop.f32.mrf.mxu3 }
 0x20f   :  { %v735_v46 = vpop.f32.mrf.mxu1 }
 0x212   :  { %5175 = vmatmul.msk.bf16.gmra.mxu1 %vm470_vm1, %v960_v45  ;;  %v925_v45 = vadd.f32 %v888_v22, %v7220_v54  ;;  %v6531_v54 = vld [vmem:[%s9146_s7 + $0x18] sm:$0xff]  ;;  %v794_v22 = vadd.f32 %v7247_v40, %v7245_v39 }
 0x213   :  { %5184 = vmatmul.msk.bf16.gmra.mxu2 %vm470_vm1, %v1078_v13 }
 0x214   :  { %1553 = vmatpush.bf16.msra.mxu2 %v6531_v54 }
 0x216   :  { %v811_v47 = vpop.f32.mrf.mxu2 }
 0x217   :  { %v7282_v48 = vadd.f32 %v811_v47, %v735_v46  ;;  %v7292_v61 = vpop.f32.mrf.mxu1  ;;  %v893_v46 = vpop.f32.mrf.mxu3 }
 0x218   :  { %v927_v9 = vadd.f32 %v893_v46, %v7239_v29 }
 0x21e   :  { %v7294_v63 = vpop.f32.mrf.mxu2 }
 0x222   :  { %5176 = vmatmul.msk.bf16.gmra.mxu1 %vm470_vm1, %v961_v56  ;;  %v926_v56 = vadd.f32 %v890_v36, %v789_v49 }
 0x223   :  { %5185 = vmatmul.msk.bf16.gmra.mxu2 %vm470_vm1, %v1079_v57 }
 0x22f   :  { %v740_v3 = vpop.f32.mrf.mxu1 }
 0x232   :  { %5177 = vmatmul.msk.bf16.gmra.mxu1 %vm470_vm1, %v962_v4 }
 0x233   :  { %5186 = vmatmul.msk.bf16.gmra.mxu2 %vm470_vm1, %v1080_v8 }
 0x236   :  { %v816_v10 = vpop.f32.mrf.mxu2 }
 0x237   :  { %v7316_v11 = vadd.f32 %v816_v10, %v740_v3  ;;  %v7320_v14 = vpop.f32.mrf.mxu1  ;;  %v895_v3 = vpop.f32.mrf.mxu3 }
 0x23e   :  { %v7322_v16 = vpop.f32.mrf.mxu2 }
 0x23f   :  { %v1001_v20 = vpop.f32.mrf.mxu1 }
 0x240   :  { %v1041_v23 = vadd.f32 %v1001_v20, %v923_v21 }
 0x246   :  { %v1119_v25 = vpop.f32.mrf.mxu2 }
 0x247   :  { %v1159_v12 = vadd.f32 %v1119_v25, %v1041_v23  ;;  %v1003_v28 = vpop.f32.mrf.mxu1  ;;  %v898_v25 = vpop.f32.mrf.mxu3 }
 0x248   :  { %v1042_v18 = vadd.f32 %v1003_v28, %v924_v31  ;;  %v928_v28 = vadd.f32 %v895_v3, %v794_v22 }
 0x249   :  { %v1179_v30 = vadd.f32 %v7328_v24, %v1159_v12 }
 0x24b   :  { %vm1195_vm1 = vcmp.ge.f32.partialorder %v1179_v30, 0.0  ;;  %v1211_v32 = vmul.f32 0.01, %v1179_v30 }
 0x24d   :  { %v1227_v35 = vsel %vm1195_vm1, %v1179_v30, %v1211_v32 }
 0x24e   :  { %1244 = vst.msk [vmem:[#allocation3] sm:$0xff] %vm1243_vm9, %v1227_v35  ;;  %v1121_v41 = vpop.f32.mrf.mxu2 }
 0x24f   :  { %v1160_v42 = vadd.f32 %v1121_v41, %v1042_v18  ;;  %v1006_v43 = vpop.f32.mrf.mxu1 }
 0x250   :  { %v1043_v13 = vadd.f32 %v1006_v43, %v925_v45  ;;  %v7357_v43 = vld [vmem:[#allocation10] sm:$0xff] }
 0x251   :  { %v1180_v44 = vadd.f32 %v7328_v24, %v1160_v42  ;;  %v900_v42 = vpop.f32.mrf.mxu3  ;;  %1305 = vst.msk [vmem:[#allocation7 + $0x28] sm:$0x3] %vm1304_vm13, %v7357_v43 }
 0x252   :  { %1311 = vst.msk [vmem:[#allocation7 + $0x58] sm:$0x3] %vm1304_vm13, %v7357_v43 }
 0x253   :  { %vm1196_vm10 = vcmp.ge.f32.partialorder %v1180_v44, 0.0  ;;  %v1212_v33 = vmul.f32 0.01, %v1180_v44 }
 0x255   :  { %v1228_v34 = vsel %vm1196_vm10, %v1180_v44, %v1212_v33  ;;  %v929_v44 = vadd.f32 %v898_v25, %v7252_v51 }
 0x256   :  { %1245 = vst.msk [vmem:[#allocation3 + $0x8] sm:$0xff] %vm1243_vm9, %v1228_v34  ;;  %v1124_v47 = vpop.f32.mrf.mxu2 }
 0x257   :  { %v1161_v50 = vadd.f32 %v1124_v47, %v1043_v13  ;;  %v1008_v53 = vpop.f32.mrf.mxu1 }
 0x258   :  { %v1044_v6 = vadd.f32 %v1008_v53, %v926_v56 }
 0x259   :  { %v1181_v55 = vadd.f32 %v7328_v24, %v1161_v50  ;;  %v799_v50 = vadd.f32 %v7258_v60, %v7256_v59 }
 0x25b   :  { %vm1197_vm11 = vcmp.ge.f32.partialorder %v1181_v55, 0.0  ;;  %v1213_v57 = vmul.f32 0.01, %v1181_v55  ;;  %v930_v59 = vadd.f32 %v900_v42, %v799_v50 }
 0x25d   :  { %v1260_v58 = vld [vmem:[#allocation3] ss:$2 sm:$0xff]  ;;  %v1276_v62 = vld [vmem:[#allocation3 + $0x1] ss:$2 sm:$0xff]  ;;  %v1229_v5 = vsel %vm1197_vm11, %v1181_v55, %v1213_v57 }
 0x25e   :  { %v1291_v0 = vmax.f32 %v1260_v58, %v1276_v62  ;;  %1246 = vst.msk [vmem:[#allocation3 + $0x10] sm:$0xff] %vm1243_vm9, %v1229_v5  ;;  %v1126_v1 = vpop.f32.mrf.mxu2 }
 0x25f   :  { %v1162_v2 = vadd.f32 %v1126_v1, %v1044_v6  ;;  %v1011_v4 = vpop.f32.mrf.mxu1  ;;  %v903_v1 = vpop.f32.mrf.mxu3 }
 0x260   :  { %1312 = vst.msk [vmem:[#allocation7 + $0x5] sm:$0xff] %vm1243_vm9, %v1291_v0  ;;  %v1045_v20 = vadd.f32 %v1011_v4, %v927_v9  ;;  %v931_v22 = vadd.f32 %v903_v1, %v7262_v7 }
 0x261   :  { %v1182_v8 = vadd.f32 %v7328_v24, %v1162_v2 }
 0x263   :  { %vm1198_vm4 = vcmp.ge.f32.partialorder %v1182_v8, 0.0  ;;  %v1214_v10 = vmul.f32 0.01, %v1182_v8 }
 0x265   :  { %v1230_v15 = vsel %vm1198_vm4, %v1182_v8, %v1214_v10  ;;  %vm2109_vm4 = vcmask 261120  }
 0x266   :  { %1247 = vst.msk [vmem:[#allocation3 + $0x18] sm:$0xff] %vm1243_vm9, %v1230_v15  ;;  %v1129_v21 = vpop.f32.mrf.mxu2 }
 0x267   :  { %v1163_v23 = vadd.f32 %v1129_v21, %v1045_v20  ;;  %v1013_v26 = vpop.f32.mrf.mxu1  ;;  %v1334_v46 = vld [vmem:[#allocation7 + $0x1] sm:$0xff]  ;;  %v905_v25 = vpop.f32.mrf.mxu3  ;;  %2137 = vst.msk [vmem:[#allocation8] sm:$0xff] %vm2109_vm4, %v7357_v43 }
 0x268   :  { %v1046_v35 = vadd.f32 %v1013_v26, %v928_v28  ;;  %v1443_v47 = vld [vmem:[#allocation7 + $0x2] sm:$0xff]  ;;  %2138 = vst.msk [vmem:[#allocation8 + $0x8] sm:$0xff] %vm2109_vm4, %v7357_v43 }
 0x269   :  { %v1183_v12 = vadd.f32 %v7328_v24, %v1163_v23  ;;  %v1513_v49 = vld [vmem:[#allocation7 + $0x3] sm:$0xff]  ;;  %2139 = vst.msk [vmem:[#allocation8 + $0x10] sm:$0xff] %vm2109_vm4, %v7357_v43 }
 0x26a   :  { %v1653_v62 = vld [vmem:[#allocation7 + $0x5] sm:$0xff]  ;;  %2142 = vst.msk [vmem:[#allocation8 + $0x20] sm:$0xff] %vm2109_vm4, %v7357_v43 }
 0x26b   :  { %vm1199_vm12 = vcmp.ge.f32.partialorder %v1183_v12, 0.0  ;;  %v1215_v30 = vmul.f32 0.01, %v1183_v12  ;;  %2143 = vst.msk [vmem:[#allocation8 + $0x28] sm:$0xff] %vm2109_vm4, %v7357_v43 }
 0x26c   :  { %2144 = vst.msk [vmem:[#allocation8 + $0x30] sm:$0xff] %vm2109_vm4, %v7357_v43 }
 0x26d   :  { %v1262_v31 = vld [vmem:[#allocation3 + $0x10] ss:$2 sm:$0xff]  ;;  %v1278_v29 = vld [vmem:[#allocation3 + $0x11] ss:$2 sm:$0xff]  ;;  %v1231_v32 = vsel %vm1199_vm12, %v1183_v12, %v1215_v30  ;;  %v804_v30 = vadd.f32 %v7268_v19, %v7266_v17 }
 0x26e   :  { %v1292_v18 = vmax.f32 %v1262_v31, %v1278_v29  ;;  %1248 = vst.msk [vmem:[#allocation3 + $0x20] sm:$0xff] %vm1243_vm9, %v1231_v32  ;;  %v1131_v36 = vpop.f32.mrf.mxu2 }
 0x26f   :  { %v1164_v41 = vadd.f32 %v1131_v36, %v1046_v35  ;;  %v1016_v39 = vpop.f32.mrf.mxu1  ;;  %v932_v19 = vadd.f32 %v905_v25, %v804_v30  ;;  %v908_v42 = vpop.f32.mrf.mxu3  ;;  %v6528_v30 = vld [vmem:[%s9146_s7] sm:$0xff] }
 0x270   :  { %1313 = vst.msk [vmem:[#allocation7 + $0xd] sm:$0xff] %vm1243_vm9, %v1292_v18  ;;  %v1047_v34 = vadd.f32 %v1016_v39, %v929_v44  ;;  %1421 = vmatpush.bf16.msra.mxu3 %v6528_v30 }
 0x271   :  { %v1184_v40 = vadd.f32 %v7328_v24, %v1164_v41 }
 0x273   :  { %vm1200_vm14 = vcmp.ge.f32.partialorder %v1184_v40, 0.0  ;;  %v1216_v45 = vmul.f32 0.01, %v1184_v40 }
 0x275   :  { %v1232_v33 = vsel %vm1200_vm14, %v1184_v40, %v1216_v45  ;;  %vm2140_vm14 = vcmask 254976  }
 0x276   :  { %1249 = vst.msk [vmem:[#allocation3 + $0x28] sm:$0xff] %vm1243_vm9, %v1232_v33  ;;  %v1134_v13 = vpop.f32.mrf.mxu2 }
 0x277   :  { %v1165_v52 = vadd.f32 %v1134_v13, %v1047_v34  ;;  %v7365_v54 = vld [vmem:[#allocation7 + $0x9] sm:$0xff]  ;;  %v1018_v55 = vpop.f32.mrf.mxu1  ;;  %2141 = vst.msk [vmem:[#allocation8 + $0x18] sm:$0x3] %vm2140_vm14, %v7357_v43 }
 0x278   :  { %v7367_v53 = vld [vmem:[#allocation7 + $0xa] sm:$0xff]  ;;  %v1342_v56 = vpack.c.bf16 %v7365_v54, %v1334_v46  ;;  %v1048_v8 = vadd.f32 %v1018_v55, %v930_v59  ;;  %2145 = vst.msk [vmem:[#allocation8 + $0x38] sm:$0x3] %vm2140_vm14, %v7357_v43 }
 0x279   :  { %v1514_v51 = vld [vmem:[#allocation7 + $0xb] sm:$0xff]  ;;  %v1451_v57 = vpack.c.bf16 %v7367_v53, %v1443_v47  ;;  %v1185_v6 = vadd.f32 %v7328_v24, %v1165_v52  ;;  %v933_v52 = vadd.f32 %v908_v42, %v7272_v27 }
 0x27a   :  { %v1521_v58 = vpack.c.bf16 %v1514_v51, %v1513_v49  ;;  %v1654_v5 = vld [vmem:[#allocation7 + $0xd] sm:$0xff]  ;;  %5193 = vmatmul.msk.bf16.vlgmr.msrb.gmra.mxu3 %vm1243_vm9, %v1342_v56 }
 0x27b   :  { %v1661_v0 = vpack.c.bf16 %v1654_v5, %v1653_v62  ;;  %5211 = vmatmul.msk.bf16.vlgmr.msra.gmra.mxu1 %vm1243_vm9, %v1451_v57  ;;  %vm1201_vm15 = vcmp.ge.f32.partialorder %v1185_v6, 0.0  ;;  %v1217_v60 = vmul.f32 0.01, %v1185_v6  ;;  %v7392_v41 = vld [vmem:[#allocation7 + $0x8] sm:$0xff]  ;;  %v910_v57 = vpop.f32.mrf.mxu3  ;;  %v809_v5 = vadd.f32 %v7278_v38, %v7276_v37  ;;  %v6539_v43 = vld [vmem:[%s9151_s11] sm:$0xff] }
 0x27c   :  { %5221 = vmatmul.msk.bf16.vlgmr.msra.gmra.mxu2 %vm1243_vm9, %v1521_v58 }
 0x27d   :  { %5241 = vmatmul.msk.bf16.vlgmr.msrb.gmra.mxu0 %vm1243_vm9, %v1661_v0  ;;  %v1264_v2 = vld [vmem:[#allocation3 + $0x20] ss:$2 sm:$0xff]  ;;  %v1280_v3 = vld [vmem:[#allocation3 + $0x21] ss:$2 sm:$0xff]  ;;  %v1233_v4 = vsel %vm1201_vm15, %v1185_v6, %v1217_v60  ;;  %v934_v37 = vadd.f32 %v910_v57, %v809_v5 }
 0x27e   :  { %v1293_v9 = vmax.f32 %v1264_v2, %v1280_v3  ;;  %1250 = vst.msk [vmem:[#allocation3 + $0x30] sm:$0xff] %vm1243_vm9, %v1233_v4  ;;  %v1136_v10 = vpop.f32.mrf.mxu2 }
 0x27f   :  { %v1166_v15 = vadd.f32 %v1136_v10, %v1048_v8  ;;  %v1021_v20 = vpop.f32.mrf.mxu1 }
 0x280   :  { %1314 = vst.msk [vmem:[#allocation7 + $0x15] sm:$0xff] %vm1243_vm9, %v1293_v9  ;;  %v1049_v12 = vadd.f32 %v1021_v20, %v931_v22 }
 0x281   :  { %v1186_v21 = vadd.f32 %v7328_v24, %v1166_v15 }
 0x283   :  { %vm1202_vm2 = vcmp.ge.f32.partialorder %v1186_v21, 0.0  ;;  %v1218_v23 = vmul.f32 0.01, %v1186_v21 }
 0x285   :  { %v1234_v26 = vsel %vm1202_vm2, %v1186_v21, %v1218_v23  ;;  %v913_v23 = vpop.f32.mrf.mxu3 }
 0x286   :  { %1251 = vst.msk [vmem:[#allocation3 + $0x38] sm:$0xff] %vm1243_vm9, %v1234_v26  ;;  %v1139_v28 = vpop.f32.mrf.mxu2 }
 0x287   :  { %v1167_v31 = vadd.f32 %v1139_v28, %v1049_v12  ;;  %v7383_v29 = vld [vmem:[#allocation7 + $0x11] sm:$0xff]  ;;  %v1023_v35 = vpop.f32.mrf.mxu1 }
 0x288   :  { %v7385_v32 = vld [vmem:[#allocation7 + $0x12] sm:$0xff]  ;;  %v1941_v7 = vpack.c.bf16 %v7383_v29, %v7365_v54  ;;  %v1050_v34 = vadd.f32 %v1023_v35, %v932_v19  ;;  %v935_v35 = vadd.f32 %v913_v23, %v7282_v48 }
 0x289   :  { %v2011_v18 = vpack.c.bf16 %v7385_v32, %v7367_v53  ;;  %v1187_v36 = vadd.f32 %v7328_v24, %v1167_v31  ;;  %v7394_v39 = vld [vmem:[#allocation7 + $0x10] sm:$0xff] }
 0x28a   :  { %v1871_v17 = vpack.c.bf16 %v7394_v39, %v7392_v41  ;;  %v1515_v62 = vld [vmem:[#allocation7 + $0x13] sm:$0xff] }
 0x28b   :  { %vm1203_vm3 = vcmp.ge.f32.partialorder %v1187_v36, 0.0  ;;  %v1219_v40 = vmul.f32 0.01, %v1187_v36  ;;  %v1655_v4 = vld [vmem:[#allocation7 + $0x15] sm:$0xff] }
 0x28d   :  { %v1266_v44 = vld [vmem:[#allocation3 + $0x30] ss:$2 sm:$0xff]  ;;  %v1282_v45 = vld [vmem:[#allocation3 + $0x31] ss:$2 sm:$0xff]  ;;  %v1235_v33 = vsel %vm1203_vm3, %v1187_v36, %v1219_v40 }
 0x28e   :  { %v1294_v13 = vmax.f32 %v1266_v44, %v1282_v45  ;;  %1252 = vst.msk [vmem:[#allocation3 + $0x40] sm:$0xff] %vm1243_vm9, %v1235_v33  ;;  %v1141_v46 = vpop.f32.mrf.mxu2  ;;  %v814_v44 = vadd.f32 %v7294_v63, %v7292_v61  ;;  %v915_v33 = vpop.f32.mrf.mxu3 }
 0x28f   :  { %v1168_v47 = vadd.f32 %v1141_v46, %v1050_v34  ;;  %v1026_v49 = vpop.f32.mrf.mxu1 }
 0x290   :  { %1315 = vst.msk [vmem:[#allocation7 + $0x1d] sm:$0xff] %vm1243_vm9, %v1294_v13  ;;  %v1051_v56 = vadd.f32 %v1026_v49, %v933_v52  ;;  %v936_v46 = vadd.f32 %v915_v33, %v814_v44 }
 0x291   :  { %v1188_v50 = vadd.f32 %v7328_v24, %v1168_v47 }
 0x293   :  { %vm1204_vm5 = vcmp.ge.f32.partialorder %v1188_v50, 0.0  ;;  %v1220_v51 = vmul.f32 0.01, %v1188_v50 }
 0x295   :  { %v1236_v55 = vsel %vm1204_vm5, %v1188_v50, %v1220_v51 }
 0x296   :  { %1253 = vst.msk [vmem:[#allocation3 + $0x48] sm:$0xff] %vm1243_vm9, %v1236_v55  ;;  %v1144_v58 = vpop.f32.mrf.mxu2  ;;  %v918_v57 = vpop.f32.mrf.mxu3 }
 0x297   :  { %v1169_v6 = vadd.f32 %v1144_v58, %v1051_v56  ;;  %v7405_v0 = vld [vmem:[#allocation7 + $0x19] sm:$0xff]  ;;  %v1028_v60 = vpop.f32.mrf.mxu1  ;;  %v937_v58 = vadd.f32 %v918_v57, %v7316_v11 }
 0x298   :  { %v7407_v1 = vld [vmem:[#allocation7 + $0x1a] sm:$0xff]  ;;  %v1343_v27 = vpack.c.bf16 %v7405_v0, %v7383_v29  ;;  %v1052_v22 = vadd.f32 %v1028_v60, %v934_v37 }
 0x299   :  { %v1516_v59 = vld [vmem:[#allocation7 + $0x1b] sm:$0xff]  ;;  %v1452_v2 = vpack.c.bf16 %v7407_v1, %v7385_v32  ;;  %v1189_v9 = vadd.f32 %v7328_v24, %v1169_v6 }
 0x29a   :  { %v1522_v3 = vpack.c.bf16 %v1516_v59, %v1515_v62  ;;  %v1656_v8 = vld [vmem:[#allocation7 + $0x1d] sm:$0xff]  ;;  %5194 = vmatmul.msk.bf16.gmra.mxu3 %vm1243_vm9, %v1343_v27 }
 0x29b   :  { %v1662_v10 = vpack.c.bf16 %v1656_v8, %v1655_v4  ;;  %5212 = vmatmul.msk.bf16.gmra.mxu1 %vm1243_vm9, %v1452_v2  ;;  %vm1205_vm6 = vcmp.ge.f32.partialorder %v1189_v9, 0.0  ;;  %v1221_v38 = vmul.f32 0.01, %v1189_v9 }
 0x29c   :  { %5222 = vmatmul.msk.bf16.gmra.mxu2 %vm1243_vm9, %v1522_v3  ;;  %v819_v3 = vadd.f32 %v7322_v16, %v7320_v14 }
 0x29d   :  { %5242 = vmatmul.msk.bf16.gmra.mxu0 %vm1243_vm9, %v1662_v10  ;;  %v1268_v15 = vld [vmem:[#allocation3 + $0x40] ss:$2 sm:$0xff]  ;;  %v1284_v20 = vld [vmem:[#allocation3 + $0x41] ss:$2 sm:$0xff]  ;;  %v1237_v21 = vsel %vm1205_vm6, %v1189_v9, %v1221_v38 }
 0x29e   :  { %v1295_v25 = vmax.f32 %v1268_v15, %v1284_v20  ;;  %1254 = vst.msk [vmem:[#allocation3 + $0x50] sm:$0xff] %vm1243_vm9, %v1237_v21  ;;  %v1146_v26 = vpop.f32.mrf.mxu2  ;;  %v920_v23 = vpop.f32.mrf.mxu3 }
 0x29f   :  { %v1170_v12 = vadd.f32 %v1146_v26, %v1052_v22  ;;  %v1031_v28 = vpop.f32.mrf.mxu1  ;;  %v938_v14 = vadd.f32 %v920_v23, %v819_v3  ;;  %v6534_v26 = vld [vmem:[%s9146_s7 + $0x30] sm:$0xff] }
 0x2a0   :  { %1316 = vst.msk [vmem:[#allocation7 + $0x35] sm:$0xff] %vm1243_vm9, %v1295_v25  ;;  %v1053_v40 = vadd.f32 %v1031_v28, %v935_v35  ;;  %v6537_v28 = vld [vmem:[%s9146_s7 + $0x48] sm:$0xff]  ;;  %1763 = vmatpush.bf16.msrb.mxu1 %v6534_v26  ;;  %v1723_v3 = vld [vmem:[#allocation7 + $0x6] sm:$0xff] }
 0x2a1   :  { %v1190_v31 = vadd.f32 %v7328_v24, %v1170_v12  ;;  %v6535_v12 = vld [vmem:[%s9146_s7 + $0x38] sm:$0xff]  ;;  %1973 = vmatpush.bf16.msra.mxu0 %v6537_v28 }
 0x2a2   :  { %1833 = vmatpush.bf16.msrb.mxu2 %v6535_v12  ;;  %v1936_v23 = vld [vmem:[#allocation7 + $0x21] sm:$0xff] }
 0x2a3   :  { %vm1206_vm7 = vcmp.ge.f32.partialorder %v1190_v31, 0.0  ;;  %v1222_v36 = vmul.f32 0.01, %v1190_v31  ;;  %v1942_v26 = vpack.c.bf16 %v1936_v23, %v7405_v0 }
 0x2a5   :  { %v1238_v19 = vsel %vm1206_vm7, %v1190_v31, %v1222_v36 }
 0x2a6   :  { %1255 = vst.msk [vmem:[#allocation3 + $0x58] sm:$0xff] %vm1243_vm9, %v1238_v19  ;;  %v1149_v42 = vpop.f32.mrf.mxu2 }
 0x2a7   :  { %v1171_v45 = vadd.f32 %v1149_v42, %v1053_v40  ;;  %v1033_v34 = vpop.f32.mrf.mxu1  ;;  %v1338_v60 = vld [vmem:[#allocation7 + $0x31] sm:$0xff] }
 0x2a8   :  { %v1054_v52 = vadd.f32 %v1033_v34, %v936_v46  ;;  %v1447_v27 = vld [vmem:[#allocation7 + $0x32] sm:$0xff] }
 0x2a9   :  { %v1191_v13 = vadd.f32 %v7328_v24, %v1171_v45  ;;  %v1517_v2 = vld [vmem:[#allocation7 + $0x33] sm:$0xff] }
 0x2aa   :  { %v1657_v15 = vld [vmem:[#allocation7 + $0x35] sm:$0xff] }
 0x2ab   :  { %vm1207_vm8 = vcmp.ge.f32.partialorder %v1191_v13, 0.0  ;;  %v1223_v47 = vmul.f32 0.01, %v1191_v13  ;;  %v1324_v12 = vld [vmem:[#allocation7 + $0x30] sm:$0xff] }
 0x2ac   :  { %v1587_v53 = vld [vmem:[#allocation7 + $0x34] sm:$0xff] }
 0x2ad   :  { %v1270_v49 = vld [vmem:[#allocation3 + $0x50] ss:$2 sm:$0xff]  ;;  %v1286_v48 = vld [vmem:[#allocation3 + $0x51] ss:$2 sm:$0xff]  ;;  %v1239_v50 = vsel %vm1207_vm8, %v1191_v13, %v1223_v47  ;;  %vm2747_vm8 = vcmask 517120  }
 0x2ae   :  { %v1296_v51 = vmax.f32 %v1270_v49, %v1286_v48  ;;  %1256 = vst.msk [vmem:[#allocation3 + $0x60] sm:$0xff] %vm1243_vm9, %v1239_v50  ;;  %v1151_v55 = vpop.f32.mrf.mxu2 }
 0x2af   :  { %v1172_v56 = vadd.f32 %v1151_v55, %v1054_v52  ;;  %v1036_v61 = vpop.f32.mrf.mxu1 }
 0x2b0   :  { %1317 = vst.msk [vmem:[#allocation7 + $0x3d] sm:$0xff] %vm1243_vm9, %v1296_v51  ;;  %v1055_v6 = vadd.f32 %v1036_v61, %v937_v58 }
 0x2b1   :  { %v1192_v63 = vadd.f32 %v7328_v24, %v1172_v56 }
 0x2b3   :  { %vm1208_vm1 = vcmp.ge.f32.partialorder %v1192_v63, 0.0  ;;  %v1224_v62 = vmul.f32 0.01, %v1192_v63 }
 0x2b5   :  { %v1240_v5 = vsel %vm1208_vm1, %v1192_v63, %v1224_v62 }
 0x2b6   :  { %1257 = vst.msk [vmem:[#allocation3 + $0x68] sm:$0xff] %vm1243_vm9, %v1240_v5  ;;  %v1154_v59 = vpop.f32.mrf.mxu2 }
 0x2b7   :  { %v1173_v4 = vadd.f32 %v1154_v59, %v1055_v6  ;;  %v7436_v8 = vld [vmem:[#allocation7 + $0x39] sm:$0xff]  ;;  %v1038_v25 = vpop.f32.mrf.mxu1  ;;  %v6532_v6 = vld [vmem:[%s9146_s7 + $0x20] sm:$0xff] }
 0x2b8   :  { %v7438_v9 = vld [vmem:[#allocation7 + $0x3a] sm:$0xff]  ;;  %v1344_v11 = vpack.c.bf16 %v7436_v8, %v1338_v60  ;;  %v1056_v36 = vadd.f32 %v1038_v25, %v938_v14  ;;  %1623 = vmatpush.bf16.msrb.mxu3 %v6532_v6  ;;  %v1724_v60 = vld [vmem:[#allocation7 + $0xe] sm:$0xff] }
 0x2b9   :  { %v1518_v10 = vld [vmem:[#allocation7 + $0x3b] sm:$0xff]  ;;  %v1453_v37 = vpack.c.bf16 %v7438_v9, %v1447_v27  ;;  %v1193_v21 = vadd.f32 %v7328_v24, %v1173_v4  ;;  %v1794_v27 = vld [vmem:[#allocation7 + $0xf] sm:$0xff] }
 0x2ba   :  { %v1523_v38 = vpack.c.bf16 %v1518_v10, %v1517_v2  ;;  %v1658_v20 = vld [vmem:[#allocation7 + $0x3d] sm:$0xff]  ;;  %5195 = vmatmul.msk.bf16.gmra.mxu3 %vm1243_vm9, %v1344_v11  ;;  %v1731_v10 = vpack.c.bf16 %v1724_v60, %v1723_v3  ;;  %v1793_v11 = vld [vmem:[#allocation7 + $0x7] sm:$0xff] }
 0x2bb   :  { %v1663_v22 = vpack.c.bf16 %v1658_v20, %v1657_v15  ;;  %5213 = vmatmul.msk.bf16.gmra.mxu1 %vm1243_vm9, %v1453_v37  ;;  %vm1209_vm10 = vcmp.ge.f32.partialorder %v1193_v21, 0.0  ;;  %v1225_v16 = vmul.f32 0.01, %v1193_v21  ;;  %v7464_v46 = vld [vmem:[#allocation7 + $0x38] sm:$0xff]  ;;  %v1320_v2 = vld [vmem:[#allocation7] sm:$0xff]  ;;  %v1801_v37 = vpack.c.bf16 %v1794_v27, %v1793_v11 }
 0x2bc   :  { %5223 = vmatmul.msk.bf16.gmra.mxu2 %vm1243_vm9, %v1523_v38  ;;  %v1328_v4 = vpack.c.bf16 %v7392_v41, %v1320_v2  ;;  %v7493_v38 = vld [vmem:[#allocation7 + $0x18] sm:$0xff] }
 0x2bd   :  { %5243 = vmatmul.msk.bf16.gmra.mxu0 %vm1243_vm9, %v1663_v22  ;;  %v1272_v30 = vld [vmem:[#allocation3 + $0x60] ss:$2 sm:$0xff]  ;;  %v1288_v31 = vld [vmem:[#allocation3 + $0x61] ss:$2 sm:$0xff]  ;;  %v1241_v35 = vsel %vm1209_vm10, %v1193_v21, %v1225_v16  ;;  %v1329_v25 = vpack.c.bf16 %v7493_v38, %v7394_v39 }
 0x2be   :  { %v1297_v19 = vmax.f32 %v1272_v30, %v1288_v31  ;;  %1258 = vst.msk [vmem:[#allocation3 + $0x70] sm:$0xff] %vm1243_vm9, %v1241_v35  ;;  %v1156_v40 = vpop.f32.mrf.mxu2  ;;  %v1725_v15 = vld [vmem:[#allocation7 + $0x16] sm:$0xff]  ;;  %v1726_v20 = vld [vmem:[#allocation7 + $0x1e] sm:$0xff]  ;;  %v1330_v30 = vpack.c.bf16 %v7464_v46, %v1324_v12 }
 0x2bf   :  { %v1174_v42 = vadd.f32 %v1156_v40, %v1056_v36  ;;  %v1795_v21 = vld [vmem:[#allocation7 + $0x17] sm:$0xff]  ;;  %v1796_v22 = vld [vmem:[#allocation7 + $0x1f] sm:$0xff]  ;;  %v1732_v14 = vpack.c.bf16 %v1726_v20, %v1725_v15 }
 0x2c0   :  { %1318 = vst.msk [vmem:[#allocation7 + $0x45] sm:$0xff] %vm1243_vm9, %v1297_v19  ;;  %v1802_v16 = vpack.c.bf16 %v1796_v22, %v1795_v21  ;;  %v1727_v28 = vld [vmem:[#allocation7 + $0x36] sm:$0xff] }
 0x2c1   :  { %v1194_v44 = vadd.f32 %v7328_v24, %v1174_v42  ;;  %v1797_v0 = vld [vmem:[#allocation7 + $0x37] sm:$0xff] }
 0x2c2   :  { %v1588_v2 = vld [vmem:[#allocation7 + $0x3c] sm:$0xff] }
 0x2c3   :  { %vm1210_vm11 = vcmp.ge.f32.partialorder %v1194_v44, 0.0  ;;  %v1226_v45 = vmul.f32 0.01, %v1194_v44  ;;  %v1593_v32 = vpack.c.bf16 %v1588_v2, %v1587_v53 }
 0x2c5   :  { %v1242_v33 = vsel %vm1210_vm11, %v1194_v44, %v1226_v45 }
 0x2c6   :  { %1259 = vst.msk [vmem:[#allocation3 + $0x78] sm:$0xff] %vm1243_vm9, %v1242_v33 }
 0x2c7   :  { %v7460_v34 = vld [vmem:[#allocation7 + $0x42] sm:$0xff] }
 0x2c8   :  { %v2013_v13 = vpack.c.bf16 %v7460_v34, %v7438_v9  ;;  %v7466_v47 = vld [vmem:[#allocation7 + $0x40] sm:$0xff] }
 0x2c9   :  { %v1873_v49 = vpack.c.bf16 %v7466_v47, %v7464_v46  ;;  %v1340_v52 = vld [vmem:[#allocation7 + $0x41] sm:$0xff] }
 0x2ca   :  { %v1519_v51 = vld [vmem:[#allocation7 + $0x43] sm:$0xff]  ;;  %v1943_v36 = vpack.c.bf16 %v1340_v52, %v7436_v8  ;;  %v6536_v8 = vld [vmem:[%s9146_s7 + $0x40] sm:$0xff] }
 0x2cb   :  { %v1659_v62 = vld [vmem:[#allocation7 + $0x45] sm:$0xff] }
 0x2cc   :  { %v1728_v54 = vld [vmem:[#allocation7 + $0x3e] sm:$0xff] }
 0x2cd   :  { %v1274_v48 = vld [vmem:[#allocation3 + $0x70] ss:$2 sm:$0xff]  ;;  %v1290_v50 = vld [vmem:[#allocation3 + $0x71] ss:$2 sm:$0xff]  ;;  %v1733_v31 = vpack.c.bf16 %v1728_v54, %v1727_v28 }
 0x2ce   :  { %v1298_v24 = vmax.f32 %v1274_v48, %v1290_v50  ;;  %v1798_v29 = vld [vmem:[#allocation7 + $0x3f] sm:$0xff] }
 0x2cf   :  { %v1803_v35 = vpack.c.bf16 %v1798_v29, %v1797_v0 }
 0x2d0   :  { %1319 = vst.msk [vmem:[#allocation7 + $0x4d] sm:$0xff] %vm1243_vm9, %v1298_v24 }
 0x2d7   :  { %v7471_v55 = vld [vmem:[#allocation7 + $0x49] sm:$0xff]  ;;  %v1940_v33 = vld [vmem:[#allocation7 + $0x51] sm:$0xff] }
 0x2d8   :  { %v7473_v56 = vld [vmem:[#allocation7 + $0x4a] sm:$0xff]  ;;  %v1345_v61 = vpack.c.bf16 %v7471_v55, %v1340_v52  ;;  %v1944_v52 = vpack.c.bf16 %v1940_v33, %v7471_v55  ;;  %v2010_v11 = vld [vmem:[#allocation7 + $0x52] sm:$0xff] }
 0x2d9   :  { %v1520_v57 = vld [vmem:[#allocation7 + $0x4b] sm:$0xff]  ;;  %v1454_v63 = vpack.c.bf16 %v7473_v56, %v7460_v34  ;;  %v2014_v20 = vpack.c.bf16 %v2010_v11, %v7473_v56 }
 0x2da   :  { %v1524_v58 = vpack.c.bf16 %v1520_v57, %v1519_v51  ;;  %v1660_v5 = vld [vmem:[#allocation7 + $0x4d] sm:$0xff]  ;;  %5196 = vmatmul.msk.bf16.gmra.mxu3 %vm1243_vm9, %v1345_v61  ;;  %v1583_v61 = vld [vmem:[#allocation7 + $0x4] sm:$0xff] }
 0x2db   :  { %v1664_v59 = vpack.c.bf16 %v1660_v5, %v1659_v62  ;;  %5214 = vmatmul.msk.bf16.gmra.mxu1 %vm1243_vm9, %v1454_v63  ;;  %v7511_v19 = vld [vmem:[#allocation7 + $0x48] sm:$0xff]  ;;  %v1585_v5 = vld [vmem:[#allocation7 + $0x14] sm:$0xff] }
 0x2dc   :  { %5224 = vmatmul.msk.bf16.gmra.mxu2 %vm1243_vm9, %v1524_v58  ;;  %v1729_v40 = vld [vmem:[#allocation7 + $0x46] sm:$0xff]  ;;  %v1730_v42 = vld [vmem:[#allocation7 + $0x4e] sm:$0xff]  ;;  %v1331_v48 = vpack.c.bf16 %v7511_v19, %v7466_v47  ;;  %v1586_v58 = vld [vmem:[#allocation7 + $0x1c] sm:$0xff] }
 0x2dd   :  { %5244 = vmatmul.msk.bf16.gmra.mxu0 %vm1243_vm9, %v1664_v59  ;;  %v1799_v44 = vld [vmem:[#allocation7 + $0x47] sm:$0xff]  ;;  %v1800_v45 = vld [vmem:[#allocation7 + $0x4f] sm:$0xff]  ;;  %v1734_v50 = vpack.c.bf16 %v1730_v42, %v1729_v40  ;;  %v1592_v6 = vpack.c.bf16 %v1586_v58, %v1585_v5 }
 0x2de   :  { %v1804_v24 = vpack.c.bf16 %v1800_v45, %v1799_v44  ;;  %v1584_v51 = vld [vmem:[#allocation7 + $0xc] sm:$0xff]  ;;  %v2006_v62 = vld [vmem:[#allocation7 + $0x22] sm:$0xff] }
 0x2df   :  { %v1591_v63 = vpack.c.bf16 %v1584_v51, %v1583_v61  ;;  %v2012_v59 = vpack.c.bf16 %v2006_v62, %v7407_v1 }
 0x2ea   :  { %5201 = vmatmul.msk.bf16.vlgmr.msra.gmra.mxu3 %vm1243_vm9, %v1328_v4 }
 0x2eb   :  { %5251 = vmatmul.msk.bf16.vlgmr.msrb.gmra.mxu1 %vm1243_vm9, %v1731_v10  ;;  %1903 = vmatpush.bf16.msra.mxu3 %v6536_v8  ;;  %v1590_v10 = vld [vmem:[#allocation7 + $0x4c] sm:$0xff] }
 0x2ec   :  { %5261 = vmatmul.msk.bf16.vlgmr.msrb.gmra.mxu2 %vm1243_vm9, %v1801_v37  ;;  %v1589_v37 = vld [vmem:[#allocation7 + $0x44] sm:$0xff] }
 0x2ed   :  { %5281 = vmatmul.msk.bf16.vlgmr.msra.gmra.mxu0 %vm1243_vm9, %v1941_v7  ;;  %v6538_v7 = vld [vmem:[%s9146_s7 + $0x50] sm:$0xff]  ;;  %v1594_v15 = vpack.c.bf16 %v1590_v10, %v1589_v37 }
 0x2ee   :  { %2043 = vmatpush.bf16.msra.mxu1 %v6538_v7 }
 0x2fa   :  { %5202 = vmatmul.msk.bf16.gmra.mxu3 %vm1243_vm9, %v1329_v25  ;;  %v1866_v25 = vld [vmem:[#allocation7 + $0x20] sm:$0xff]  ;;  %v1695_v28 = vpop.f32.mrf.mxu0 }
 0x2fb   :  { %5252 = vmatmul.msk.bf16.gmra.mxu1 %vm1243_vm9, %v1732_v14 }
 0x2fc   :  { %5262 = vmatmul.msk.bf16.gmra.mxu2 %vm1243_vm9, %v1802_v16  ;;  %v1872_v16 = vpack.c.bf16 %v1866_v25, %v7493_v38  ;;  %v1870_v38 = vld [vmem:[#allocation7 + $0x50] sm:$0xff] }
 0x2fd   :  { %5282 = vmatmul.msk.bf16.gmra.mxu0 %vm1243_vm9, %v1942_v26  ;;  %v7523_v57 = vpop.f32.mrf.mxu3 }
 0x2ff   :  { %v1555_v39 = vpop.f32.mrf.mxu2 }
 0x302   :  { %v1697_v46 = vpop.f32.mrf.mxu0 }
 0x305   :  { %v7530_v55 = vpop.f32.mrf.mxu3 }
 0x30a   :  { %5203 = vmatmul.msk.bf16.gmra.mxu3 %vm1243_vm9, %v1330_v30  ;;  %v1874_v30 = vpack.c.bf16 %v1870_v38, %v7511_v19 }
 0x30b   :  { %5253 = vmatmul.msk.bf16.gmra.mxu1 %vm1243_vm9, %v1733_v31  ;;  %v1557_v31 = vpop.f32.mrf.mxu2 }
 0x30c   :  { %5263 = vmatmul.msk.bf16.gmra.mxu2 %vm1243_vm9, %v1803_v35 }
 0x30d   :  { %5283 = vmatmul.msk.bf16.gmra.mxu0 %vm1243_vm9, %v1943_v36 }
 0x31a   :  { %5204 = vmatmul.msk.bf16.gmra.mxu3 %vm1243_vm9, %v1331_v48  ;;  %v7595_v42 = vpop.f32.mrf.mxu0 }
 0x31b   :  { %5254 = vmatmul.msk.bf16.gmra.mxu1 %vm1243_vm9, %v1734_v50 }
 0x31c   :  { %5264 = vmatmul.msk.bf16.gmra.mxu2 %vm1243_vm9, %v1804_v24 }
 0x31d   :  { %5284 = vmatmul.msk.bf16.gmra.mxu0 %vm1243_vm9, %v1944_v52  ;;  %v7533_v60 = vpop.f32.mrf.mxu3 }
 0x31f   :  { %v1560_v47 = vpop.f32.mrf.mxu2 }
 0x322   :  { %v7601_v33 = vpop.f32.mrf.mxu0 }
 0x325   :  { %v7537_v27 = vpop.f32.mrf.mxu3 }
 0x327   :  { %v7597_v45 = vpop.f32.mrf.mxu2 }
 0x32a   :  { %5231 = vmatmul.msk.bf16.vlgmr.msrb.gmra.mxu3 %vm1243_vm9, %v1591_v63 }
 0x32b   :  { %5291 = vmatmul.msk.bf16.vlgmr.msra.gmra.mxu1 %vm1243_vm9, %v2011_v18  ;;  %v7539_v18 = vpop.f32.mrf.mxu1 }
 0x333   :  { %v7548_v3 = vpop.f32.mrf.mxu1 }
 0x33a   :  { %5232 = vmatmul.msk.bf16.gmra.mxu3 %vm1243_vm9, %v1592_v6  ;;  %v7605_v8 = vpop.f32.mrf.mxu0 }
 0x33b   :  { %5292 = vmatmul.msk.bf16.gmra.mxu1 %vm1243_vm9, %v2012_v59  ;;  %v7555_v21 = vpop.f32.mrf.mxu1 }
 0x33d   :  { %v7546_v1 = vpop.f32.mrf.mxu3 }
 0x33f   :  { %v7603_v50 = vpop.f32.mrf.mxu2 }
 0x342   :  { %v7611_v61 = vpop.f32.mrf.mxu0 }
 0x343   :  { %v7557_v34 = vpop.f32.mrf.mxu1 }
 0x345   :  { %v7550_v4 = vpop.f32.mrf.mxu3 }
 0x347   :  { %v7609_v51 = vpop.f32.mrf.mxu2 }
 0x34a   :  { %5233 = vmatmul.msk.bf16.gmra.mxu3 %vm1243_vm9, %v1593_v32 }
 0x34b   :  { %5293 = vmatmul.msk.bf16.gmra.mxu1 %vm1243_vm9, %v2013_v13  ;;  %v7565_v22 = vpop.f32.mrf.mxu1 }
 0x353   :  { %v7567_v14 = vpop.f32.mrf.mxu1 }
 0x35a   :  { %5234 = vmatmul.msk.bf16.gmra.mxu3 %vm1243_vm9, %v1594_v15  ;;  %v7619_v5 = vpop.f32.mrf.mxu0 }
 0x35b   :  { %5294 = vmatmul.msk.bf16.gmra.mxu1 %vm1243_vm9, %v2014_v20  ;;  %v7571_v54 = vpop.f32.mrf.mxu1 }
 0x35d   :  { %v1391_v9 = vpop.f32.mrf.mxu3 }
 0x35f   :  { %v7617_v62 = vpop.f32.mrf.mxu2 }
 0x362   :  { %v7630_v10 = vpop.f32.mrf.mxu0 }
 0x363   :  { %v7575_v7 = vpop.f32.mrf.mxu1  ;;  %9149 = vst [vmem:[#allocation17_spill] sm:$0xff] %v7630_v10 }
 0x365   :  { %v7559_v13 = vpop.f32.mrf.mxu3 }
 0x367   :  { %v7625_v2 = vpop.f32.mrf.mxu2 }
 0x36a   :  { %5271 = vmatmul.msk.bf16.vlgmr.msra.gmra.mxu3 %vm1243_vm9, %v1871_v17 }
 0x36b   :  { %v1765_v17 = vpop.f32.mrf.mxu1 }
 0x36d   :  { %v1423_v23 = vpop.f32.mrf.mxu3 }
 0x36e   :  { %v1424_v32 = vadd.f32 %v1423_v23, %v7523_v57  ;;  %v1975_v23 = vpop.f32.mrf.mxu0 }
 0x36f   :  { %v1835_v57 = vpop.f32.mrf.mxu2 }
 0x370   :  { %v1505_v37 = vadd.f32 %v7539_v18, %v1424_v32 }
 0x373   :  { %v7587_v0 = vpop.f32.mrf.mxu1 }
 0x375   :  { %v1425_v56 = vpop.f32.mrf.mxu3 }
 0x376   :  { %v1426_v20 = vadd.f32 %v1425_v56, %v7530_v55  ;;  %v1977_v56 = vpop.f32.mrf.mxu0 }
 0x378   :  { %v1506_v25 = vadd.f32 %v7548_v3, %v1426_v20  ;;  %v6540_v3 = vld [vmem:[%s9151_s11 + $0x8] sm:$0xff] }
 0x379   :  { %2232 = vmatpush.bf16.msrb.mxu3 %v6540_v3 }
 0x37a   :  { %5272 = vmatmul.msk.bf16.gmra.mxu3 %vm1243_vm9, %v1872_v16  ;;  %v1576_v32 = vadd.f32 %v1557_v31, %v1506_v25 }
 0x37b   :  { %v7593_v40 = vpop.f32.mrf.mxu1 }
 0x37d   :  { %v1428_v26 = vpop.f32.mrf.mxu3  ;;  %2233 = vmatpush.bf16.msrb.mxu3 %v6539_v43 }
 0x383   :  { %v7599_v19 = vpop.f32.mrf.mxu1 }
 0x385   :  { %v7573_v29 = vpop.f32.mrf.mxu3 }
 0x38a   :  { %5273 = vmatmul.msk.bf16.gmra.mxu3 %vm1243_vm9, %v1873_v49 }
 0x38b   :  { %v7607_v24 = vpop.f32.mrf.mxu1 }
 0x38d   :  { %v7581_v41 = vpop.f32.mrf.mxu3 }
 0x393   :  { %v7613_v63 = vpop.f32.mrf.mxu1 }
 0x395   :  { %v7583_v12 = vpop.f32.mrf.mxu3 }
 0x39a   :  { %5274 = vmatmul.msk.bf16.gmra.mxu3 %vm1243_vm9, %v1874_v30 }
 0x39b   :  { %v7623_v59 = vpop.f32.mrf.mxu1 }
 0x39c   :  { %9148 = vst [vmem:[#allocation16_spill] sm:$0xff] %v7623_v59 }
 0x39d   :  { %v1438_v35 = vpop.f32.mrf.mxu3 }
 0x39e   :  { %v7589_v36 = vadd.f32 %v1438_v35, %v1391_v9  ;;  %v1575_v9 = vadd.f32 %v1555_v39, %v1505_v37  ;;  %v1429_v35 = vadd.f32 %v1428_v26, %v7533_v60  ;;  %v6542_v39 = vld [vmem:[%s9151_s11 + $0x18] sm:$0xff]  ;;  %v1431_v60 = vadd.f32 %v7573_v29, %v7537_v27  ;;  %v1980_v29 = vpop.f32.mrf.mxu0 }
 0x39f   :  { %2195 = vmatpush.bf16.msra.mxu2 %v6542_v39 }
 0x3a0   :  { %v1507_v55 = vadd.f32 %v7555_v21, %v1429_v35 }
 0x3a2   :  { %v1577_v26 = vadd.f32 %v1560_v47, %v1507_v55  ;;  %v1434_v47 = vadd.f32 %v7581_v41, %v7546_v1  ;;  %v6544_v1 = vld [vmem:[%s9151_s11 + $0x28] sm:$0xff] }
 0x3a3   :  { %v7632_v11 = vpop.f32.mrf.mxu1  ;;  %2280 = vmatpush.bf16.msrb.mxu0 %v6544_v1 }
 0x3a4   :  { %9150 = vst [vmem:[#allocation18_spill] sm:$0xff] %v7632_v11  ;;  %v1837_v11 = vpop.f32.mrf.mxu2 }
 0x3a5   :  { %v7591_v49 = vpop.f32.mrf.mxu3 }
 0x3ab   :  { %v2045_v16 = vpop.f32.mrf.mxu1 }
 0x3ad   :  { %v1625_v44 = vpop.f32.mrf.mxu3 }
 0x3ae   :  { %v1645_v18 = vadd.f32 %v1625_v44, %v1575_v9 }
 0x3b0   :  { %v1715_v38 = vadd.f32 %v1695_v28, %v1645_v18 }
 0x3b2   :  { %v1785_v59 = vadd.f32 %v1765_v17, %v1715_v38 }
 0x3b3   :  { %v2047_v37 = vpop.f32.mrf.mxu1 }
 0x3b4   :  { %v1855_v44 = vadd.f32 %v1835_v57, %v1785_v59  ;;  %v1508_v59 = vadd.f32 %v7557_v34, %v1431_v60 }
 0x3b5   :  { %v1627_v48 = vpop.f32.mrf.mxu3 }
 0x3b6   :  { %v1646_v10 = vadd.f32 %v1627_v48, %v1576_v32  ;;  %v7666_v48 = vld [vmem:[%s9152_s8] ss:$0 sm:$0xff]  ;;  %v1509_v32 = vadd.f32 %v7565_v22, %v1434_v47  ;;  %s9156_s8 = sld [smem:[#allocation27_spill]] }
 0x3b8   :  { %v1716_v28 = vadd.f32 %v1697_v46, %v1646_v10  ;;  %v1840_v46 = vpop.f32.mrf.mxu2 }
 0x3ba   :  { %v1786_v9 = vadd.f32 %v7587_v0, %v1716_v28  ;;  %v1982_v28 = vpop.f32.mrf.mxu0 }
 0x3bb   :  { %v2050_v0 = vpop.f32.mrf.mxu1 }
 0x3bc   :  { %v1856_v27 = vadd.f32 %v1837_v11, %v1786_v9 }
 0x3bd   :  { %v1630_v52 = vpop.f32.mrf.mxu3 }
 0x3be   :  { %v1647_v17 = vadd.f32 %v1630_v52, %v1577_v26 }
 0x3c0   :  { %v1717_v57 = vadd.f32 %v7595_v42, %v1647_v17  ;;  %v1842_v55 = vpop.f32.mrf.mxu2  ;;  %v6543_v17 = vld [vmem:[%s9151_s11 + $0x20] sm:$0xff] }
 0x3c1   :  { %2281 = vmatpush.bf16.msrb.mxu0 %v6543_v17 }
 0x3c2   :  { %v1787_v42 = vadd.f32 %v7593_v40, %v1717_v57  ;;  %v1579_v40 = vadd.f32 %v7603_v50, %v1509_v32 }
 0x3c4   :  { %v1857_v39 = vadd.f32 %v1840_v46, %v1787_v42 }
 0x3c5   :  { %v7615_v58 = vpop.f32.mrf.mxu3 }
 0x3cd   :  { %v7621_v6 = vpop.f32.mrf.mxu3 }
 0x3d5   :  { %v7627_v53 = vpop.f32.mrf.mxu3 }
 0x3dd   :  { %v7643_v15 = vpop.f32.mrf.mxu3 }
 0x3e5   :  { %v7651_v30 = vpop.f32.mrf.mxu3 }
 0x3ed   :  { %v1905_v20 = vpop.f32.mrf.mxu3 }
 0x3ee   :  { %v1925_v21 = vadd.f32 %v1905_v20, %v1855_v44  ;;  %v1649_v44 = vadd.f32 %v7621_v6, %v1579_v40 }
 0x3f0   :  { %v1995_v31 = vadd.f32 %v1975_v23, %v1925_v21  ;;  %v1578_v23 = vadd.f32 %v7597_v45, %v1508_v59  ;;  %v1719_v26 = vadd.f32 %v7605_v8, %v1649_v44  ;;  %v6551_v8 = vld [vmem:[%s9151_s11 + $0x60] sm:$0xff]  ;;  %v9153_v44 = vld [vmem:[#allocation16_spill] sm:$0xff] }
 0x3f2   :  { %v2065_v10 = vadd.f32 %v2045_v16, %v1995_v31  ;;  %v1648_v35 = vadd.f32 %v7615_v58, %v1578_v23  ;;  %v1436_v58 = vadd.f32 %v7583_v12, %v7550_v4  ;;  %v6552_v4 = vld [vmem:[%s9151_s11 + $0x68] sm:$0xff]  ;;  %v2052_v12 = vpop.f32.mrf.mxu1  ;;  %v1789_v47 = vadd.f32 %v7607_v24, %v1719_v26 }
 0x3f3   :  { %2488 = vmatpush.bf16.msrb.mxu1 %v6552_v4  ;;  %v1511_v23 = vadd.f32 %v7571_v54, %v7589_v36  ;;  %v1441_v24 = vadd.f32 %v7591_v49, %v7559_v13  ;;  %v9154_v4 = vld [vmem:[#allocation17_spill] sm:$0xff] }
 0x3f4   :  { %v2077_v18 = vadd.f32 %v7666_v48, %v2065_v10  ;;  %v1718_v41 = vadd.f32 %v7601_v33, %v1648_v35  ;;  %v1510_v50 = vadd.f32 %v7567_v14, %v1436_v58  ;;  %v1845_v14 = vpop.f32.mrf.mxu2 }
 0x3f5   :  { %v1907_v52 = vpop.f32.mrf.mxu3  ;;  %v1859_v35 = vadd.f32 %v1845_v14, %v1789_v47 }
 0x3f6   :  { %vm2085_vm12 = vcmp.ge.f32.partialorder %v2077_v18, 0.0  ;;  %v2093_v25 = vmul.f32 0.01, %v2077_v18  ;;  %v1926_v38 = vadd.f32 %v1907_v52, %v1856_v27  ;;  %v1788_v20 = vadd.f32 %v7599_v19, %v1718_v41  ;;  %v6541_v19 = vld [vmem:[%s9151_s11 + $0x10] sm:$0xff]  ;;  %v1985_v52 = vpop.f32.mrf.mxu0 }
 0x3f7   :  { %v1580_v9 = vadd.f32 %v7609_v51, %v1510_v50  ;;  %2196 = vmatpush.bf16.msra.mxu2 %v6541_v19  ;;  %2489 = vmatpush.bf16.msrb.mxu1 %v6551_v8 }
 0x3f8   :  { %v2101_v34 = vsel %vm2085_vm12, %v2077_v18, %v2093_v25  ;;  %v1996_v16 = vadd.f32 %v1977_v56, %v1926_v38  ;;  %v1858_v21 = vadd.f32 %v1842_v55, %v1788_v20  ;;  %vm3858_vm12 = vcmask 1046528  }
 0x3f9   :  { %2110 = vst.msk [vmem:[#allocation4] sm:$0xff] %vm2109_vm4, %v2101_v34  ;;  %v1650_v10 = vadd.f32 %v7627_v53, %v1580_v9  ;;  %v1581_v34 = vadd.f32 %v7617_v62, %v1511_v23 }
 0x3fa   :  { %v2066_v11 = vadd.f32 %v2047_v37, %v1996_v16  ;;  %v2055_v38 = vpop.f32.mrf.mxu1 }
 0x3fb   :  { %v1651_v32 = vadd.f32 %v7643_v15, %v1581_v34 }
 0x3fc   :  { %v2078_v45 = vadd.f32 %v7666_v48, %v2066_v11  ;;  %v1847_v42 = vpop.f32.mrf.mxu2 }
 0x3fd   :  { %v1910_v56 = vpop.f32.mrf.mxu3 }
 0x3fe   :  { %vm2086_vm13 = vcmp.ge.f32.partialorder %v2078_v45, 0.0  ;;  %v2094_v22 = vmul.f32 0.01, %v2078_v45  ;;  %v1927_v3 = vadd.f32 %v1910_v56, %v1857_v39  ;;  %v1987_v62 = vpop.f32.mrf.mxu0 }
 0x400   :  { %v2102_v33 = vsel %vm2086_vm13, %v2078_v45, %v2094_v22  ;;  %v1997_v37 = vadd.f32 %v1980_v29, %v1927_v3  ;;  %v1721_v45 = vadd.f32 %v7619_v5, %v1651_v32  ;;  %v6547_v32 = vld [vmem:[%s9151_s11 + $0x40] sm:$0xff]  ;;  %vm4358_vm13 = vcmask 1045504  }
 0x401   :  { %2111 = vst.msk [vmem:[#allocation4 + $0x8] sm:$0xff] %vm2109_vm4, %v2102_v33 }
 0x402   :  { %v2067_v60 = vadd.f32 %v2050_v0, %v1997_v37  ;;  %v1720_v0 = vadd.f32 %v7611_v61, %v1650_v10  ;;  %v1512_v61 = vadd.f32 %v7575_v7, %v1441_v24  ;;  %v2057_v39 = vpop.f32.mrf.mxu1  ;;  %v1791_v33 = vadd.f32 %v9153_v44, %v1721_v45  ;;  %v6550_v24 = vld [vmem:[%s9151_s11 + $0x58] sm:$0xff] }
 0x403   :  { %2436 = vmatpush.bf16.msra.mxu0 %v6550_v24 }
 0x404   :  { %v2079_v6 = vadd.f32 %v7666_v48, %v2067_v60  ;;  %v1790_v1 = vadd.f32 %v7613_v63, %v1720_v0  ;;  %v1582_v40 = vadd.f32 %v7625_v2, %v1512_v61  ;;  %v1850_v37 = vpop.f32.mrf.mxu2  ;;  %v6546_v2 = vld [vmem:[%s9151_s11 + $0x38] sm:$0xff] }
 0x405   :  { %v1912_v31 = vpop.f32.mrf.mxu3  ;;  %v1861_v60 = vadd.f32 %v1850_v37, %v1791_v33  ;;  %2332 = vmatpush.bf16.msrb.mxu2 %v6546_v2 }
 0x406   :  { %vm2087_vm15 = vcmp.ge.f32.partialorder %v2079_v6, 0.0  ;;  %v2095_v46 = vmul.f32 0.01, %v2079_v6  ;;  %v1928_v59 = vadd.f32 %v1912_v31, %v1858_v21  ;;  %v1860_v49 = vadd.f32 %v1847_v42, %v1790_v1  ;;  %v1990_v26 = vpop.f32.mrf.mxu0  ;;  %v9155_v31 = vld [vmem:[#allocation18_spill] sm:$0xff] }
 0x407   :  { %v1652_v63 = vadd.f32 %v7651_v30, %v1582_v40  ;;  %v6548_v30 = vld [vmem:[%s9151_s11 + $0x48] sm:$0xff] }
 0x408   :  { %v2118_v57 = vld [vmem:[#allocation4] ss:$2 sm:$0xff]  ;;  %v2126_v18 = vld [vmem:[#allocation4 + $0x1] ss:$2 sm:$0xff]  ;;  %v2103_v27 = vsel %vm2087_vm15, %v2079_v6, %v2095_v46  ;;  %v1998_v29 = vadd.f32 %v1982_v28, %v1928_v59  ;;  %2384 = vmatpush.bf16.msra.mxu3 %v6548_v30 }
 0x409   :  { %v2133_v51 = vmax.f32 %v2118_v57, %v2126_v18  ;;  %2112 = vst.msk [vmem:[#allocation4 + $0x10] sm:$0xff] %vm2109_vm4, %v2103_v27 }
 0x40a   :  { %v2068_v25 = vadd.f32 %v2052_v12, %v1998_v29  ;;  %v1722_v12 = vadd.f32 %v9154_v4, %v1652_v63  ;;  %v2060_v43 = vpop.f32.mrf.mxu1 }
 0x40b   :  { %2146 = vst.msk [vmem:[#allocation8 + $0x5] sm:$0xff] %vm2109_vm4, %v2133_v51 }
 0x40c   :  { %v2080_v53 = vadd.f32 %v7666_v48, %v2068_v25  ;;  %v1792_v8 = vadd.f32 %v9155_v31, %v1722_v12  ;;  %v1852_v29 = vpop.f32.mrf.mxu2  ;;  %2385 = vmatpush.bf16.msra.mxu3 %v6547_v32 }
 0x40d   :  { %v1915_v16 = vpop.f32.mrf.mxu3 }
 0x40e   :  { %vm2088_vm2 = vcmp.ge.f32.partialorder %v2080_v53, 0.0  ;;  %v2096_v54 = vmul.f32 0.01, %v2080_v53  ;;  %v1929_v36 = vadd.f32 %v1915_v16, %v1859_v35  ;;  %v1862_v0 = vadd.f32 %v1852_v29, %v1792_v8  ;;  %v1992_v42 = vpop.f32.mrf.mxu0 }
 0x410   :  { %v2104_v11 = vsel %vm2088_vm2, %v2080_v53, %v2096_v54  ;;  %v1999_v55 = vadd.f32 %v1985_v52, %v1929_v36  ;;  %v6560_v54 = vld [vmem:[%s9151_s11 + $0xa8] sm:$0xff]  ;;  %v6545_v36 = vld [vmem:[%s9151_s11 + $0x30] sm:$0xff] }
 0x411   :  { %2113 = vst.msk [vmem:[#allocation4 + $0x18] sm:$0xff] %vm2109_vm4, %v2104_v11  ;;  %v6549_v11 = vld [vmem:[%s9151_s11 + $0x50] sm:$0xff]  ;;  %2696 = vmatpush.bf16.msra.mxu1 %v6560_v54  ;;  %2333 = vmatpush.bf16.msrb.mxu2 %v6545_v36 }
 0x412   :  { %v2069_v41 = vadd.f32 %v2055_v38, %v1999_v55  ;;  %v2160_v9 = vld [vmem:[#allocation8 + $0x1] sm:$0xff]  ;;  %v2062_v45 = vpop.f32.mrf.mxu1  ;;  %2437 = vmatpush.bf16.msra.mxu0 %v6549_v11 }
 0x413   :  { %v2150_v46 = vld [vmem:[#allocation8] sm:$0xff] }
 0x414   :  { %v2081_v13 = vadd.f32 %v7666_v48, %v2069_v41  ;;  %v2245_v59 = vld [vmem:[#allocation8 + $0x2] sm:$0xff] }
 0x415   :  { %v1917_v58 = vpop.f32.mrf.mxu3  ;;  %v2349_v31 = vld [vmem:[#allocation8 + $0x4] sm:$0xff] }
 0x416   :  { %vm2089_vm3 = vcmp.ge.f32.partialorder %v2081_v13, 0.0  ;;  %v2097_v15 = vmul.f32 0.01, %v2081_v13  ;;  %v1930_v56 = vadd.f32 %v1917_v58, %v1860_v49 }
 0x418   :  { %v2120_v22 = vld [vmem:[#allocation4 + $0x10] ss:$2 sm:$0xff]  ;;  %v2128_v3 = vld [vmem:[#allocation4 + $0x11] ss:$2 sm:$0xff]  ;;  %v2105_v28 = vsel %vm2089_vm3, %v2081_v13, %v2097_v15  ;;  %v2000_v7 = vadd.f32 %v1987_v62, %v1930_v56  ;;  %v6559_v62 = vld [vmem:[%s9151_s11 + $0xa0] sm:$0xff] }
 0x419   :  { %v2134_v5 = vmax.f32 %v2120_v22, %v2128_v3  ;;  %2114 = vst.msk [vmem:[#allocation4 + $0x20] sm:$0xff] %vm2109_vm4, %v2105_v28  ;;  %2697 = vmatpush.bf16.msra.mxu1 %v6559_v62  ;;  %v6554_v15 = vld [vmem:[%s9151_s11 + $0x78] sm:$0xff]  ;;  %v6556_v56 = vld [vmem:[%s9151_s11 + $0x88] sm:$0xff] }
 0x41a   :  { %v2070_v20 = vadd.f32 %v2057_v39, %v2000_v7 }
 0x41b   :  { %2147 = vst.msk [vmem:[#allocation8 + $0xd] sm:$0xff] %vm2109_vm4, %v2134_v5 }
 0x41c   :  { %v2082_v50 = vadd.f32 %v7666_v48, %v2070_v20 }
 0x41d   :  { %v1920_v6 = vpop.f32.mrf.mxu3 }
 0x41e   :  { %vm2090_vm5 = vcmp.ge.f32.partialorder %v2082_v50, 0.0  ;;  %v2098_v21 = vmul.f32 0.01, %v2082_v50  ;;  %v1931_v19 = vadd.f32 %v1920_v6, %v1861_v60  ;;  %v6553_v60 = vld [vmem:[%s9151_s11 + $0x70] sm:$0xff] }
 0x41f   :  { %v6557_v6 = vld [vmem:[%s9151_s11 + $0x90] sm:$0xff] }
 0x420   :  { %v2106_v17 = vsel %vm2090_vm5, %v2082_v50, %v2098_v21  ;;  %v2001_v14 = vadd.f32 %v1990_v26, %v1931_v19  ;;  %v6558_v50 = vld [vmem:[%s9151_s11 + $0x98] sm:$0xff]  ;;  %v6555_v26 = vld [vmem:[%s9151_s11 + $0x80] sm:$0xff] }
 0x421   :  { %2115 = vst.msk [vmem:[#allocation4 + $0x28] sm:$0xff] %vm2109_vm4, %v2106_v17 }
 0x422   :  { %v2071_v10 = vadd.f32 %v2060_v43, %v2001_v14  ;;  %v7743_v57 = vld [vmem:[#allocation8 + $0x9] sm:$0xff]  ;;  %v2662_v17 = vld [vmem:[#allocation8 + $0x12] sm:$0xff] }
 0x423   :  { %v7745_v18 = vld [vmem:[#allocation8 + $0x8] sm:$0xff]  ;;  %v2164_v47 = vpack.c.bf16 %v7743_v57, %v2160_v9  ;;  %v2558_v24 = vld [vmem:[#allocation8 + $0x10] sm:$0xff] }
 0x424   :  { %v7747_v27 = vld [vmem:[#allocation8 + $0xa] sm:$0xff]  ;;  %v2154_v52 = vpack.c.bf16 %v7745_v18, %v2150_v46  ;;  %v2083_v38 = vadd.f32 %v7666_v48, %v2071_v10 }
 0x425   :  { %v2249_v23 = vpack.c.bf16 %v7747_v27, %v2245_v59  ;;  %v2453_v51 = vld [vmem:[#allocation8 + $0x6] sm:$0xff]  ;;  %v2454_v25 = vld [vmem:[#allocation8 + $0xe] sm:$0xff]  ;;  %v1922_v35 = vpop.f32.mrf.mxu3  ;;  %5307 = vmatmul.msk.bf16.vlgmr.msra.gmra.mxu2 %vm2109_vm4, %v2164_v47  ;;  %v2665_v10 = vpack.c.bf16 %v2662_v17, %v7747_v27 }
 0x426   :  { %v2457_v53 = vpack.c.bf16 %v2454_v25, %v2453_v51  ;;  %5317 = vmatmul.msk.bf16.vlgmr.msrb.gmra.mxu3 %vm2109_vm4, %v2154_v52  ;;  %vm2091_vm6 = vcmp.ge.f32.partialorder %v2083_v38, 0.0  ;;  %v2099_v34 = vmul.f32 0.01, %v2083_v38  ;;  %v1932_v16 = vadd.f32 %v1922_v35, %v1862_v0  ;;  %2540 = vmatpush.bf16.msra.mxu2 %v6554_v15  ;;  %v2298_v21 = vld [vmem:[#allocation8 + $0xb] sm:$0xff]  ;;  %v2297_v14 = vld [vmem:[#allocation8 + $0x3] sm:$0xff] }
 0x427   :  { %5331 = vmatmul.msk.bf16.vlgmr.msrb.gmra.mxu0 %vm2109_vm4, %v2249_v23  ;;  %2592 = vmatpush.bf16.msrb.mxu3 %v6556_v56  ;;  %v2350_v19 = vld [vmem:[#allocation8 + $0xc] sm:$0xff]  ;;  %v2301_v8 = vpack.c.bf16 %v2298_v21, %v2297_v14 }
 0x428   :  { %5387 = vmatmul.msk.bf16.vlgmr.msrb.gmra.mxu1 %vm2109_vm4, %v2457_v53  ;;  %v2122_v55 = vld [vmem:[#allocation4 + $0x20] ss:$2 sm:$0xff]  ;;  %v2130_v1 = vld [vmem:[#allocation4 + $0x21] ss:$2 sm:$0xff]  ;;  %v2107_v61 = vsel %vm2091_vm6, %v2083_v38, %v2099_v34  ;;  %v2002_v41 = vadd.f32 %v1992_v42, %v1932_v16  ;;  %2644 = vmatpush.bf16.msrb.mxu0 %v6558_v50  ;;  %v2353_v9 = vpack.c.bf16 %v2350_v19, %v2349_v31  ;;  %v2401_v46 = vld [vmem:[#allocation8 + $0x5] sm:$0xff]  ;;  %vm5004_vm6 = vcmask 1041408  }
 0x429   :  { %v2135_v13 = vmax.f32 %v2122_v55, %v2130_v1  ;;  %2116 = vst.msk [vmem:[#allocation4 + $0x30] sm:$0xff] %vm2109_vm4, %v2107_v61  ;;  %v2402_v43 = vld [vmem:[#allocation8 + $0xd] sm:$0xff]  ;;  %v2561_v42 = vpack.c.bf16 %v2558_v24, %v7745_v18 }
 0x42a   :  { %v2072_v49 = vadd.f32 %v2062_v45, %v2002_v41  ;;  %2541 = vmatpush.bf16.msra.mxu2 %v6553_v60  ;;  %v2405_v59 = vpack.c.bf16 %v2402_v43, %v2401_v46  ;;  %v2505_v27 = vld [vmem:[#allocation8 + $0x7] sm:$0xff]  ;;  %v2506_v16 = vld [vmem:[#allocation8 + $0xf] sm:$0xff] }
 0x42b   :  { %2148 = vst.msk [vmem:[#allocation8 + $0x25] sm:$0xff] %vm2109_vm4, %v2135_v13  ;;  %2593 = vmatpush.bf16.msrb.mxu3 %v6555_v26  ;;  %v2610_v54 = vld [vmem:[#allocation8 + $0x11] sm:$0xff]  ;;  %v2509_v36 = vpack.c.bf16 %v2506_v16, %v2505_v27  ;;  %v7834_v27 = vld [vmem:[%s9156_s8] ss:$0 sm:$0xff]  ;;  %v7836_v16 = vld [vmem:[#allocation10] sm:$0xff] }
 0x42c   :  { %v2084_v39 = vadd.f32 %v7666_v48, %v2072_v49  ;;  %2645 = vmatpush.bf16.msrb.mxu0 %v6557_v6  ;;  %v2613_v32 = vpack.c.bf16 %v2610_v54, %v7743_v57  ;;  %2748 = vst.msk [vmem:[#allocation9 + $0x8] sm:$0x3] %vm2747_vm8, %v7836_v16 }
 0x42d   :  { %2750 = vst.msk [vmem:[#allocation9 + $0x18] sm:$0x3] %vm2747_vm8, %v7836_v16 }
 0x42e   :  { %vm2092_vm7 = vcmp.ge.f32.partialorder %v2084_v39, 0.0  ;;  %v2100_v58 = vmul.f32 0.01, %v2084_v39 }
 0x430   :  { %v2108_v40 = vsel %vm2092_vm7, %v2084_v39, %v2100_v58 }
 0x431   :  { %2117 = vst.msk [vmem:[#allocation4 + $0x38] sm:$0xff] %vm2109_vm4, %v2108_v40 }
 0x432   :  { %v2162_v3 = vld [vmem:[#allocation8 + $0x21] sm:$0xff] }
 0x433   :  { %v2152_v28 = vld [vmem:[#allocation8 + $0x20] sm:$0xff] }
 0x434   :  { %v2247_v7 = vld [vmem:[#allocation8 + $0x22] sm:$0xff] }
 0x435   :  { %v2299_v51 = vld [vmem:[#allocation8 + $0x23] sm:$0xff] }
 0x436   :  { %v2351_v25 = vld [vmem:[#allocation8 + $0x24] sm:$0xff] }
 0x437   :  { %v2403_v53 = vld [vmem:[#allocation8 + $0x25] sm:$0xff] }
 0x438   :  { %v2124_v63 = vld [vmem:[#allocation4 + $0x30] ss:$2 sm:$0xff]  ;;  %v2132_v22 = vld [vmem:[#allocation4 + $0x31] ss:$2 sm:$0xff] }
 0x439   :  { %v2136_v48 = vmax.f32 %v2124_v63, %v2132_v22 }
 0x43b   :  { %2149 = vst.msk [vmem:[#allocation8 + $0x2d] sm:$0xff] %vm2109_vm4, %v2136_v48 }
 0x442   :  { %v7786_v44 = vld [vmem:[#allocation8 + $0x29] sm:$0xff]  ;;  %v2664_v23 = vld [vmem:[#allocation8 + $0x32] sm:$0xff] }
 0x443   :  { %v7788_v33 = vld [vmem:[#allocation8 + $0x28] sm:$0xff]  ;;  %v2165_v5 = vpack.c.bf16 %v7786_v44, %v2162_v3  ;;  %v2560_v1 = vld [vmem:[#allocation8 + $0x30] sm:$0xff] }
 0x444   :  { %v2248_v37 = vld [vmem:[#allocation8 + $0x2a] sm:$0xff]  ;;  %v2155_v20 = vpack.c.bf16 %v7788_v33, %v2152_v28  ;;  %v2562_v62 = vpack.c.bf16 %v2560_v1, %v7788_v33 }
 0x445   :  { %v2250_v2 = vpack.c.bf16 %v2248_v37, %v2247_v7  ;;  %v2455_v30 = vld [vmem:[#allocation8 + $0x26] sm:$0xff]  ;;  %v2456_v4 = vld [vmem:[#allocation8 + $0x2e] sm:$0xff]  ;;  %5308 = vmatmul.msk.bf16.gmra.mxu2 %vm2109_vm4, %v2165_v5  ;;  %v2666_v34 = vpack.c.bf16 %v2664_v23, %v2248_v37 }
 0x446   :  { %v2458_v12 = vpack.c.bf16 %v2456_v4, %v2455_v30  ;;  %5318 = vmatmul.msk.bf16.gmra.mxu3 %vm2109_vm4, %v2155_v20  ;;  %v2300_v29 = vld [vmem:[#allocation8 + $0x2b] sm:$0xff] }
 0x447   :  { %5332 = vmatmul.msk.bf16.gmra.mxu0 %vm2109_vm4, %v2250_v2  ;;  %v2352_v47 = vld [vmem:[#allocation8 + $0x2c] sm:$0xff]  ;;  %v2302_v38 = vpack.c.bf16 %v2300_v29, %v2299_v51 }
 0x448   :  { %5388 = vmatmul.msk.bf16.gmra.mxu1 %vm2109_vm4, %v2458_v12  ;;  %v2404_v52 = vld [vmem:[#allocation8 + $0x2d] sm:$0xff]  ;;  %v2354_v0 = vpack.c.bf16 %v2352_v47, %v2351_v25 }
 0x449   :  { %v2406_v35 = vpack.c.bf16 %v2404_v52, %v2403_v53  ;;  %v2507_v11 = vld [vmem:[#allocation8 + $0x27] sm:$0xff]  ;;  %v2508_v55 = vld [vmem:[#allocation8 + $0x2f] sm:$0xff] }
 0x44a   :  { %v2612_v61 = vld [vmem:[#allocation8 + $0x31] sm:$0xff]  ;;  %v2510_v41 = vpack.c.bf16 %v2508_v55, %v2507_v11 }
 0x44b   :  { %v2614_v45 = vpack.c.bf16 %v2612_v61, %v7786_v44 }
 0x455   :  { %5345 = vmatmul.msk.bf16.vlgmr.msrb.gmra.mxu2 %vm2109_vm4, %v2301_v8 }
 0x456   :  { %5359 = vmatmul.msk.bf16.vlgmr.msra.gmra.mxu3 %vm2109_vm4, %v2353_v9 }
 0x457   :  { %5373 = vmatmul.msk.bf16.vlgmr.msra.gmra.mxu0 %vm2109_vm4, %v2405_v59 }
 0x458   :  { %5443 = vmatmul.msk.bf16.vlgmr.msra.gmra.mxu1 %vm2109_vm4, %v2665_v10 }
 0x465   :  { %5346 = vmatmul.msk.bf16.gmra.mxu2 %vm2109_vm4, %v2302_v38 }
 0x466   :  { %5360 = vmatmul.msk.bf16.gmra.mxu3 %vm2109_vm4, %v2354_v0 }
 0x467   :  { %5374 = vmatmul.msk.bf16.gmra.mxu0 %vm2109_vm4, %v2406_v35 }
 0x468   :  { %5444 = vmatmul.msk.bf16.gmra.mxu1 %vm2109_vm4, %v2666_v34 }
 0x475   :  { %5401 = vmatmul.msk.bf16.vlgmr.msra.gmra.mxu2 %vm2109_vm4, %v2509_v36 }
 0x476   :  { %5415 = vmatmul.msk.bf16.vlgmr.msrb.gmra.mxu3 %vm2109_vm4, %v2561_v42 }
 0x477   :  { %5429 = vmatmul.msk.bf16.vlgmr.msrb.gmra.mxu0 %vm2109_vm4, %v2613_v32 }
 0x485   :  { %5402 = vmatmul.msk.bf16.gmra.mxu2 %vm2109_vm4, %v2510_v41 }
 0x486   :  { %5416 = vmatmul.msk.bf16.gmra.mxu3 %vm2109_vm4, %v2562_v62 }
 0x487   :  { %5430 = vmatmul.msk.bf16.gmra.mxu0 %vm2109_vm4, %v2614_v45 }
 0x4a4   :  { %v2283_v57 = vpop.f32.mrf.mxu0 }
 0x4a5   :  { %v2491_v3 = vpop.f32.mrf.mxu1 }
 0x4a8   :  { %v2198_v18 = vpop.f32.mrf.mxu2 }
 0x4a9   :  { %v2235_v13 = vpop.f32.mrf.mxu3 }
 0x4aa   :  { %v2236_v4 = vadd.f32 %v2235_v13, %v2198_v18 }
 0x4ac   :  { %v2285_v49 = vpop.f32.mrf.mxu0  ;;  %v2293_v60 = vadd.f32 %v2283_v57, %v2236_v4  ;;  %v6566_v4 = vld [vmem:[%s9157_s28 + $0x28] sm:$0xff] }
 0x4ad   :  { %v2493_v33 = vpop.f32.mrf.mxu1 }
 0x4b0   :  { %v2200_v39 = vpop.f32.mrf.mxu2 }
 0x4b1   :  { %v2237_v58 = vpop.f32.mrf.mxu3 }
 0x4b2   :  { %v2238_v21 = vadd.f32 %v2237_v58, %v2200_v39  ;;  %v6568_v39 = vld [vmem:[%s9157_s28 + $0x38] sm:$0xff] }
 0x4b3   :  { %v6564_v58 = vld [vmem:[%s9157_s28 + $0x18] sm:$0xff]  ;;  %2807 = vmatpush.bf16.msrb.mxu2 %v6568_v39 }
 0x4b4   :  { %v2294_v31 = vadd.f32 %v2285_v49, %v2238_v21  ;;  %2848 = vmatpush.bf16.msra.mxu3 %v6564_v58  ;;  %v6584_v39 = vld [vmem:[%s9158_s29 + $0x38] sm:$0xff] }
 0x4b5   :  { %v6600_v58 = vld [vmem:[%s9158_s29 + $0xb8] sm:$0xff] }
 0x4c4   :  { %v2288_v40 = vpop.f32.mrf.mxu0 }
 0x4c5   :  { %v2496_v2 = vpop.f32.mrf.mxu1 }
 0x4c8   :  { %v2203_v15 = vpop.f32.mrf.mxu2 }
 0x4c9   :  { %v2240_v56 = vpop.f32.mrf.mxu3 }
 0x4ca   :  { %v2241_v46 = vadd.f32 %v2240_v56, %v2203_v15 }
 0x4cc   :  { %v2290_v63 = vpop.f32.mrf.mxu0  ;;  %v2295_v52 = vadd.f32 %v2288_v40, %v2241_v46  ;;  %v6572_v40 = vld [vmem:[%s9157_s28 + $0x58] sm:$0xff] }
 0x4cd   :  { %v7829_v19 = vpop.f32.mrf.mxu1  ;;  %2901 = vmatpush.bf16.msra.mxu0 %v6572_v40  ;;  %v6591_v40 = vld [vmem:[%s9158_s29 + $0x70] sm:$0xff] }
 0x4d0   :  { %v2205_v22 = vpop.f32.mrf.mxu2 }
 0x4d1   :  { %v2242_v48 = vpop.f32.mrf.mxu3 }
 0x4d2   :  { %v2243_v35 = vadd.f32 %v2242_v48, %v2205_v22 }
 0x4d4   :  { %v2439_v28 = vpop.f32.mrf.mxu0  ;;  %v2296_v55 = vadd.f32 %v2290_v63, %v2243_v35 }
 0x4d5   :  { %v2699_v10 = vpop.f32.mrf.mxu1 }
 0x4d8   :  { %v2335_v7 = vpop.f32.mrf.mxu2 }
 0x4d9   :  { %v2387_v44 = vpop.f32.mrf.mxu3  ;;  %v2345_v26 = vadd.f32 %v2335_v7, %v2293_v60 }
 0x4db   :  { %v2397_v43 = vadd.f32 %v2387_v44, %v2345_v26  ;;  %v6570_v26 = vld [vmem:[%s9157_s28 + $0x48] sm:$0xff] }
 0x4dc   :  { %v2441_v37 = vpop.f32.mrf.mxu0 }
 0x4dd   :  { %v2449_v8 = vadd.f32 %v2439_v28, %v2397_v43  ;;  %v2701_v41 = vpop.f32.mrf.mxu1  ;;  %v6563_v28 = vld [vmem:[%s9157_s28 + $0x10] sm:$0xff] }
 0x4de   :  { %2849 = vmatpush.bf16.msra.mxu3 %v6563_v28  ;;  %v6588_v28 = vld [vmem:[%s9158_s29 + $0x58] sm:$0xff] }
 0x4df   :  { %v2501_v47 = vadd.f32 %v2491_v3, %v2449_v8  ;;  %v6567_v3 = vld [vmem:[%s9157_s28 + $0x30] sm:$0xff] }
 0x4e0   :  { %v2337_v5 = vpop.f32.mrf.mxu2  ;;  %2808 = vmatpush.bf16.msrb.mxu2 %v6567_v3  ;;  %v6598_v3 = vld [vmem:[%s9158_s29 + $0xa8] sm:$0xff] }
 0x4e1   :  { %v2389_v20 = vpop.f32.mrf.mxu3  ;;  %v2346_v9 = vadd.f32 %v2337_v5, %v2294_v31 }
 0x4e3   :  { %v2398_v29 = vadd.f32 %v2389_v20, %v2346_v9  ;;  %v6569_v9 = vld [vmem:[%s9157_s28 + $0x40] sm:$0xff] }
 0x4e4   :  { %v2444_v30 = vpop.f32.mrf.mxu0  ;;  %2809 = vmatpush.bf16.msrb.mxu2 %v6566_v4  ;;  %v6585_v4 = vld [vmem:[%s9158_s29 + $0x40] sm:$0xff] }
 0x4e5   :  { %v2450_v0 = vadd.f32 %v2441_v37, %v2398_v29 }
 0x4e7   :  { %v2502_v42 = vadd.f32 %v2493_v33, %v2450_v0  ;;  %v6571_v33 = vld [vmem:[%s9157_s28 + $0x50] sm:$0xff] }
 0x4e8   :  { %v2340_v12 = vpop.f32.mrf.mxu2  ;;  %2902 = vmatpush.bf16.msra.mxu0 %v6571_v33  ;;  %v6587_v33 = vld [vmem:[%s9158_s29 + $0x50] sm:$0xff] }
 0x4e9   :  { %v2392_v50 = vpop.f32.mrf.mxu3  ;;  %v2347_v38 = vadd.f32 %v2340_v12, %v2295_v52  ;;  %v6562_v12 = vld [vmem:[%s9157_s28 + $0x8] sm:$0xff] }
 0x4ea   :  { %2850 = vmatpush.bf16.msra.mxu3 %v6562_v12  ;;  %v6578_v12 = vld [vmem:[%s9158_s29 + $0x8] sm:$0xff] }
 0x4eb   :  { %v2399_v24 = vadd.f32 %v2392_v50, %v2347_v38 }
 0x4ec   :  { %v7827_v6 = vpop.f32.mrf.mxu0  ;;  %2903 = vmatpush.bf16.msra.mxu0 %v6570_v26  ;;  %v6593_v26 = vld [vmem:[%s9158_s29 + $0x80] sm:$0xff] }
 0x4ed   :  { %v2451_v62 = vadd.f32 %v2444_v30, %v2399_v24  ;;  %v2704_v30 = vpop.f32.mrf.mxu1 }
 0x4ef   :  { %v2503_v63 = vadd.f32 %v2496_v2, %v2451_v62 }
 0x4f0   :  { %v2342_v17 = vpop.f32.mrf.mxu2  ;;  %2904 = vmatpush.bf16.msra.mxu0 %v6569_v9 }
 0x4f1   :  { %v2394_v14 = vpop.f32.mrf.mxu3  ;;  %v2348_v45 = vadd.f32 %v2342_v17, %v2296_v55  ;;  %v6565_v17 = vld [vmem:[%s9157_s28 + $0x20] sm:$0xff] }
 0x4f2   :  { %2810 = vmatpush.bf16.msrb.mxu2 %v6565_v17 }
 0x4f3   :  { %v2400_v15 = vadd.f32 %v2394_v14, %v2348_v45  ;;  %v6561_v14 = vld [vmem:[%s9157_s28] sm:$0xff] }
 0x4f4   :  { %v2647_v59 = vpop.f32.mrf.mxu0  ;;  %2851 = vmatpush.bf16.msra.mxu3 %v6561_v14  ;;  %3212 = vmatpush.bf16.msrb.mxu0 %v6600_v58  ;;  %v5733_v14 = vld [vmem:[%s9110_s15 + $0xf8] sm:$0xf0] }
 0x4f5   :  { %v2452_v5 = vadd.f32 %v7827_v6, %v2400_v15  ;;  %v2706_v38 = vpop.f32.mrf.mxu1  ;;  %v6590_v15 = vld [vmem:[%s9158_s29 + $0x68] sm:$0xff] }
 0x4f7   :  { %v2504_v21 = vadd.f32 %v7829_v19, %v2452_v5  ;;  %v6596_v5 = vld [vmem:[%s9158_s29 + $0x98] sm:$0xff] }
 0x4f8   :  { %v2543_v23 = vpop.f32.mrf.mxu2  ;;  %3130 = vmatpush.bf16.msrb.mxu3 %v6584_v39 }
 0x4f9   :  { %v2595_v51 = vpop.f32.mrf.mxu3  ;;  %v2553_v25 = vadd.f32 %v2543_v23, %v2501_v47 }
 0x4fb   :  { %v2605_v53 = vadd.f32 %v2595_v51, %v2553_v25  ;;  %v6575_v25 = vld [vmem:[%s9108_s13 + $0x10] sm:$0xff] }
 0x4fc   :  { %v2649_v36 = vpop.f32.mrf.mxu0 }
 0x4fd   :  { %v2657_v34 = vadd.f32 %v2647_v59, %v2605_v53 }
 0x4ff   :  { %v2709_v54 = vadd.f32 %v2699_v10, %v2657_v34  ;;  %v6576_v10 = vld [vmem:[%s9108_s13 + $0x18] sm:$0xff]  ;;  %v6574_v34 = vld [vmem:[%s9108_s13 + $0x8] sm:$0xff] }
 0x500   :  { %v2545_v32 = vpop.f32.mrf.mxu2  ;;  %2971 = vmatpush.bf16.msra.mxu2 %v6576_v10  ;;  %v5723_v10 = vld [vmem:[%s9110_s15 + $0xe0] sm:$0xf] }
 0x501   :  { %v2597_v11 = vpop.f32.mrf.mxu3  ;;  %v2717_v1 = vadd.f32 %v7834_v27, %v2709_v54  ;;  %v2554_v61 = vadd.f32 %v2545_v32, %v2502_v42 }
 0x503   :  { %vm2721_vm1 = vcmp.ge.f32.partialorder %v2717_v1, 0.0  ;;  %v2725_v57 = vmul.f32 0.01, %v2717_v1  ;;  %v2606_v18 = vadd.f32 %v2597_v11, %v2554_v61 }
 0x504   :  { %v2652_v37 = vpop.f32.mrf.mxu0  ;;  %2972 = vmatpush.bf16.msra.mxu2 %v6575_v25 }
 0x505   :  { %v2729_v13 = vsel %vm2721_vm1, %v2717_v1, %v2725_v57  ;;  %v2658_v49 = vadd.f32 %v2649_v36, %v2606_v18  ;;  %v6573_v36 = vld [vmem:[%s9108_s13] sm:$0xff] }
 0x506   :  { %2733 = vst.msk [vmem:[#allocation5] sm:$0xff] %vm236_vm0, %v2729_v13 }
 0x507   :  { %v2710_v56 = vadd.f32 %v2701_v41, %v2658_v49  ;;  %v6592_v49 = vld [vmem:[%s9158_s29 + $0x78] sm:$0xff] }
 0x508   :  { %v2548_v22 = vpop.f32.mrf.mxu2  ;;  %2973 = vmatpush.bf16.msra.mxu2 %v6574_v34  ;;  %3068 = vmatpush.bf16.msrb.mxu1 %v6592_v49  ;;  %v6613_v34 = vld [vmem:[%s9110_s15 + $0x64] sm:$0xf] }
 0x509   :  { %v2600_v48 = vpop.f32.mrf.mxu3  ;;  %v2718_v7 = vadd.f32 %v7834_v27, %v2710_v56  ;;  %v2555_v44 = vadd.f32 %v2548_v22, %v2503_v63  ;;  %v6583_v56 = vld [vmem:[%s9158_s29 + $0x30] sm:$0xff]  ;;  %v6589_v22 = vld [vmem:[%s9158_s29 + $0x60] sm:$0xff] }
 0x50a   :  { %v6599_v63 = vld [vmem:[%s9158_s29 + $0xb0] sm:$0xff]  ;;  %3131 = vmatpush.bf16.msrb.mxu3 %v6583_v56 }
 0x50b   :  { %vm2722_vm10 = vcmp.ge.f32.partialorder %v2718_v7, 0.0  ;;  %v2726_v20 = vmul.f32 0.01, %v2718_v7  ;;  %v2607_v2 = vadd.f32 %v2600_v48, %v2555_v44  ;;  %3213 = vmatpush.bf16.msrb.mxu0 %v6599_v63  ;;  %v6582_v48 = vld [vmem:[%s9158_s29 + $0x28] sm:$0xff]  ;;  %v6597_v44 = vld [vmem:[%s9158_s29 + $0xa0] sm:$0xff] }
 0x50c   :  { %v2654_v29 = vpop.f32.mrf.mxu0  ;;  %2974 = vmatpush.bf16.msra.mxu2 %v6573_v36  ;;  %3069 = vmatpush.bf16.msrb.mxu1 %v6591_v40 }
 0x50d   :  { %v2730_v50 = vsel %vm2722_vm10, %v2718_v7, %v2726_v20  ;;  %v2659_v60 = vadd.f32 %v2652_v37, %v2607_v2  ;;  %v6581_v7 = vld [vmem:[%s9158_s29 + $0x20] sm:$0xff]  ;;  %v6580_v37 = vld [vmem:[%s9158_s29 + $0x18] sm:$0xff]  ;;  %v6586_v20 = vld [vmem:[%s9158_s29 + $0x48] sm:$0xff] }
 0x50e   :  { %2734 = vst.msk [vmem:[#allocation5 + $0x8] sm:$0xff] %vm236_vm0, %v2730_v50  ;;  %3132 = vmatpush.bf16.msrb.mxu3 %v6582_v48  ;;  %v6579_v2 = vld [vmem:[%s9158_s29 + $0x10] sm:$0xff]  ;;  %v6594_v50 = vld [vmem:[%s9158_s29 + $0x88] sm:$0xff] }
 0x50f   :  { %v2711_v6 = vadd.f32 %v2704_v30, %v2659_v60  ;;  %3214 = vmatpush.bf16.msrb.mxu0 %v6598_v3  ;;  %v6595_v30 = vld [vmem:[%s9158_s29 + $0x90] sm:$0xff]  ;;  %v6577_v60 = vld [vmem:[%s9158_s29] sm:$0xff]  ;;  %s9159_s29 = sld [smem:[#allocation29_spill]] }
 0x510   :  { %v2550_v43 = vpop.f32.mrf.mxu2  ;;  %3070 = vmatpush.bf16.msrb.mxu1 %v6590_v15 }
 0x511   :  { %v2719_v31 = vadd.f32 %v7834_v27, %v2711_v6  ;;  %v2556_v8 = vadd.f32 %v2550_v43, %v2504_v21  ;;  %v2602_v19 = vpop.f32.mrf.mxu3  ;;  %v5731_v6 = vld [vmem:[%s9110_s15 + $0xf0] sm:$0xf]  ;;  %v6632_v21 = vld [vmem:[%s9110_s15 + $0xf4] sm:$0xf0]  ;;  %v6631_v43 = vld [vmem:[%s9110_s15 + $0xf4] sm:$0xf] }
 0x512   :  { %3133 = vmatpush.bf16.msrb.mxu3 %v6581_v7  ;;  %v5732_v17 = vor.u32 %v6632_v21, %v5731_v6  ;;  %v5736_v9 = vor.u32 %v6631_v43, %v5733_v14  ;;  %v5771_v21 = vld [vmem:[%s9110_s15 + $0x40] sm:$0xf]  ;;  %v6610_v43 = vld [vmem:[%s9110_s15 + $0x44] sm:$0xf0] }
 0x513   :  { %vm2723_vm11 = vcmp.ge.f32.partialorder %v2719_v31, 0.0  ;;  %v2727_v46 = vmul.f32 0.01, %v2719_v31  ;;  %v2608_v59 = vadd.f32 %v2602_v19, %v2556_v8  ;;  %3215 = vmatpush.bf16.msrb.mxu0 %v6597_v44  ;;  %v6616_v8 = vld [vmem:[%s9110_s15 + $0x74] sm:$0xf0]  ;;  %v5772_v14 = vor.u32 %v6610_v43, %v5771_v21 }
 0x514   :  { %3071 = vmatpush.bf16.msrb.mxu1 %v6589_v22  ;;  %v5741_v43 = vld [vmem:[%s9110_s15 + $0x8] sm:$0xf0] }
 0x515   :  { %v2737_v47 = vld [vmem:[#allocation5] ss:$2 sm:$0xff]  ;;  %v2741_v52 = vld [vmem:[#allocation5 + $0x1] ss:$2 sm:$0xff]  ;;  %v2731_v23 = vsel %vm2723_vm11, %v2719_v31, %v2727_v46  ;;  %v2660_v51 = vadd.f32 %v2654_v29, %v2608_v59  ;;  %v5795_v31 = vld [vmem:[%s9110_s15 + $0x70] sm:$0xf] }
 0x516   :  { %v2744_v0 = vmax.f32 %v2737_v47, %v2741_v52  ;;  %2735 = vst.msk [vmem:[#allocation5 + $0x10] sm:$0xff] %vm236_vm0, %v2731_v23  ;;  %3134 = vmatpush.bf16.msrb.mxu3 %v6580_v37  ;;  %v5796_v19 = vor.u32 %v6616_v8, %v5795_v31  ;;  %v6615_v46 = vld [vmem:[%s9110_s15 + $0x74] sm:$0xf]  ;;  %v5797_v59 = vld [vmem:[%s9110_s15 + $0x78] sm:$0xf0] }
 0x517   :  { %v2712_v53 = vadd.f32 %v2706_v38, %v2660_v51  ;;  %3216 = vmatpush.bf16.msrb.mxu0 %v6596_v5  ;;  %v5800_v29 = vor.u32 %v6615_v46, %v5797_v59  ;;  %v6630_v47 = vld [vmem:[%s9110_s15 + $0xe4] sm:$0xf0]  ;;  %v6629_v52 = vld [vmem:[%s9110_s15 + $0xe4] sm:$0xf]  ;;  %v5725_v23 = vld [vmem:[%s9110_s15 + $0xe8] sm:$0xf0] }
 0x518   :  { %2751 = vst.msk [vmem:[#allocation9 + $0x1] sm:$0xff] %vm236_vm0, %v2744_v0  ;;  %3072 = vmatpush.bf16.msrb.mxu1 %v6588_v28  ;;  %v6795_v25 = vld [vmem:[%s9159_s29] ss:$0 sm:$0xff]  ;;  %v5724_v38 = vor.u32 %v6630_v47, %v5723_v10  ;;  %v5773_v31 = vld [vmem:[%s9110_s15 + $0x48] sm:$0xf0] }
 0x519   :  { %v2720_v35 = vadd.f32 %v7834_v27, %v2712_v53  ;;  %v5787_v53 = vld [vmem:[%s9110_s15 + $0x60] sm:$0xf]  ;;  %v6623_v46 = vld [vmem:[%s9110_s15 + $0xb4] sm:$0xf]  ;;  %v5701_v10 = vld [vmem:[%s9110_s15 + $0xb8] sm:$0xf0] }
 0x51a   :  { %3135 = vmatpush.bf16.msrb.mxu3 %v6579_v2  ;;  %v5691_v47 = vld [vmem:[%s9110_s15 + $0xa0] sm:$0xf] }
 0x51b   :  { %vm2724_vm4 = vcmp.ge.f32.partialorder %v2720_v35, 0.0  ;;  %v2728_v24 = vmul.f32 0.01, %v2720_v35  ;;  %3217 = vmatpush.bf16.msrb.mxu0 %v6595_v30 }
 0x51c   :  { %3073 = vmatpush.bf16.msrb.mxu1 %v6587_v33 }
 0x51d   :  { %v2732_v54 = vsel %vm2724_vm4, %v2720_v35, %v2728_v24  ;;  %v6614_v35 = vld [vmem:[%s9110_s15 + $0x64] sm:$0xf0] }
 0x51e   :  { %2736 = vst.msk [vmem:[#allocation5 + $0x18] sm:$0xff] %vm236_vm0, %v2732_v54  ;;  %3136 = vmatpush.bf16.msrb.mxu3 %v6578_v12  ;;  %v5788_v36 = vor.u32 %v6614_v35, %v5787_v53  ;;  %v6626_v12 = vld [vmem:[%s9110_s15 + $0xc4] sm:$0xf0]  ;;  %v6608_v53 = vld [vmem:[%s9110_s15 + $0x34] sm:$0xf0] }
 0x51f   :  { %v2764_v27 = vld [vmem:[#allocation9 + $0x1] sm:$0xff]  ;;  %3218 = vmatpush.bf16.msrb.mxu0 %v6594_v50  ;;  %v6625_v50 = vld [vmem:[%s9110_s15 + $0xc4] sm:$0xf] }
 0x520   :  { %v2753_v55 = vld [vmem:[#allocation9] sm:$0xff]  ;;  %3074 = vmatpush.bf16.msrb.mxu1 %v6586_v20 }
 0x521   :  { %v2858_v1 = vld [vmem:[#allocation9 + $0x2] sm:$0xff] }
 0x522   :  { %3137 = vmatpush.bf16.msrb.mxu3 %v6577_v60  ;;  %v6607_v35 = vld [vmem:[%s9110_s15 + $0x34] sm:$0xf] }
 0x523   :  { %3219 = vmatpush.bf16.msrb.mxu0 %v6593_v26  ;;  %v5709_v26 = vld [vmem:[%s9110_s15 + $0xc8] sm:$0xf0] }
 0x524   :  { %3075 = vmatpush.bf16.msrb.mxu1 %v6585_v4  ;;  %v5707_v4 = vld [vmem:[%s9110_s15 + $0xc0] sm:$0xf]  ;;  %v5712_v6 = vor.u32 %v6625_v50, %v5709_v26  ;;  %v6602_v26 = vld [vmem:[%s9110_s15 + $0x4] sm:$0xf0] }
 0x525   :  { %v2739_v42 = vld [vmem:[#allocation5 + $0x10] ss:$2 sm:$0xff]  ;;  %v2743_v32 = vld [vmem:[#allocation5 + $0x11] ss:$2 sm:$0xff]  ;;  %v5708_v60 = vor.u32 %v6626_v12, %v5707_v4  ;;  %v6645_v4 = vld [vmem:[%s9110_s15 + $0x164] sm:$0xf] }
 0x526   :  { %v2745_v11 = vmax.f32 %v2739_v42, %v2743_v32  ;;  %v5789_v42 = vld [vmem:[%s9110_s15 + $0x68] sm:$0xf0]  ;;  %v5715_v32 = vld [vmem:[%s9110_s15 + $0xd0] sm:$0xf] }
 0x527   :  { %v5869_v12 = vld [vmem:[%s9110_s15 + $0x168] sm:$0xf0] }
 0x528   :  { %2752 = vst.msk [vmem:[#allocation9 + $0x11] sm:$0xff] %vm236_vm0, %v2745_v11  ;;  %v2927_v13 = vpack.c.bf16 %v2745_v11, %v2744_v0  ;;  %3377 = vmatpush.bf16.msra.mxu1 %v5736_v9  ;;  %v5728_v0 = vor.u32 %v6629_v52, %v5725_v23  ;;  %v6628_v11 = vld [vmem:[%s9110_s15 + $0xd4] sm:$0xf0]  ;;  %v5699_v9 = vld [vmem:[%s9110_s15 + $0xb0] sm:$0xf]  ;;  %v5872_v50 = vor.u32 %v6645_v4, %v5869_v12 }
 0x529   :  { %v6622_v52 = vld [vmem:[%s9110_s15 + $0xa4] sm:$0xf0]  ;;  %v6621_v23 = vld [vmem:[%s9110_s15 + $0xa4] sm:$0xf] }
 0x52c   :  { %3378 = vmatpush.bf16.msra.mxu1 %v5728_v0  ;;  %v5763_v0 = vld [vmem:[%s9110_s15 + $0x30] sm:$0xf] }
 0x52f   :  { %v2765_v61 = vld [vmem:[#allocation9 + $0x11] sm:$0xff] }
 0x530   :  { %v2754_v41 = vld [vmem:[#allocation9 + $0x10] sm:$0xff]  ;;  %v2766_v45 = vpack.c.bf16 %v2765_v61, %v2764_v27  ;;  %v5717_v61 = vld [vmem:[%s9110_s15 + $0xd8] sm:$0xf0] }
 0x531   :  { %v2859_v62 = vld [vmem:[#allocation9 + $0x12] sm:$0xff]  ;;  %v2755_v57 = vpack.c.bf16 %v2754_v41, %v2753_v55  ;;  %v5792_v55 = vor.u32 %v6613_v34, %v5789_v42  ;;  %v5779_v41 = vld [vmem:[%s9110_s15 + $0x50] sm:$0xf]  ;;  %v5764_v34 = vor.u32 %v6608_v53, %v5763_v0  ;;  %v5861_v53 = vld [vmem:[%s9110_s15 + $0x158] sm:$0xf0] }
 0x532   :  { %v2860_v18 = vpack.c.bf16 %v2859_v62, %v2858_v1  ;;  %5469 = vmatmul.msk.bf16.vlgmr.msrb.gmra.mxu2 %vm236_vm0, %v2766_v45  ;;  %v6627_v1 = vld [vmem:[%s9110_s15 + $0xd4] sm:$0xf]  ;;  %v6612_v62 = vld [vmem:[%s9110_s15 + $0x54] sm:$0xf0] }
 0x533   :  { %5486 = vmatmul.msk.bf16.vlgmr.msra.gmra.mxu3 %vm236_vm0, %v2755_v57  ;;  %3363 = vmatpush.bf16.msrb.mxu2 %v5732_v17  ;;  %v6611_v45 = vld [vmem:[%s9110_s15 + $0x54] sm:$0xf]  ;;  %v5781_v57 = vld [vmem:[%s9110_s15 + $0x58] sm:$0xf0]  ;;  %v5720_v49 = vor.u32 %v6627_v1, %v5717_v61  ;;  %v5780_v39 = vor.u32 %v6612_v62, %v5779_v41  ;;  %v6609_v17 = vld [vmem:[%s9110_s15 + $0x44] sm:$0xf] }
 0x534   :  { %5511 = vmatmul.msk.bf16.vlgmr.msra.gmra.mxu0 %vm236_vm0, %v2860_v18  ;;  %3471 = vmatpush.bf16.msra.mxu3 %v5796_v19  ;;  %v5784_v58 = vor.u32 %v6611_v45, %v5781_v57  ;;  %v5776_v8 = vor.u32 %v6609_v17, %v5773_v31  ;;  %v6624_v19 = vld [vmem:[%s9110_s15 + $0xb4] sm:$0xf0]  ;;  %v5755_v1 = vld [vmem:[%s9110_s15 + $0x20] sm:$0xf]  ;;  %v6606_v61 = vld [vmem:[%s9110_s15 + $0x24] sm:$0xf0] }
 0x535   :  { %3485 = vmatpush.bf16.msra.mxu0 %v5800_v29  ;;  %3379 = vmatpush.bf16.msra.mxu1 %v5720_v49  ;;  %v5700_v59 = vor.u32 %v6624_v19, %v5699_v9  ;;  %v5704_v29 = vor.u32 %v6623_v46, %v5701_v10  ;;  %v6605_v41 = vld [vmem:[%s9110_s15 + $0x24] sm:$0xf]  ;;  %v5756_v62 = vor.u32 %v6606_v61, %v5755_v1  ;;  %v5757_v45 = vld [vmem:[%s9110_s15 + $0x28] sm:$0xf0]  ;;  %v5675_v57 = vld [vmem:[%s9110_s15 + $0x80] sm:$0xf] }
 0x536   :  { %v5939_v17 = vld [vmem:[%s9114_s19 + $0x70] sm:$0xf]  ;;  %v6663_v9 = vld [vmem:[%s9114_s19 + $0x74] sm:$0xf]  ;;  %v5941_v19 = vld [vmem:[%s9114_s19 + $0x78] sm:$0xf0] }
 0x537   :  { %3364 = vmatpush.bf16.msrb.mxu2 %v5724_v38  ;;  %v5859_v46 = vld [vmem:[%s9110_s15 + $0x150] sm:$0xf]  ;;  %v5931_v10 = vld [vmem:[%s9114_s19 + $0x60] sm:$0xf] }
 0x538   :  { %3472 = vmatpush.bf16.msra.mxu3 %v5788_v36  ;;  %v6620_v36 = vld [vmem:[%s9110_s15 + $0x94] sm:$0xf0] }
 0x539   :  { %3486 = vmatpush.bf16.msra.mxu0 %v5792_v55  ;;  %3380 = vmatpush.bf16.msra.mxu1 %v5712_v6  ;;  %v6601_v6 = vld [vmem:[%s9110_s15 + $0x4] sm:$0xf] }
 0x53a   :  { %v5744_v31 = vor.u32 %v6601_v6, %v5741_v43  ;;  %v5899_v6 = vld [vmem:[%s9114_s19 + $0x20] sm:$0xf] }
 0x53c   :  { %3473 = vmatpush.bf16.msra.mxu3 %v5780_v39  ;;  %v6617_v39 = vld [vmem:[%s9110_s15 + $0x84] sm:$0xf] }
 0x53d   :  { %3487 = vmatpush.bf16.msra.mxu0 %v5784_v58  ;;  %3381 = vmatpush.bf16.msra.mxu1 %v5704_v29  ;;  %v5677_v58 = vld [vmem:[%s9110_s15 + $0x88] sm:$0xf0]  ;;  %v6662_v29 = vld [vmem:[%s9114_s19 + $0x64] sm:$0xf0] }
 0x540   :  { %3474 = vmatpush.bf16.msra.mxu3 %v5772_v14  ;;  %v6664_v14 = vld [vmem:[%s9114_s19 + $0x74] sm:$0xf0] }
 0x541   :  { %3488 = vmatpush.bf16.msra.mxu0 %v5776_v8  ;;  %v5940_v8 = vor.u32 %v6664_v14, %v5939_v17  ;;  %v5827_v14 = vld [vmem:[%s9110_s15 + $0x110] sm:$0xf] }
 0x542   :  { %5528 = vmatmul.msk.bf16.vlgmr.msra.gmra.mxu2 %vm236_vm0, %v2927_v13  ;;  %v5716_v13 = vor.u32 %v6628_v11, %v5715_v32  ;;  %v6619_v11 = vld [vmem:[%s9110_s15 + $0x94] sm:$0xf] }
 0x544   :  { %3365 = vmatpush.bf16.msrb.mxu2 %v5716_v13  ;;  %3475 = vmatpush.bf16.msra.mxu3 %v5764_v34  ;;  %v5760_v13 = vor.u32 %v6605_v41, %v5757_v45  ;;  %v6660_v34 = vld [vmem:[%s9114_s19 + $0x54] sm:$0xf0]  ;;  %v5915_v41 = vld [vmem:[%s9114_s19 + $0x40] sm:$0xf] }
 0x548   :  { %3366 = vmatpush.bf16.msrb.mxu2 %v5708_v60  ;;  %3476 = vmatpush.bf16.msra.mxu3 %v5756_v62  ;;  %v5739_v60 = vld [vmem:[%s9110_s15] sm:$0xf]  ;;  %v6658_v62 = vld [vmem:[%s9114_s19 + $0x44] sm:$0xf0] }
 0x549   :  { %v5740_v21 = vor.u32 %v6602_v26, %v5739_v60 }
 0x54c   :  { %3367 = vmatpush.bf16.msrb.mxu2 %v5700_v59  ;;  %v5944_v59 = vor.u32 %v6663_v9, %v5941_v19  ;;  %v6653_v9 = vld [vmem:[%s9114_s19 + $0x24] sm:$0xf]  ;;  %v5901_v19 = vld [vmem:[%s9114_s19 + $0x28] sm:$0xf0] }
 0x5b1   :  { %v2906_v51 = vpop.f32.mrf.mxu0 }
 0x5b5   :  { %v2812_v24 = vpop.f32.mrf.mxu2 }
 0x5b6   :  { %v2853_v54 = vpop.f32.mrf.mxu3 }
 0x5b7   :  { %v2854_v27 = vadd.f32 %v2853_v54, %v2812_v24  ;;  %v5765_v24 = vld [vmem:[%s9110_s15 + $0x38] sm:$0xf0]  ;;  %v5683_v54 = vld [vmem:[%s9110_s15 + $0x90] sm:$0xf] }
 0x5b8   :  { %v5768_v42 = vor.u32 %v6607_v35, %v5765_v24  ;;  %v5684_v32 = vor.u32 %v6620_v36, %v5683_v54  ;;  %v5923_v35 = vld [vmem:[%s9114_s19 + $0x50] sm:$0xf]  ;;  %v6659_v54 = vld [vmem:[%s9114_s19 + $0x54] sm:$0xf]  ;;  %v5925_v36 = vld [vmem:[%s9114_s19 + $0x58] sm:$0xf0] }
 0x5b9   :  { %v2911_v18 = vadd.f32 %v2906_v51, %v2854_v27  ;;  %v2908_v48 = vpop.f32.mrf.mxu0  ;;  %v5692_v51 = vor.u32 %v6622_v52, %v5691_v47  ;;  %v5685_v27 = vld [vmem:[%s9110_s15 + $0x98] sm:$0xf0]  ;;  %v6661_v47 = vld [vmem:[%s9114_s19 + $0x64] sm:$0xf]  ;;  %v5932_v52 = vor.u32 %v6662_v29, %v5931_v10  ;;  %v5928_v45 = vor.u32 %v6659_v54, %v5925_v36 }
 0x5ba   :  { %v5688_v55 = vor.u32 %v6619_v11, %v5685_v27  ;;  %3489 = vmatpush.bf16.msra.mxu0 %v5768_v42  ;;  %v5851_v42 = vld [vmem:[%s9110_s15 + $0x140] sm:$0xf]  ;;  %v6641_v11 = vld [vmem:[%s9110_s15 + $0x144] sm:$0xf]  ;;  %v5853_v27 = vld [vmem:[%s9110_s15 + $0x148] sm:$0xf0] }
 0x5bb   :  { %v2917_v40 = vadd.f32 %v6795_v25, %v2911_v18  ;;  %3368 = vmatpush.bf16.msrb.mxu2 %v5692_v51  ;;  %v6618_v18 = vld [vmem:[%s9110_s15 + $0x84] sm:$0xf0]  ;;  %v6644_v51 = vld [vmem:[%s9110_s15 + $0x154] sm:$0xf0]  ;;  %v5856_v61 = vor.u32 %v6641_v11, %v5853_v27  ;;  %v5893_v54 = vld [vmem:[%s9114_s19 + $0x18] sm:$0xf0] }
 0x5bc   :  { %v5676_v49 = vor.u32 %v6618_v18, %v5675_v57  ;;  %v5860_v0 = vor.u32 %v6644_v51, %v5859_v46  ;;  %v6657_v57 = vld [vmem:[%s9114_s19 + $0x44] sm:$0xf]  ;;  %v5843_v18 = vld [vmem:[%s9110_s15 + $0x130] sm:$0xf]  ;;  %v5829_v46 = vld [vmem:[%s9110_s15 + $0x118] sm:$0xf0] }
 0x5bd   :  { %v2919_v15 = vmax.f32 %v2917_v40, 0.0  ;;  %v2814_v56 = vpop.f32.mrf.mxu2  ;;  %v5875_v40 = vld [vmem:[%s9110_s15 + $0x170] sm:$0xf]  ;;  %v6634_v51 = vld [vmem:[%s9110_s15 + $0x104] sm:$0xf0] }
 0x5be   :  { %v2855_v63 = vpop.f32.mrf.mxu3  ;;  %3490 = vmatpush.bf16.msra.mxu0 %v5760_v13  ;;  %v6640_v13 = vld [vmem:[%s9110_s15 + $0x134] sm:$0xf0] }
 0x5bf   :  { %2925 = vst [vmem:[#allocation10 + $0x1] sm:$0xff] %v2919_v15  ;;  %v2856_v22 = vadd.f32 %v2855_v63, %v2814_v56  ;;  %3369 = vmatpush.bf16.msrb.mxu2 %v5684_v32  ;;  %v6648_v56 = vld [vmem:[%s9110_s15 + $0x174] sm:$0xf0]  ;;  %v6647_v63 = vld [vmem:[%s9110_s15 + $0x174] sm:$0xf] }
 0x5c0   :  { %v6642_v32 = vld [vmem:[%s9110_s15 + $0x144] sm:$0xf0] }
 0x5c1   :  { %v2912_v3 = vadd.f32 %v2908_v48, %v2856_v22  ;;  %v5877_v22 = vld [vmem:[%s9110_s15 + $0x178] sm:$0xf0]  ;;  %v5747_v48 = vld [vmem:[%s9110_s15 + $0x10] sm:$0xf]  ;;  %v5852_v1 = vor.u32 %v6642_v32, %v5851_v42 }
 0x5c3   :  { %v2918_v28 = vadd.f32 %v6795_v25, %v2912_v3  ;;  %v5693_v25 = vld [vmem:[%s9110_s15 + $0xa8] sm:$0xf0]  ;;  %v6604_v3 = vld [vmem:[%s9110_s15 + $0x14] sm:$0xf0]  ;;  %3370 = vmatpush.bf16.msrb.mxu2 %v5676_v49 }
 0x5c4   :  { %v5696_v38 = vor.u32 %v6621_v23, %v5693_v25  ;;  %v5933_v23 = vld [vmem:[%s9114_s19 + $0x68] sm:$0xf0]  ;;  %v6643_v25 = vld [vmem:[%s9110_s15 + $0x154] sm:$0xf] }
 0x5c5   :  { %v2920_v7 = vmax.f32 %v2918_v28, 0.0  ;;  %v6603_v28 = vld [vmem:[%s9110_s15 + $0x14] sm:$0xf]  ;;  %v5864_v24 = vor.u32 %v6643_v25, %v5861_v53  ;;  %v5917_v49 = vld [vmem:[%s9114_s19 + $0x48] sm:$0xf0] }
 0x5c6   :  { %v2981_v33 = vld [vmem:[#allocation10] sm:$0xff]  ;;  %3382 = vmatpush.bf16.msra.mxu1 %v5696_v38  ;;  %v5936_v38 = vor.u32 %v6661_v47, %v5933_v23  ;;  %v5819_v23 = vld [vmem:[%s9110_s15 + $0x100] sm:$0xf]  ;;  %v6652_v53 = vld [vmem:[%s9114_s19 + $0x14] sm:$0xf0] }
 0x5c7   :  { %2926 = vst [vmem:[#allocation10 + $0x11] sm:$0xff] %v2920_v7  ;;  %v3002_v44 = vpack.c.bf16 %v2920_v7, %v2919_v15  ;;  %v3144_v5 = vld [vmem:[#allocation10 + $0x2] sm:$0xff]  ;;  %v5680_v15 = vor.u32 %v6617_v39, %v5677_v58  ;;  %v5876_v7 = vor.u32 %v6648_v56, %v5875_v40  ;;  %v5845_v58 = vld [vmem:[%s9110_s15 + $0x138] sm:$0xf0]  ;;  %v5844_v40 = vor.u32 %v6640_v13, %v5843_v18  ;;  %v6649_v13 = vld [vmem:[%s9114_s19 + $0x4] sm:$0xf] }
 0x5c8   :  { %v6639_v39 = vld [vmem:[%s9110_s15 + $0x134] sm:$0xf]  ;;  %v5820_v42 = vor.u32 %v6634_v51, %v5819_v23  ;;  %v6085_v51 = vld [vmem:[%s9112_s17 + $0x1d8] sm:$0xf0] }
 0x5c9   :  { %3076 = vmatmul.bf16.vlgmr.msrb.gmra.mxu1 %v3002_v44  ;;  %v5880_v44 = vor.u32 %v6647_v63, %v5877_v22  ;;  %3599 = vmatpush.bf16.msra.mxu2 %v5876_v7  ;;  %v5848_v56 = vor.u32 %v6639_v39, %v5845_v58  ;;  %v5920_v63 = vor.u32 %v6657_v57, %v5917_v49  ;;  %v5907_v22 = vld [vmem:[%s9114_s19 + $0x30] sm:$0xf]  ;;  %v5909_v7 = vld [vmem:[%s9114_s19 + $0x38] sm:$0xf0]  ;;  %v5885_v49 = vld [vmem:[%s9114_s19 + $0x8] sm:$0xf0] }
 0x5ca   :  { %3383 = vmatpush.bf16.msra.mxu1 %v5688_v55  ;;  %v5924_v55 = vor.u32 %v6660_v34, %v5923_v35  ;;  %v6633_v35 = vld [vmem:[%s9110_s15 + $0x104] sm:$0xf]  ;;  %v5821_v34 = vld [vmem:[%s9110_s15 + $0x108] sm:$0xf0]  ;;  %v6723_v23 = vld [vmem:[%s9112_s17 + $0x1d4] sm:$0xf] }
 0x5ce   :  { %v2982_v37 = vld [vmem:[#allocation10 + $0x10] sm:$0xff]  ;;  %3384 = vmatpush.bf16.msra.mxu1 %v5680_v15  ;;  %v5916_v15 = vor.u32 %v6658_v62, %v5915_v41 }
 0x5cf   :  { %v3145_v20 = vld [vmem:[#allocation10 + $0x12] sm:$0xff]  ;;  %v2983_v2 = vpack.c.bf16 %v2982_v37, %v2981_v33  ;;  %v5748_v33 = vor.u32 %v6604_v3, %v5747_v48  ;;  %v5749_v37 = vld [vmem:[%s9110_s15 + $0x18] sm:$0xf0]  ;;  %v6656_v48 = vld [vmem:[%s9114_s19 + $0x34] sm:$0xf0] }
 0x5d0   :  { %v3146_v30 = vpack.c.bf16 %v3145_v20, %v3144_v5  ;;  %v5867_v5 = vld [vmem:[%s9110_s15 + $0x160] sm:$0xf]  ;;  %v6646_v20 = vld [vmem:[%s9110_s15 + $0x164] sm:$0xf0]  ;;  %v6655_v3 = vld [vmem:[%s9114_s19 + $0x34] sm:$0xf]  ;;  %v5908_v60 = vor.u32 %v6656_v48, %v5907_v22 }
 0x5d1   :  { %3138 = vmatmul.bf16.vlgmr.msrb.gmra.mxu3 %v2983_v2  ;;  %v5752_v2 = vor.u32 %v6603_v28, %v5749_v37  ;;  %v8300_v37 = vld [vmem:[%s9109_s14] ss:$0 sm:$0xff]  ;;  %v5912_v17 = vor.u32 %v6655_v3, %v5909_v7  ;;  %v6099_v22 = vld [vmem:[%s9112_s17 + $0x1f0] sm:$0xf]  ;;  %v6728_v48 = vld [vmem:[%s9112_s17 + $0x1f4] sm:$0xf0] }
 0x5d2   :  { %3220 = vmatmul.bf16.vlgmr.msrb.gmra.mxu0 %v3146_v30  ;;  %3613 = vmatpush.bf16.msrb.mxu1 %v5880_v44  ;;  %v5868_v30 = vor.u32 %v6646_v20, %v5867_v5  ;;  %v5835_v44 = vld [vmem:[%s9110_s15 + $0x120] sm:$0xf]  ;;  %v2976_v5 = vpop.f32.mrf.mxu2  ;;  %v6035_v3 = vld [vmem:[%s9112_s17 + $0x170] sm:$0xf] }
 0x5d3   :  { %3477 = vmatpush.bf16.msra.mxu3 %v5748_v33  ;;  %3491 = vmatpush.bf16.msra.mxu0 %v5752_v2  ;;  %v6638_v33 = vld [vmem:[%s9110_s15 + $0x124] sm:$0xf0]  ;;  %v6637_v2 = vld [vmem:[%s9110_s15 + $0x124] sm:$0xf]  ;;  %v2977_v25 = vadd.f32 %v8300_v37, %v2976_v5  ;;  %v5883_v62 = vld [vmem:[%s9114_s19] sm:$0xf] }
 0x5d4   :  { %3600 = vmatpush.bf16.msra.mxu2 %v5868_v30  ;;  %v5836_v20 = vor.u32 %v6638_v33, %v5835_v44  ;;  %v5837_v30 = vld [vmem:[%s9110_s15 + $0x128] sm:$0xf0]  ;;  %v6100_v44 = vor.u32 %v6728_v48, %v6099_v22  ;;  %v6091_v33 = vld [vmem:[%s9112_s17 + $0x1e0] sm:$0xf]  ;;  %v6718_v22 = vld [vmem:[%s9112_s17 + $0x1a4] sm:$0xf0] }
 0x5d5   :  { %v5840_v26 = vor.u32 %v6637_v2, %v5837_v30  ;;  %v6027_v2 = vld [vmem:[%s9112_s17 + $0x160] sm:$0xf]  ;;  %v6710_v30 = vld [vmem:[%s9112_s17 + $0x164] sm:$0xf0]  ;;  %v6717_v48 = vld [vmem:[%s9112_s17 + $0x1a4] sm:$0xf] }
 0x5d6   :  { %3614 = vmatpush.bf16.msrb.mxu1 %v5872_v50  ;;  %v6797_v50 = vld [vmem:[%s9107_s12] ss:$0 sm:$0xff] }
 0x5d7   :  { %3478 = vmatpush.bf16.msra.mxu3 %v5740_v21  ;;  %3492 = vmatpush.bf16.msra.mxu0 %v5744_v31  ;;  %v6654_v21 = vld [vmem:[%s9114_s19 + $0x24] sm:$0xf0]  ;;  %v6636_v31 = vld [vmem:[%s9110_s15 + $0x114] sm:$0xf0] }
 0x5d8   :  { %3601 = vmatpush.bf16.msra.mxu2 %v5860_v0  ;;  %v5828_v10 = vor.u32 %v6636_v31, %v5827_v14  ;;  %v5900_v29 = vor.u32 %v6654_v21, %v5899_v6  ;;  %v5904_v0 = vor.u32 %v6653_v9, %v5901_v19  ;;  %v6037_v6 = vld [vmem:[%s9112_s17 + $0x178] sm:$0xf0]  ;;  %v6083_v21 = vld [vmem:[%s9112_s17 + $0x1d0] sm:$0xf] }
 0x5da   :  { %3615 = vmatpush.bf16.msrb.mxu1 %v5864_v24  ;;  %v6651_v24 = vld [vmem:[%s9114_s19 + $0x14] sm:$0xf]  ;;  %v2978_v57 = vpop.f32.mrf.mxu2 }
 0x5db   :  { %3776 = vmatpush.bf16.msrb.mxu3 %v5940_v8  ;;  %3790 = vmatpush.bf16.msrb.mxu0 %v5944_v59  ;;  %v6635_v8 = vld [vmem:[%s9110_s15 + $0x114] sm:$0xf]  ;;  %v5896_v41 = vor.u32 %v6651_v24, %v5893_v54  ;;  %v6721_v24 = vld [vmem:[%s9112_s17 + $0x1c4] sm:$0xf] }
 0x5dc   :  { %3602 = vmatpush.bf16.msra.mxu2 %v5852_v1  ;;  %v5832_v47 = vor.u32 %v6635_v8, %v5829_v46  ;;  %v6725_v8 = vld [vmem:[%s9112_s17 + $0x1e4] sm:$0xf]  ;;  %v6093_v46 = vld [vmem:[%s9112_s17 + $0x1e8] sm:$0xf0] }
 0x5de   :  { %3616 = vmatpush.bf16.msrb.mxu1 %v5856_v61 }
 0x5df   :  { %3777 = vmatpush.bf16.msrb.mxu3 %v5932_v52  ;;  %3791 = vmatpush.bf16.msrb.mxu0 %v5936_v38  ;;  %v5891_v52 = vld [vmem:[%s9114_s19 + $0x10] sm:$0xf] }
 0x5e0   :  { %3603 = vmatpush.bf16.msra.mxu2 %v5844_v40  ;;  %v5892_v27 = vor.u32 %v6652_v53, %v5891_v52  ;;  %v2979_v40 = vadd.f32 %v8300_v37, %v2978_v57 }
 0x5e2   :  { %3617 = vmatpush.bf16.msrb.mxu1 %v5848_v56  ;;  %v5888_v56 = vor.u32 %v6649_v13, %v5885_v49  ;;  %v6011_v49 = vld [vmem:[%s9112_s17 + $0x140] sm:$0xf] }
 0x5e3   :  { %3778 = vmatpush.bf16.msrb.mxu3 %v5924_v55  ;;  %3792 = vmatpush.bf16.msrb.mxu0 %v5928_v45  ;;  %v5824_v55 = vor.u32 %v6633_v35, %v5821_v34  ;;  %v6650_v45 = vld [vmem:[%s9114_s19 + $0x4] sm:$0xf0]  ;;  %v6075_v35 = vld [vmem:[%s9112_s17 + $0x1c0] sm:$0xf] }
 0x5e4   :  { %3604 = vmatpush.bf16.msra.mxu2 %v5836_v20  ;;  %v5884_v58 = vor.u32 %v6650_v45, %v5883_v62  ;;  %v6726_v20 = vld [vmem:[%s9112_s17 + $0x1e4] sm:$0xf0]  ;;  %v6720_v62 = vld [vmem:[%s9112_s17 + $0x1b4] sm:$0xf0]  ;;  %v6719_v45 = vld [vmem:[%s9112_s17 + $0x1b4] sm:$0xf] }
 0x5e5   :  { %v6722_v34 = vld [vmem:[%s9112_s17 + $0x1c4] sm:$0xf0] }
 0x5e6   :  { %3618 = vmatpush.bf16.msrb.mxu1 %v5840_v26  ;;  %v6711_v26 = vld [vmem:[%s9112_s17 + $0x174] sm:$0xf]  ;;  %v6076_v54 = vor.u32 %v6722_v34, %v6075_v35  ;;  %v5989_v34 = vld [vmem:[%s9112_s17 + $0x118] sm:$0xf0] }
 0x5e7   :  { %3779 = vmatpush.bf16.msrb.mxu3 %v5916_v15  ;;  %3793 = vmatpush.bf16.msrb.mxu0 %v5920_v63  ;;  %v6040_v9 = vor.u32 %v6711_v26, %v6037_v6  ;;  %v5995_v6 = vld [vmem:[%s9112_s17 + $0x120] sm:$0xf]  ;;  %v6699_v35 = vld [vmem:[%s9112_s17 + $0x114] sm:$0xf] }
 0x5e8   :  { %3605 = vmatpush.bf16.msra.mxu2 %v5828_v10  ;;  %v6709_v10 = vld [vmem:[%s9112_s17 + $0x164] sm:$0xf] }
 0x5ea   :  { %3619 = vmatpush.bf16.msrb.mxu1 %v5832_v47  ;;  %v6096_v47 = vor.u32 %v6725_v8, %v6093_v46  ;;  %v6043_v8 = vld [vmem:[%s9112_s17 + $0x180] sm:$0xf] }
 0x5eb   :  { %3780 = vmatpush.bf16.msrb.mxu3 %v5908_v60  ;;  %3794 = vmatpush.bf16.msrb.mxu0 %v5912_v17  ;;  %v6101_v60 = vld [vmem:[%s9112_s17 + $0x1f8] sm:$0xf0] }
 0x5ec   :  { %3606 = vmatpush.bf16.msra.mxu2 %v5820_v42 }
 0x5ee   :  { %3620 = vmatpush.bf16.msrb.mxu1 %v5824_v55 }
 0x5ef   :  { %3781 = vmatpush.bf16.msrb.mxu3 %v5900_v29  ;;  %3795 = vmatpush.bf16.msrb.mxu0 %v5904_v0  ;;  %v6029_v29 = vld [vmem:[%s9112_s17 + $0x168] sm:$0xf0]  ;;  %v6088_v0 = vor.u32 %v6723_v23, %v6085_v51  ;;  %v6695_v23 = vld [vmem:[%s9112_s17 + $0xf4] sm:$0xf]  ;;  %v6229_v51 = vld [vmem:[%s9112_s17 + $0xf8] sm:$0xf0] }
 0x5f0   :  { %v6032_v52 = vor.u32 %v6709_v10, %v6029_v29  ;;  %v6227_v10 = vld [vmem:[%s9112_s17 + $0xf0] sm:$0xf]  ;;  %v6696_v29 = vld [vmem:[%s9112_s17 + $0xf4] sm:$0xf0] }
 0x5f3   :  { %3782 = vmatpush.bf16.msrb.mxu3 %v5892_v27  ;;  %3796 = vmatpush.bf16.msrb.mxu0 %v5896_v41  ;;  %v6707_v27 = vld [vmem:[%s9112_s17 + $0x154] sm:$0xf]  ;;  %v6067_v41 = vld [vmem:[%s9112_s17 + $0x1b0] sm:$0xf] }
 0x5f4   :  { %v6068_v57 = vor.u32 %v6720_v62, %v6067_v41  ;;  %v6697_v41 = vld [vmem:[%s9112_s17 + $0x104] sm:$0xf]  ;;  %v5981_v62 = vld [vmem:[%s9112_s17 + $0x108] sm:$0xf0] }
 0x5f7   :  { %3783 = vmatpush.bf16.msrb.mxu3 %v5884_v58  ;;  %3797 = vmatpush.bf16.msrb.mxu0 %v5888_v56  ;;  %v6705_v58 = vld [vmem:[%s9112_s17 + $0x144] sm:$0xf] }
 0x646   :  { %v3077_v28 = vpop.f32.mrf.mxu1 }
 0x64e   :  { %v3079_v32 = vpop.f32.mrf.mxu1 }
 0x64f   :  { %v3221_v4 = vpop.f32.mrf.mxu0 }
 0x654   :  { %v3139_v12 = vpop.f32.mrf.mxu3 }
 0x655   :  { %v3140_v43 = vadd.f32 %v3139_v12, %v3077_v28  ;;  %v6712_v28 = vld [vmem:[%s9112_s17 + $0x174] sm:$0xf0]  ;;  %v6092_v12 = vor.u32 %v6726_v20, %v6091_v33  ;;  %v6005_v20 = vld [vmem:[%s9112_s17 + $0x138] sm:$0xf0] }
 0x656   :  { %v6036_v37 = vor.u32 %v6712_v28, %v6035_v3  ;;  %v6061_v28 = vld [vmem:[%s9112_s17 + $0x1a8] sm:$0xf0]  ;;  %v6704_v33 = vld [vmem:[%s9112_s17 + $0x134] sm:$0xf0] }
 0x657   :  { %v3226_v59 = vadd.f32 %v3221_v4, %v3140_v43  ;;  %v3223_v18 = vpop.f32.mrf.mxu0  ;;  %v6727_v4 = vld [vmem:[%s9112_s17 + $0x1f4] sm:$0xf]  ;;  %v6724_v43 = vld [vmem:[%s9112_s17 + $0x1d4] sm:$0xf0] }
 0x658   :  { %v6104_v31 = vor.u32 %v6727_v4, %v6101_v60  ;;  %v6716_v4 = vld [vmem:[%s9112_s17 + $0x194] sm:$0xf0]  ;;  %v6053_v60 = vld [vmem:[%s9112_s17 + $0x198] sm:$0xf0] }
 0x659   :  { %v3232_v38 = vadd.f32 %v6797_v50, %v3226_v59  ;;  %v6084_v59 = vor.u32 %v6724_v43, %v6083_v21  ;;  %v6702_v21 = vld [vmem:[%s9112_s17 + $0x124] sm:$0xf0]  ;;  %v6701_v43 = vld [vmem:[%s9112_s17 + $0x124] sm:$0xf] }
 0x65b   :  { %v3234_v36 = vadd.f32 %v3232_v38, %v2977_v25 }
 0x65c   :  { %v3141_v11 = vpop.f32.mrf.mxu3 }
 0x65d   :  { %v3236_v1 = vmax.f32 %v3234_v36, 0.0  ;;  %v3142_v61 = vadd.f32 %v3141_v11, %v3079_v32  ;;  %v6077_v36 = vld [vmem:[%s9112_s17 + $0x1c8] sm:$0xf0]  ;;  %v6019_v32 = vld [vmem:[%s9112_s17 + $0x150] sm:$0xf] }
 0x65e   :  { %v6080_v42 = vor.u32 %v6721_v24, %v6077_v36  ;;  %v6708_v11 = vld [vmem:[%s9112_s17 + $0x154] sm:$0xf0]  ;;  %v5992_v24 = vor.u32 %v6699_v35, %v5989_v34  ;;  %v6694_v36 = vld [vmem:[%s9112_s17 + $0xe4] sm:$0xf0]  ;;  %v6685_v34 = vld [vmem:[%s9112_s17 + $0xa4] sm:$0xf] }
 0x65f   :  { %3242 = vst [vmem:[#allocation11 + $0x1] sm:$0xff] %v3236_v1  ;;  %v3227_v39 = vadd.f32 %v3223_v18, %v3142_v61  ;;  %v6020_v55 = vor.u32 %v6708_v11, %v6019_v32  ;;  %v6069_v18 = vld [vmem:[%s9112_s17 + $0x1b8] sm:$0xf0]  ;;  %v6221_v11 = vld [vmem:[%s9112_s17 + $0xe8] sm:$0xf0] }
 0x660   :  { %v6072_v13 = vor.u32 %v6719_v45, %v6069_v18  ;;  %v6163_v45 = vld [vmem:[%s9112_s17 + $0x70] sm:$0xf]  ;;  %v6680_v18 = vld [vmem:[%s9112_s17 + $0x74] sm:$0xf0] }
 0x661   :  { %v3233_v15 = vadd.f32 %v6797_v50, %v3227_v39  ;;  %v6028_v50 = vor.u32 %v6710_v30, %v6027_v2  ;;  %v6706_v39 = vld [vmem:[%s9112_s17 + $0x144] sm:$0xf0]  ;;  %v6051_v30 = vld [vmem:[%s9112_s17 + $0x190] sm:$0xf] }
 0x663   :  { %v3235_v63 = vadd.f32 %v3233_v15, %v2979_v40  ;;  %v6012_v40 = vor.u32 %v6706_v39, %v6011_v49  ;;  %v6013_v15 = vld [vmem:[%s9112_s17 + $0x148] sm:$0xf0]  ;;  %v6165_v49 = vld [vmem:[%s9112_s17 + $0x78] sm:$0xf0]  ;;  %v6164_v39 = vor.u32 %v6680_v18, %v6163_v45 }
 0x664   :  { %v6016_v56 = vor.u32 %v6705_v58, %v6013_v15  ;;  %v6692_v15 = vld [vmem:[%s9112_s17 + $0xd4] sm:$0xf0]  ;;  %v6181_v45 = vld [vmem:[%s9112_s17 + $0x98] sm:$0xf0] }
 0x665   :  { %v3237_v7 = vmax.f32 %v3235_v63, 0.0  ;;  %v6059_v63 = vld [vmem:[%s9112_s17 + $0x1a0] sm:$0xf] }
 0x666   :  { %v3244_v17 = vld [vmem:[#allocation11] sm:$0xff]  ;;  %v6060_v3 = vor.u32 %v6718_v22, %v6059_v63  ;;  %v6213_v22 = vld [vmem:[%s9112_s17 + $0xd8] sm:$0xf0] }
 0x667   :  { %3243 = vst [vmem:[#allocation11 + $0x11] sm:$0xff] %v3237_v7  ;;  %v3673_v5 = vpack.c.bf16 %v3237_v7, %v3236_v1  ;;  %v3499_v38 = vld [vmem:[#allocation11 + $0x2] sm:$0xff]  ;;  %v6021_v1 = vld [vmem:[%s9112_s17 + $0x158] sm:$0xf0]  ;;  %v6064_v7 = vor.u32 %v6717_v48, %v6061_v28  ;;  %v6155_v48 = vld [vmem:[%s9112_s17 + $0x60] sm:$0xf] }
 0x668   :  { %v6024_v61 = vor.u32 %v6707_v27, %v6021_v1  ;;  %v6698_v1 = vld [vmem:[%s9112_s17 + $0x104] sm:$0xf0] }
 0x669   :  { %3371 = vmatmul.bf16.vlgmr.msrb.gmra.mxu2 %v3673_v5  ;;  %3385 = vmatmul.bf16.vlgmr.msra.gmra.mxu1 %v3673_v5 }
 0x66a   :  { %4084 = vmatpush.bf16.msra.mxu1 %v6100_v44  ;;  %4070 = vmatpush.bf16.msrb.mxu2 %v6036_v37  ;;  %v6003_v44 = vld [vmem:[%s9112_s17 + $0x130] sm:$0xf]  ;;  %v6703_v37 = vld [vmem:[%s9112_s17 + $0x134] sm:$0xf] }
 0x66b   :  { %v6008_v2 = vor.u32 %v6703_v37, %v6005_v20  ;;  %v6157_v37 = vld [vmem:[%s9112_s17 + $0x68] sm:$0xf0]  ;;  %v6203_v20 = vld [vmem:[%s9112_s17 + $0xc0] sm:$0xf] }
 0x66e   :  { %v3245_v14 = vld [vmem:[#allocation11 + $0x10] sm:$0xff]  ;;  %4085 = vmatpush.bf16.msra.mxu1 %v6092_v12  ;;  %4071 = vmatpush.bf16.msrb.mxu2 %v6028_v50  ;;  %v6715_v12 = vld [vmem:[%s9112_s17 + $0x194] sm:$0xf]  ;;  %v6052_v50 = vor.u32 %v6716_v4, %v6051_v30 }
 0x66f   :  { %v3246_v19 = vpack.c.bf16 %v3245_v14, %v3244_v17  ;;  %v3500_v25 = vld [vmem:[#allocation11 + $0x12] sm:$0xff]  ;;  %v6056_v26 = vor.u32 %v6715_v12, %v6053_v60  ;;  %v5996_v17 = vor.u32 %v6702_v21, %v5995_v6  ;;  %v5997_v14 = vld [vmem:[%s9112_s17 + $0x128] sm:$0xf0]  ;;  %v6147_v60 = vld [vmem:[%s9112_s17 + $0x50] sm:$0xf] }
 0x670   :  { %v3501_v53 = vpack.c.bf16 %v3500_v25, %v3499_v38  ;;  %v6232_v25 = vor.u32 %v6695_v23, %v6229_v51  ;;  %v5987_v38 = vld [vmem:[%s9112_s17 + $0x110] sm:$0xf]  ;;  %v6689_v30 = vld [vmem:[%s9112_s17 + $0xc4] sm:$0xf]  ;;  %v6205_v12 = vld [vmem:[%s9112_s17 + $0xc8] sm:$0xf0] }
 0x671   :  { %3479 = vmatmul.bf16.vlgmr.msra.gmra.mxu3 %v3246_v19  ;;  %3493 = vmatmul.bf16.vlgmr.msra.gmra.mxu0 %v3246_v19  ;;  %v6713_v19 = vld [vmem:[%s9112_s17 + $0x184] sm:$0xf]  ;;  %v6675_v6 = vld [vmem:[%s9112_s17 + $0x54] sm:$0xf]  ;;  %v6141_v51 = vld [vmem:[%s9112_s17 + $0x48] sm:$0xf0] }
 0x672   :  { %4112 = vmatpush.bf16.msra.mxu0 %v6104_v31  ;;  %4098 = vmatpush.bf16.msra.mxu3 %v6040_v9  ;;  %v6000_v31 = vor.u32 %v6701_v43, %v5997_v14  ;;  %v6714_v9 = vld [vmem:[%s9112_s17 + $0x184] sm:$0xf0]  ;;  %v6149_v43 = vld [vmem:[%s9112_s17 + $0x58] sm:$0xf0]  ;;  %v6195_v14 = vld [vmem:[%s9112_s17 + $0xb0] sm:$0xf] }
 0x673   :  { %4086 = vmatpush.bf16.msra.mxu1 %v6084_v59  ;;  %4072 = vmatpush.bf16.msrb.mxu2 %v6020_v55  ;;  %v6044_v46 = vor.u32 %v6714_v9, %v6043_v8  ;;  %v6045_v59 = vld [vmem:[%s9112_s17 + $0x188] sm:$0xf0]  ;;  %v5979_v55 = vld [vmem:[%s9112_s17 + $0x100] sm:$0xf]  ;;  %v6687_v8 = vld [vmem:[%s9112_s17 + $0xb4] sm:$0xf] }
 0x676   :  { %4113 = vmatpush.bf16.msra.mxu0 %v6096_v47  ;;  %4099 = vmatpush.bf16.msra.mxu3 %v6032_v52  ;;  %v6048_v47 = vor.u32 %v6713_v19, %v6045_v59  ;;  %v6228_v52 = vor.u32 %v6696_v29, %v6227_v10  ;;  %v6139_v10 = vld [vmem:[%s9112_s17 + $0x40] sm:$0xf]  ;;  %v6674_v29 = vld [vmem:[%s9112_s17 + $0x44] sm:$0xf0] }
 0x677   :  { %4087 = vmatpush.bf16.msra.mxu1 %v6076_v54  ;;  %4073 = vmatpush.bf16.msrb.mxu2 %v6012_v40  ;;  %v6219_v54 = vld [vmem:[%s9112_s17 + $0xe0] sm:$0xf]  ;;  %v6211_v40 = vld [vmem:[%s9112_s17 + $0xd0] sm:$0xf]  ;;  %v6140_v23 = vor.u32 %v6674_v29, %v6139_v10 }
 0x678   :  { %v6220_v32 = vor.u32 %v6694_v36, %v6219_v54  ;;  %v6212_v63 = vor.u32 %v6692_v15, %v6211_v40  ;;  %v6131_v54 = vld [vmem:[%s9112_s17 + $0x30] sm:$0xf] }
 0x679   :  { %3607 = vmatmul.bf16.vlgmr.msra.gmra.mxu2 %v3501_v53  ;;  %3621 = vmatmul.bf16.vlgmr.msrb.gmra.mxu1 %v3501_v53 }
 0x67a   :  { %4114 = vmatpush.bf16.msra.mxu0 %v6088_v0  ;;  %4100 = vmatpush.bf16.msra.mxu3 %v6024_v61  ;;  %v6700_v0 = vld [vmem:[%s9112_s17 + $0x114] sm:$0xf0]  ;;  %v5980_v61 = vor.u32 %v6698_v1, %v5979_v55  ;;  %v6179_v55 = vld [vmem:[%s9112_s17 + $0x90] sm:$0xf] }
 0x67b   :  { %4088 = vmatpush.bf16.msra.mxu1 %v6068_v57  ;;  %v5988_v53 = vor.u32 %v6700_v0, %v5987_v38  ;;  %v5984_v57 = vor.u32 %v6697_v41, %v5981_v62  ;;  %v6686_v38 = vld [vmem:[%s9112_s17 + $0xa4] sm:$0xf0]  ;;  %v8688_v0 = vld [vmem:[%s9111_s16] sm:$0x3]  ;;  %v6684_v1 = vld [vmem:[%s9112_s17 + $0x94] sm:$0xf0] }
 0x67c   :  { %v6180_v18 = vor.u32 %v6684_v1, %v6179_v55  ;;  %v3634_v40 = vperm.slane %v8688_v0, 1  ;;  %v6387_v1 = vld [vmem:[%s9112_s17 + $0x2f0] sm:$0xf] }
 0x67e   :  { %4115 = vmatpush.bf16.msra.mxu0 %v6080_v42  ;;  %4101 = vmatpush.bf16.msra.mxu3 %v6016_v56  ;;  %v6693_v42 = vld [vmem:[%s9112_s17 + $0xe4] sm:$0xf]  ;;  %v6691_v56 = vld [vmem:[%s9112_s17 + $0xd4] sm:$0xf] }
 0x67f   :  { %4089 = vmatpush.bf16.msra.mxu1 %v6060_v3  ;;  %v6224_v27 = vor.u32 %v6693_v42, %v6221_v11  ;;  %v6678_v3 = vld [vmem:[%s9112_s17 + $0x64] sm:$0xf0]  ;;  %v6671_v11 = vld [vmem:[%s9112_s17 + $0x34] sm:$0xf] }
 0x681   :  { %3784 = vmatmul.bf16.vlgmr.msrb.gmra.mxu3 %v3673_v5  ;;  %3798 = vmatmul.bf16.vlgmr.msrb.gmra.mxu0 %v3673_v5  ;;  %v6004_v5 = vor.u32 %v6704_v33, %v6003_v44  ;;  %v6156_v44 = vor.u32 %v6678_v3, %v6155_v48  ;;  %v6677_v33 = vld [vmem:[%s9112_s17 + $0x64] sm:$0xf] }
 0x682   :  { %4116 = vmatpush.bf16.msra.mxu0 %v6072_v13  ;;  %4102 = vmatpush.bf16.msra.mxu3 %v6008_v2  ;;  %v6679_v13 = vld [vmem:[%s9112_s17 + $0x74] sm:$0xf]  ;;  %v6690_v2 = vld [vmem:[%s9112_s17 + $0xc4] sm:$0xf0]  ;;  %v6681_v48 = vld [vmem:[%s9112_s17 + $0x84] sm:$0xf] }
 0x683   :  { %4074 = vmatpush.bf16.msrb.mxu2 %v6004_v5  ;;  %4090 = vmatpush.bf16.msra.mxu1 %v6052_v50  ;;  %v6168_v58 = vor.u32 %v6679_v13, %v6165_v49  ;;  %v6160_v5 = vor.u32 %v6677_v33, %v6157_v37  ;;  %v6204_v4 = vor.u32 %v6690_v2, %v6203_v20  ;;  %v6670_v13 = vld [vmem:[%s9112_s17 + $0x24] sm:$0xf0]  ;;  %v6669_v49 = vld [vmem:[%s9112_s17 + $0x24] sm:$0xf]  ;;  %v6115_v20 = vld [vmem:[%s9112_s17 + $0x10] sm:$0xf] }
 0x684   :  { %v6208_v50 = vor.u32 %v6689_v30, %v6205_v12  ;;  %v6668_v30 = vld [vmem:[%s9112_s17 + $0x14] sm:$0xf0]  ;;  %v6117_v12 = vld [vmem:[%s9112_s17 + $0x18] sm:$0xf0] }
 0x686   :  { %4117 = vmatpush.bf16.msra.mxu0 %v6064_v7  ;;  %4103 = vmatpush.bf16.msra.mxu3 %v6000_v31  ;;  %v6216_v7 = vor.u32 %v6691_v56, %v6213_v22  ;;  %v6688_v31 = vld [vmem:[%s9112_s17 + $0xb4] sm:$0xf0]  ;;  %v6682_v22 = vld [vmem:[%s9112_s17 + $0x84] sm:$0xf0] }
 0x687   :  { %4075 = vmatpush.bf16.msrb.mxu2 %v5996_v17  ;;  %4091 = vmatpush.bf16.msra.mxu1 %v6044_v46  ;;  %v6152_v17 = vor.u32 %v6675_v6, %v6149_v43  ;;  %v6196_v19 = vor.u32 %v6688_v31, %v6195_v14  ;;  %v6197_v46 = vld [vmem:[%s9112_s17 + $0xb8] sm:$0xf0]  ;;  %v6107_v14 = vld [vmem:[%s9112_s17] sm:$0xf]  ;;  %v6666_v31 = vld [vmem:[%s9112_s17 + $0x4] sm:$0xf0] }
 0x688   :  { %v6200_v59 = vor.u32 %v6687_v8, %v6197_v46 }
 0x68a   :  { %4118 = vmatpush.bf16.msra.mxu0 %v6056_v26  ;;  %4104 = vmatpush.bf16.msra.mxu3 %v5992_v24  ;;  %v6676_v26 = vld [vmem:[%s9112_s17 + $0x54] sm:$0xf0]  ;;  %v6189_v24 = vld [vmem:[%s9112_s17 + $0xa8] sm:$0xf0] }
 0x68b   :  { %4300 = vmatpush.bf16.msrb.mxu1 %v6228_v52  ;;  %4076 = vmatpush.bf16.msrb.mxu2 %v5988_v53  ;;  %v6148_v21 = vor.u32 %v6676_v26, %v6147_v60  ;;  %v6192_v42 = vor.u32 %v6685_v34, %v6189_v24  ;;  %v6116_v26 = vor.u32 %v6668_v30, %v6115_v20  ;;  %v6743_v30 = vld [vmem:[%s9112_s17 + $0x274] sm:$0xf] }
 0x68e   :  { %4119 = vmatpush.bf16.msra.mxu0 %v6048_v47  ;;  %4105 = vmatpush.bf16.msra.mxu3 %v5984_v57  ;;  %v6673_v47 = vld [vmem:[%s9112_s17 + $0x44] sm:$0xf]  ;;  %v6123_v57 = vld [vmem:[%s9112_s17 + $0x20] sm:$0xf] }
 0x68f   :  { %4301 = vmatpush.bf16.msrb.mxu1 %v6220_v32  ;;  %4077 = vmatpush.bf16.msrb.mxu2 %v5980_v61  ;;  %v6144_v53 = vor.u32 %v6673_v47, %v6141_v51  ;;  %v6672_v32 = vld [vmem:[%s9112_s17 + $0x34] sm:$0xf0]  ;;  %v6683_v61 = vld [vmem:[%s9112_s17 + $0x94] sm:$0xf]  ;;  %v6108_v47 = vor.u32 %v6666_v31, %v6107_v14  ;;  %v6373_v14 = vld [vmem:[%s9112_s17 + $0x2d8] sm:$0xf0] }
 0x690   :  { %v6132_v41 = vor.u32 %v6672_v32, %v6131_v54  ;;  %v6184_v15 = vor.u32 %v6683_v61, %v6181_v45  ;;  %v6760_v61 = vld [vmem:[%s9112_s17 + $0x2f4] sm:$0xf0] }
 0x692   :  { %4328 = vmatpush.bf16.msrb.mxu0 %v6232_v25  ;;  %4314 = vmatpush.bf16.msrb.mxu3 %v6168_v58  ;;  %v6187_v25 = vld [vmem:[%s9112_s17 + $0xa0] sm:$0xf] }
 0x693   :  { %4286 = vmatpush.bf16.msra.mxu2 %v6164_v39  ;;  %4302 = vmatpush.bf16.msrb.mxu1 %v6212_v63  ;;  %v6188_v35 = vor.u32 %v6686_v38, %v6187_v25  ;;  %v6125_v39 = vld [vmem:[%s9112_s17 + $0x28] sm:$0xf0]  ;;  %v6171_v63 = vld [vmem:[%s9112_s17 + $0x80] sm:$0xf] }
 0x694   :  { %v6128_v33 = vor.u32 %v6669_v49, %v6125_v39  ;;  %v6389_v49 = vld [vmem:[%s9112_s17 + $0x2f8] sm:$0xf0] }
 0x696   :  { %4329 = vmatpush.bf16.msrb.mxu0 %v6224_v27  ;;  %4315 = vmatpush.bf16.msrb.mxu3 %v6160_v5  ;;  %v6133_v27 = vld [vmem:[%s9112_s17 + $0x38] sm:$0xf0]  ;;  %v6172_v5 = vor.u32 %v6682_v22, %v6171_v63  ;;  %v6388_v63 = vor.u32 %v6760_v61, %v6387_v1 }
 0x697   :  { %4287 = vmatpush.bf16.msra.mxu2 %v6156_v44  ;;  %4303 = vmatpush.bf16.msrb.mxu1 %v6204_v4  ;;  %v6136_v62 = vor.u32 %v6671_v11, %v6133_v27  ;;  %v6124_v44 = vor.u32 %v6670_v13, %v6123_v57  ;;  %v6667_v4 = vld [vmem:[%s9112_s17 + $0x14] sm:$0xf]  ;;  %v6357_v1 = vld [vmem:[%s9112_s17 + $0x2b8] sm:$0xf0] }
 0x698   :  { %v6120_v6 = vor.u32 %v6667_v4, %v6117_v12 }
 0x69a   :  { %4330 = vmatpush.bf16.msrb.mxu0 %v6216_v7  ;;  %4316 = vmatpush.bf16.msrb.mxu3 %v6152_v17  ;;  %v3633_v17 = vperm.slane %v8688_v0, 0 }
 0x69b   :  { %4288 = vmatpush.bf16.msra.mxu2 %v6148_v21  ;;  %4304 = vmatpush.bf16.msrb.mxu1 %v6196_v19  ;;  %v6665_v19 = vld [vmem:[%s9112_s17 + $0x4] sm:$0xf] }
 0x69e   :  { %4331 = vmatpush.bf16.msrb.mxu0 %v6208_v50  ;;  %4317 = vmatpush.bf16.msrb.mxu3 %v6144_v53 }
 0x69f   :  { %4289 = vmatpush.bf16.msra.mxu2 %v6140_v23  ;;  %4305 = vmatpush.bf16.msrb.mxu1 %v6188_v35 }
 0x6a2   :  { %4332 = vmatpush.bf16.msrb.mxu0 %v6200_v59  ;;  %4318 = vmatpush.bf16.msrb.mxu3 %v6136_v62 }
 0x6a3   :  { %4290 = vmatpush.bf16.msra.mxu2 %v6132_v41  ;;  %4306 = vmatpush.bf16.msrb.mxu1 %v6180_v18  ;;  %v6759_v41 = vld [vmem:[%s9112_s17 + $0x2f4] sm:$0xf] }
 0x6a4   :  { %v6392_v22 = vor.u32 %v6759_v41, %v6389_v49 }
 0x6a6   :  { %4333 = vmatpush.bf16.msrb.mxu0 %v6192_v42  ;;  %4319 = vmatpush.bf16.msrb.mxu3 %v6128_v33  ;;  %v6381_v33 = vld [vmem:[%s9112_s17 + $0x2e8] sm:$0xf0] }
 0x6a7   :  { %4291 = vmatpush.bf16.msra.mxu2 %v6124_v44  ;;  %4307 = vmatpush.bf16.msrb.mxu1 %v6172_v5 }
 0x6aa   :  { %4334 = vmatpush.bf16.msrb.mxu0 %v6184_v15  ;;  %4320 = vmatpush.bf16.msrb.mxu3 %v6120_v6 }
 0x6ab   :  { %4292 = vmatpush.bf16.msra.mxu2 %v6116_v26 }
 0x6af   :  { %4293 = vmatpush.bf16.msra.mxu2 %v6108_v47  ;;  %v6317_v47 = vld [vmem:[%s9112_s17 + $0x268] sm:$0xf0] }
 0x6e6   :  { %v8619_v28 = vpop.f32.mrf.mxu1 }
 0x6ec   :  { %v8660_v9 = vpop.f32.mrf.mxu2 }
 0x6ee   :  { %v8674_v52 = vpop.f32.mrf.mxu1  ;;  %v3494_v36 = vpop.f32.mrf.mxu0 }
 0x6ef   :  { %v3495_v56 = vadd.f32 %v3494_v36, %v8619_v28  ;;  %v6173_v28 = vld [vmem:[%s9112_s17 + $0x88] sm:$0xf0] }
 0x6f0   :  { %v6176_v2 = vor.u32 %v6681_v48, %v6173_v28  ;;  %v6379_v48 = vld [vmem:[%s9112_s17 + $0x2e0] sm:$0xf]  ;;  %v6323_v28 = vld [vmem:[%s9112_s17 + $0x270] sm:$0xf] }
 0x6f2   :  { %4335 = vmatpush.bf16.msrb.mxu0 %v6176_v2 }
 0x6f4   :  { %v3374_v58 = vpop.f32.mrf.mxu2  ;;  %v3480_v3 = vpop.f32.mrf.mxu3 }
 0x6f5   :  { %v3481_v21 = vadd.f32 %v3480_v3, %v8660_v9  ;;  %v6109_v9 = vld [vmem:[%s9112_s17 + $0x8] sm:$0xf0]  ;;  %v6758_v3 = vld [vmem:[%s9112_s17 + $0x2e4] sm:$0xf0] }
 0x6f6   :  { %v3622_v7 = vpop.f32.mrf.mxu1  ;;  %v3496_v60 = vpop.f32.mrf.mxu0  ;;  %v6112_v23 = vor.u32 %v6665_v19, %v6109_v9 }
 0x6f7   :  { %v3628_v37 = vadd.f32 %v3622_v7, %v3495_v56  ;;  %v3497_v46 = vadd.f32 %v3496_v60, %v8674_v52  ;;  %v6757_v7 = vld [vmem:[%s9112_s17 + $0x2e4] sm:$0xf]  ;;  %v6380_v60 = vor.u32 %v6758_v3, %v6379_v48 }
 0x6f8   :  { %4321 = vmatpush.bf16.msrb.mxu3 %v6112_v23  ;;  %v6384_v26 = vor.u32 %v6757_v7, %v6381_v33  ;;  %v6291_v7 = vld [vmem:[%s9112_s17 + $0x230] sm:$0xf]  ;;  %v6735_v33 = vld [vmem:[%s9112_s17 + $0x234] sm:$0xf] }
 0x6f9   :  { %v3638_v50 = vadd.f32 %v3634_v40, %v3628_v37  ;;  %v6744_v37 = vld [vmem:[%s9112_s17 + $0x274] sm:$0xf0] }
 0x6fa   :  { %v6324_v19 = vor.u32 %v6744_v37, %v6323_v28  ;;  %v6293_v28 = vld [vmem:[%s9112_s17 + $0x238] sm:$0xf0] }
 0x6fb   :  { %v3642_v43 = vmax.f32 %v3638_v50, 0.0  ;;  %v6325_v50 = vld [vmem:[%s9112_s17 + $0x278] sm:$0xf0] }
 0x6fc   :  { %v3608_v8 = vpop.f32.mrf.mxu2  ;;  %v3482_v38 = vpop.f32.mrf.mxu3  ;;  %v6328_v9 = vor.u32 %v6743_v30, %v6325_v50  ;;  %v6339_v30 = vld [vmem:[%s9112_s17 + $0x290] sm:$0xf]  ;;  %v6341_v50 = vld [vmem:[%s9112_s17 + $0x298] sm:$0xf0] }
 0x6fd   :  { %v3658_v59 = vrot.slane %v3642_v43, 7  ;;  %v3627_v10 = vadd.f32 %v3608_v8, %v3481_v21  ;;  %v3483_v35 = vadd.f32 %v3482_v38, %v3374_v58  ;;  %v6371_v21 = vld [vmem:[%s9112_s17 + $0x2d0] sm:$0xf]  ;;  %v6756_v43 = vld [vmem:[%s9112_s17 + $0x2d4] sm:$0xf0] }
 0x6fe   :  { %v3624_v29 = vpop.f32.mrf.mxu1  ;;  %v6372_v23 = vor.u32 %v6756_v43, %v6371_v21  ;;  %v6754_v38 = vld [vmem:[%s9112_s17 + $0x2c4] sm:$0xf0]  ;;  %v6733_v43 = vld [vmem:[%s9112_s17 + $0x224] sm:$0xf] }
 0x6ff   :  { %3666 = vst [vmem:[#allocation12] sm:$0xfe] %v3658_v59  ;;  %v3637_v51 = vadd.f32 %v3633_v17, %v3627_v10  ;;  %v3630_v25 = vadd.f32 %v3624_v29, %v3497_v46  ;;  %v6315_v46 = vld [vmem:[%s9112_s17 + $0x260] sm:$0xf]  ;;  %v6742_v10 = vld [vmem:[%s9112_s17 + $0x264] sm:$0xf0] }
 0x700   :  { %3668 = vst [vmem:[#allocation12 + $0x10] sm:$0x1] %v3658_v59  ;;  %v6741_v29 = vld [vmem:[%s9112_s17 + $0x264] sm:$0xf]  ;;  %v6734_v21 = vld [vmem:[%s9112_s17 + $0x224] sm:$0xf0] }
 0x701   :  { %v3641_v0 = vmax.f32 %v3637_v51, 0.0  ;;  %v3640_v53 = vadd.f32 %v3634_v40, %v3630_v25  ;;  %v6363_v25 = vld [vmem:[%s9112_s17 + $0x2c0] sm:$0xf] }
 0x703   :  { %v3657_v34 = vrot.slane %v3641_v0, 7  ;;  %v3644_v24 = vmax.f32 %v3640_v53, 0.0  ;;  %v6753_v0 = vld [vmem:[%s9112_s17 + $0x2c4] sm:$0xf]  ;;  %v6365_v53 = vld [vmem:[%s9112_s17 + $0x2c8] sm:$0xf0] }
 0x704   :  { %v3610_v52 = vpop.f32.mrf.mxu2 }
 0x705   :  { %3665 = vst [vmem:[#allocation12 + $0x30] sm:$0xfe] %v3657_v34  ;;  %v3660_v54 = vrot.slane %v3644_v24, 7  ;;  %v3629_v36 = vadd.f32 %v3610_v52, %v3483_v35  ;;  %v6316_v35 = vor.u32 %v6742_v10, %v6315_v46  ;;  %v6307_v24 = vld [vmem:[%s9112_s17 + $0x250] sm:$0xf] }
 0x706   :  { %3667 = vst [vmem:[#allocation12 + $0x18] sm:$0x1] %v3657_v34  ;;  %v3843_v27 = vld [vmem:[#allocation12] sm:$0xfe]  ;;  %v6320_v34 = vor.u32 %v6741_v29, %v6317_v47  ;;  %v6740_v52 = vld [vmem:[%s9112_s17 + $0x254] sm:$0xf0] }
 0x707   :  { %3670 = vst [vmem:[#allocation12 + $0x20] sm:$0xfe] %v3660_v54  ;;  %v3639_v42 = vadd.f32 %v3633_v17, %v3629_v36  ;;  %v3845_v55 = vld [vmem:[#allocation12 + $0x10] sm:$0x1]  ;;  %v3862_v45 = vrot.slane %v3843_v27, 1  ;;  %v6308_v61 = vor.u32 %v6740_v52, %v6307_v24  ;;  %v3805_v49 = vld [vmem:[#allocation12] sm:$0xff] }
 0x708   :  { %3672 = vst [vmem:[#allocation12 + $0x38] sm:$0x1] %v3660_v54  ;;  %v3863_v57 = vrot.slane %v3845_v55, 1  ;;  %v6755_v17 = vld [vmem:[%s9112_s17 + $0x2d4] sm:$0xf] }
 0x709   :  { %v3643_v32 = vmax.f32 %v3639_v42, 0.0  ;;  %v6376_v51 = vor.u32 %v6755_v17, %v6373_v14  ;;  %v6739_v54 = vld [vmem:[%s9112_s17 + $0x254] sm:$0xf]  ;;  %v6309_v36 = vld [vmem:[%s9112_s17 + $0x258] sm:$0xf0]  ;;  %v6364_v42 = vor.u32 %v6754_v38, %v6363_v25 }
 0x70a   :  { %v3864_v15 = vsel %vm3858_vm12, %v3862_v45, %v3863_v57  ;;  %v6752_v27 = vld [vmem:[%s9112_s17 + $0x2b4] sm:$0xf0]  ;;  %v6751_v55 = vld [vmem:[%s9112_s17 + $0x2b4] sm:$0xf]  ;;  %v6312_v41 = vor.u32 %v6739_v54, %v6309_v36  ;;  %v6299_v45 = vld [vmem:[%s9112_s17 + $0x240] sm:$0xf] }
 0x70b   :  { %v3659_v11 = vrot.slane %v3643_v32, 7  ;;  %v6368_v32 = vor.u32 %v6753_v0, %v6365_v53  ;;  %v6738_v57 = vld [vmem:[%s9112_s17 + $0x244] sm:$0xf0]  ;;  %v6285_v14 = vld [vmem:[%s9112_s17 + $0x228] sm:$0xf0] }
 0x70c   :  { %v3842_v58 = vld [vmem:[#allocation12 + $0x30] sm:$0xfe]  ;;  %v6300_v48 = vor.u32 %v6738_v57, %v6299_v45  ;;  %v6333_v29 = vld [vmem:[%s9112_s17 + $0x288] sm:$0xf0]  ;;  %v4343_v47 = vld [vmem:[#allocation12] sm:$0xfc]  ;;  %v6288_v25 = vor.u32 %v6733_v43, %v6285_v14 }
 0x70d   :  { %3669 = vst [vmem:[#allocation12 + $0x8] sm:$0xfe] %v3659_v11  ;;  %v3844_v40 = vld [vmem:[#allocation12 + $0x18] sm:$0x1]  ;;  %v3859_v20 = vrot.slane %v3842_v58, 1  ;;  %v6360_v58 = vor.u32 %v6751_v55, %v6357_v1  ;;  %v4362_v36 = vrot.slane %v4343_v47, 2 }
 0x70e   :  { %3671 = vst [vmem:[#allocation12 + $0x28] sm:$0x1] %v3659_v11  ;;  %v3847_v62 = vld [vmem:[#allocation12 + $0x20] sm:$0xfe]  ;;  %v3860_v2 = vrot.slane %v3844_v40, 1 }
 0x70f   :  { %v3849_v18 = vld [vmem:[#allocation12 + $0x38] sm:$0x1]  ;;  %v3868_v13 = vrot.slane %v3847_v62, 1  ;;  %v6355_v11 = vld [vmem:[%s9112_s17 + $0x2b0] sm:$0xf] }
 0x710   :  { %v3869_v39 = vrot.slane %v3849_v18, 1  ;;  %v3861_v31 = vsel %vm3858_vm12, %v3859_v20, %v3860_v2  ;;  %v3807_v62 = vld [vmem:[#allocation12 + $0x20] sm:$0xff]  ;;  %v6737_v18 = vld [vmem:[%s9112_s17 + $0x244] sm:$0xf]  ;;  %v6347_v40 = vld [vmem:[%s9112_s17 + $0x2a0] sm:$0xf] }
 0x711   :  { %v3804_v20 = vld [vmem:[#allocation12 + $0x30] sm:$0xff]  ;;  %v6275_v38 = vld [vmem:[%s9112_s17 + $0x210] sm:$0xf]  ;;  %v6277_v24 = vld [vmem:[%s9112_s17 + $0x218] sm:$0xf0] }
 0x712   :  { %v3870_v56 = vsel %vm3858_vm12, %v3868_v13, %v3869_v39  ;;  %v6301_v13 = vld [vmem:[%s9112_s17 + $0x248] sm:$0xf0]  ;;  %v6356_v39 = vor.u32 %v6752_v27, %v6355_v11  ;;  %v6331_v46 = vld [vmem:[%s9112_s17 + $0x280] sm:$0xf]  ;;  %v6745_v10 = vld [vmem:[%s9112_s17 + $0x284] sm:$0xf] }
 0x713   :  { %v3876_v44 = vpack.c.bf16 %v3870_v56, %v3864_v15  ;;  %v3809_v15 = vpack.c.bf16 %v3807_v62, %v3805_v49  ;;  %v6750_v56 = vld [vmem:[%s9112_s17 + $0x2a4] sm:$0xf0]  ;;  %v6304_v3 = vor.u32 %v6737_v18, %v6301_v13  ;;  %v6336_v54 = vor.u32 %v6745_v10, %v6333_v29  ;;  %v6729_v62 = vld [vmem:[%s9112_s17 + $0x204] sm:$0xf]  ;;  %v6269_v45 = vld [vmem:[%s9112_s17 + $0x208] sm:$0xf0] }
 0x714   :  { %v3846_v5 = vld [vmem:[#allocation12 + $0x8] sm:$0xfe]  ;;  %v6348_v37 = vor.u32 %v6750_v56, %v6347_v40  ;;  %v4342_v57 = vld [vmem:[#allocation12 + $0x30] sm:$0xfc]  ;;  %v4344_v18 = vld [vmem:[#allocation12 + $0x18] sm:$0x3] }
 0x715   :  { %4092 = vmatmul.bf16.vlgmr.msra.gmra.mxu1 %v3876_v44  ;;  %4120 = vmatmul.bf16.vlgmr.msra.gmra.mxu0 %v3876_v44  ;;  %v3848_v4 = vld [vmem:[#allocation12 + $0x28] sm:$0x1]  ;;  %v3865_v12 = vrot.slane %v3846_v5, 1  ;;  %v4359_v56 = vrot.slane %v4342_v57, 2 }
 0x716   :  { %4584 = vmatpush.bf16.msra.mxu1 %v6388_v63  ;;  %4612 = vmatpush.bf16.msra.mxu0 %v6392_v22  ;;  %v3866_v6 = vrot.slane %v3848_v4, 1  ;;  %v6749_v63 = vld [vmem:[%s9112_s17 + $0x2a4] sm:$0xf]  ;;  %v6349_v22 = vld [vmem:[%s9112_s17 + $0x2a8] sm:$0xf0]  ;;  %v3806_v2 = vld [vmem:[#allocation12 + $0x8] sm:$0xff] }
 0x717   :  { %v6736_v44 = vld [vmem:[%s9112_s17 + $0x234] sm:$0xf0]  ;;  %v6352_v5 = vor.u32 %v6749_v63, %v6349_v22  ;;  %v3808_v17 = vpack.c.bf16 %v3806_v2, %v3804_v20  ;;  %v4360_v63 = vrot.slane %v4344_v18, 2 }
 0x718   :  { %v3867_v8 = vsel %vm3858_vm12, %v3865_v12, %v3866_v6  ;;  %v6748_v4 = vld [vmem:[%s9112_s17 + $0x294] sm:$0xf0]  ;;  %v6747_v12 = vld [vmem:[%s9112_s17 + $0x294] sm:$0xf]  ;;  %v6283_v6 = vld [vmem:[%s9112_s17 + $0x220] sm:$0xf] }
 0x719   :  { %v3875_v59 = vpack.c.bf16 %v3867_v8, %v3861_v31  ;;  %v4347_v31 = vld [vmem:[#allocation12 + $0x20] sm:$0xfc]  ;;  %v4349_v8 = vld [vmem:[#allocation12 + $0x38] sm:$0x3]  ;;  %v4348_v11 = vld [vmem:[#allocation12 + $0x28] sm:$0x3] }
 0x71a   :  { %4585 = vmatpush.bf16.msra.mxu1 %v6380_v60  ;;  %4613 = vmatpush.bf16.msra.mxu0 %v6384_v26  ;;  %v6292_v60 = vor.u32 %v6736_v44, %v6291_v7  ;;  %v6296_v26 = vor.u32 %v6735_v33, %v6293_v28  ;;  %v4368_v0 = vrot.slane %v4347_v31, 2  ;;  %v4369_v53 = vrot.slane %v4349_v8, 2  ;;  %v8973_v7 = vpop.f32.mrf.mxu0  ;;  %v8977_v33 = vpop.f32.mrf.mxu3 }
 0x71b   :  { %4078 = vmatmul.bf16.vlgmr.msrb.gmra.mxu2 %v3875_v59  ;;  %4106 = vmatmul.bf16.vlgmr.msra.gmra.mxu3 %v3875_v59  ;;  %v6746_v59 = vld [vmem:[%s9112_s17 + $0x284] sm:$0xf0] }
 0x71c   :  { %4570 = vmatpush.bf16.msrb.mxu2 %v6324_v19  ;;  %4598 = vmatpush.bf16.msra.mxu3 %v6328_v9  ;;  %v6340_v19 = vor.u32 %v6748_v4, %v6339_v30  ;;  %v6344_v9 = vor.u32 %v6747_v12, %v6341_v50  ;;  %v6332_v52 = vor.u32 %v6746_v59, %v6331_v46  ;;  %v6768_v46 = vld [vmem:[%s9116_s21 + $0x38] sm:$0xff] }
 0x71d   :  { %v4370_v1 = vsel %vm4358_vm13, %v4368_v0, %v4369_v53  ;;  %v6776_v59 = vld [vmem:[%s9116_s21 + $0x78] sm:$0xff] }
 0x71e   :  { %4586 = vmatpush.bf16.msra.mxu1 %v6372_v23  ;;  %4614 = vmatpush.bf16.msra.mxu0 %v6376_v51  ;;  %v4345_v23 = vld [vmem:[#allocation12 + $0x10] sm:$0x3]  ;;  %v6284_v51 = vor.u32 %v6734_v21, %v6283_v6 }
 0x720   :  { %4571 = vmatpush.bf16.msrb.mxu2 %v6316_v35  ;;  %4599 = vmatpush.bf16.msra.mxu3 %v6320_v34  ;;  %v6732_v35 = vld [vmem:[%s9112_s17 + $0x214] sm:$0xf0]  ;;  %v6731_v34 = vld [vmem:[%s9112_s17 + $0x214] sm:$0xf] }
 0x721   :  { %v6276_v27 = vor.u32 %v6732_v35, %v6275_v38  ;;  %v6280_v55 = vor.u32 %v6731_v34, %v6277_v24 }
 0x722   :  { %4587 = vmatpush.bf16.msra.mxu1 %v6364_v42  ;;  %4615 = vmatpush.bf16.msra.mxu0 %v6368_v32  ;;  %v4363_v42 = vrot.slane %v4345_v23, 2  ;;  %v4346_v32 = vld [vmem:[#allocation12 + $0x8] sm:$0xfc]  ;;  %v8975_v44 = vpop.f32.mrf.mxu0  ;;  %v6767_v23 = vld [vmem:[%s9116_s21 + $0x30] sm:$0xff] }
 0x723   :  { %v4365_v49 = vrot.slane %v4346_v32, 2 }
 0x724   :  { %4572 = vmatpush.bf16.msrb.mxu2 %v6308_v61  ;;  %4600 = vmatpush.bf16.msra.mxu3 %v6312_v41  ;;  %v6267_v61 = vld [vmem:[%s9112_s17 + $0x200] sm:$0xf]  ;;  %v6730_v41 = vld [vmem:[%s9112_s17 + $0x204] sm:$0xf0]  ;;  %v4364_v13 = vsel %vm4358_vm13, %v4362_v36, %v4363_v42 }
 0x725   :  { %4308 = vmatmul.bf16.vlgmr.msrb.gmra.mxu1 %v3809_v15  ;;  %4336 = vmatmul.bf16.vlgmr.msrb.gmra.mxu0 %v3809_v15  ;;  %v6268_v40 = vor.u32 %v6730_v41, %v6267_v61  ;;  %v6272_v15 = vor.u32 %v6729_v62, %v6269_v45  ;;  %v6766_v36 = vld [vmem:[%s9116_s21 + $0x28] sm:$0xff] }
 0x726   :  { %4588 = vmatpush.bf16.msra.mxu1 %v6356_v39  ;;  %4616 = vmatpush.bf16.msra.mxu0 %v6360_v58  ;;  %v4366_v39 = vrot.slane %v4348_v11, 2  ;;  %v4376_v58 = vpack.c.bf16 %v4370_v1, %v4364_v13  ;;  %v6774_v42 = vld [vmem:[%s9116_s21 + $0x68] sm:$0xff]  ;;  %v3690_v1 = vld [vmem:[%s9115_s20] sm:$0x3] }
 0x727   :  { %v3692_v18 = vperm.slane %v3690_v1, 0 }
 0x728   :  { %4573 = vmatpush.bf16.msrb.mxu2 %v6300_v48  ;;  %4601 = vmatpush.bf16.msra.mxu3 %v6304_v3  ;;  %v4367_v22 = vsel %vm4358_vm13, %v4365_v49, %v4366_v39  ;;  %v4361_v48 = vsel %vm4358_vm13, %v4359_v56, %v4360_v63 }
 0x729   :  { %v4375_v3 = vpack.c.bf16 %v4367_v22, %v4361_v48 }
 0x72a   :  { %4589 = vmatpush.bf16.msra.mxu1 %v6348_v37  ;;  %4617 = vmatpush.bf16.msra.mxu0 %v6352_v5  ;;  %v8979_v5 = vpop.f32.mrf.mxu3 }
 0x72b   :  { %4294 = vmatmul.bf16.vlgmr.msra.gmra.mxu2 %v3808_v17  ;;  %4322 = vmatmul.bf16.vlgmr.msrb.gmra.mxu3 %v3808_v17 }
 0x72c   :  { %4574 = vmatpush.bf16.msrb.mxu2 %v6292_v60  ;;  %4602 = vmatpush.bf16.msra.mxu3 %v6296_v26 }
 0x72e   :  { %4590 = vmatpush.bf16.msra.mxu1 %v6340_v19  ;;  %4618 = vmatpush.bf16.msra.mxu0 %v6344_v9  ;;  %v4648_v9 = vlaneseq }
 0x730   :  { %4575 = vmatpush.bf16.msrb.mxu2 %v6284_v51  ;;  %4603 = vmatpush.bf16.msra.mxu3 %v6288_v25  ;;  %v6775_v51 = vld [vmem:[%s9116_s21 + $0x70] sm:$0xff]  ;;  %v4649_v38 = vshrl.u32 %v4648_v9, 7 }
 0x732   :  { %4591 = vmatpush.bf16.msra.mxu1 %v6332_v52  ;;  %4619 = vmatpush.bf16.msra.mxu0 %v6336_v54  ;;  %v4630_v54 = vld [vmem:[%s9113_s18] sm:$0x3]  ;;  %s5038_s18 = sshll.u32 %s9122_s27, 4  ;;  %s5039_s18 = int_to_ptr.hbm [resolvable:$true] %s5038_s18 }
 0x733   :  { %v4632_v45 = vperm.slane %v4630_v54, 0 }
 0x734   :  { %4576 = vmatpush.bf16.msrb.mxu2 %v6276_v27  ;;  %4604 = vmatpush.bf16.msra.mxu3 %v6280_v55  ;;  %v9002_v27 = vand.u32 127, %v4648_v9  ;;  %v4652_v55 = vmul.u32 8, %v4649_v38  ;;  %v6781_v38 = vld [vmem:[%s9118_s23 + $0x20] sm:$0xff] }
 0x735   :  { %4592 = vmatmul.bf16.vlgmr.msra.gmra.mxu1 %v4376_v58  ;;  %4620 = vmatmul.bf16.vlgmr.msra.gmra.mxu0 %v4376_v58 }
 0x736   :  { %4835 = vmatpush.bf16.msrb.mxu1 %v6768_v46  ;;  %v4653_v48 = vsub.s32 %v9002_v27, %v4652_v55  ;;  %vm5002_vm5 = vcmp.lt.s32.totalorder %v9002_v27, 10 }
 0x738   :  { %4577 = vmatpush.bf16.msrb.mxu2 %v6268_v40  ;;  %4605 = vmatpush.bf16.msra.mxu3 %v6272_v15  ;;  %v6765_v40 = vld [vmem:[%s9116_s21 + $0x20] sm:$0xff]  ;;  %vm4654_vm14 = vcmp.ge.s32.totalorder %v4653_v48, 0  ;;  %vm4655_vm15 = vcmp.lt.s32.totalorder %v4653_v48, 8 }
 0x739   :  { %v6773_v15 = vld [vmem:[%s9116_s21 + $0x60] sm:$0xff]  ;;  %vm4656_vm2 = vmand %vm4654_vm14, %vm4655_vm15 }
 0x73a   :  { %4836 = vmatpush.bf16.msrb.mxu1 %v6767_v23  ;;  %v4657_v9 = vsel %vm4656_vm2, 0.125, %v7836_v16  ;;  %v6770_v16 = vld [vmem:[%s9116_s21 + $0x48] sm:$0xff]  ;;  %v6784_v23 = vld [vmem:[%s9118_s23 + $0x38] sm:$0xff] }
 0x73b   :  { %4578 = vmatmul.bf16.vlgmr.msrb.gmra.mxu2 %v4375_v3  ;;  %4606 = vmatmul.bf16.vlgmr.msra.gmra.mxu3 %v4375_v3  ;;  %v4633_v3 = vperm.slane %v4630_v54, 1  ;;  %v6778_v54 = vld [vmem:[%s9118_s23 + $0x8] sm:$0xff] }
 0x73c   :  { %4848 = vmatpush.bf16.msrb.mxu3 %v6776_v59 }
 0x73e   :  { %4837 = vmatpush.bf16.msrb.mxu1 %v6766_v36  ;;  %v6777_v36 = vld [vmem:[%s9118_s23] sm:$0xff] }
 0x740   :  { %4849 = vmatpush.bf16.msrb.mxu3 %v6775_v51  ;;  %v6783_v51 = vld [vmem:[%s9118_s23 + $0x30] sm:$0xff] }
 0x742   :  { %4838 = vmatpush.bf16.msrb.mxu1 %v6765_v40 }
 0x744   :  { %4850 = vmatpush.bf16.msrb.mxu3 %v6774_v42  ;;  %v6788_v42 = vld [vmem:[%s9120_s25 + $0x18] sm:$0xff] }
 0x745   :  { %4993 = vmatpush.bf16.msrb.mxu0 %v6788_v42 }
 0x748   :  { %4851 = vmatpush.bf16.msrb.mxu3 %v6773_v15 }
 0x792   :  { %v4093_v28 = vpop.f32.mrf.mxu1  ;;  %v4121_v37 = vpop.f32.mrf.mxu0 }
 0x79a   :  { %v4095_v20 = vpop.f32.mrf.mxu1  ;;  %v4123_v2 = vpop.f32.mrf.mxu0 }
 0x79e   :  { %v4079_v30 = vpop.f32.mrf.mxu2  ;;  %v4107_v4 = vpop.f32.mrf.mxu3 }
 0x79f   :  { %v4094_v10 = vadd.f32 %v4093_v28, %v4079_v30  ;;  %v4122_v0 = vadd.f32 %v4121_v37, %v4107_v4  ;;  %v3693_v30 = vperm.slane %v3690_v1, 1  ;;  %v3786_v4 = vadd.f32 %v8977_v33, %v3692_v18  ;;  %v6798_v1 = vld [vmem:[%s9117_s22] ss:$0 sm:$0xff] }
 0x7a2   :  { %v4309_v60 = vpop.f32.mrf.mxu1  ;;  %v4337_v26 = vpop.f32.mrf.mxu0 }
 0x7a6   :  { %v4081_v12 = vpop.f32.mrf.mxu2  ;;  %v4109_v50 = vpop.f32.mrf.mxu3 }
 0x7a7   :  { %v4096_v53 = vadd.f32 %v4095_v20, %v4081_v12  ;;  %v4124_v35 = vadd.f32 %v4123_v2, %v4109_v50  ;;  %v3788_v12 = vadd.f32 %v8979_v5, %v3692_v18  ;;  %v6764_v50 = vld [vmem:[%s9116_s21 + $0x18] sm:$0xff]  ;;  %v6763_v5 = vld [vmem:[%s9116_s21 + $0x10] sm:$0xff] }
 0x7a8   :  { %4839 = vmatpush.bf16.msrb.mxu1 %v6764_v50 }
 0x7aa   :  { %v4311_v43 = vpop.f32.mrf.mxu1  ;;  %v4339_v17 = vpop.f32.mrf.mxu0 }
 0x7ac   :  { %4840 = vmatpush.bf16.msrb.mxu1 %v6763_v5 }
 0x7ae   :  { %v4295_v6 = vpop.f32.mrf.mxu2  ;;  %v4323_v21 = vpop.f32.mrf.mxu3 }
 0x7af   :  { %v4296_v25 = vadd.f32 %v4295_v6, %v4094_v10  ;;  %v4324_v24 = vadd.f32 %v4323_v21, %v4122_v0  ;;  %v3802_v21 = vadd.f32 %v8975_v44, %v3693_v30  ;;  %v6762_v10 = vld [vmem:[%s9116_s21 + $0x8] sm:$0xff] }
 0x7b0   :  { %4841 = vmatpush.bf16.msrb.mxu1 %v6762_v10 }
 0x7b1   :  { %v4310_v32 = vadd.f32 %v4309_v60, %v4296_v25  ;;  %v4338_v13 = vadd.f32 %v4337_v26, %v4324_v24  ;;  %v6772_v60 = vld [vmem:[%s9116_s21 + $0x58] sm:$0xff]  ;;  %v6782_v25 = vld [vmem:[%s9118_s23 + $0x28] sm:$0xff] }
 0x7b2   :  { %v4593_v8 = vpop.f32.mrf.mxu1  ;;  %v4621_v19 = vpop.f32.mrf.mxu0  ;;  %4852 = vmatpush.bf16.msrb.mxu3 %v6772_v60  ;;  %v6780_v24 = vld [vmem:[%s9118_s23 + $0x18] sm:$0xff] }
 0x7b6   :  { %v4297_v14 = vpop.f32.mrf.mxu2  ;;  %v4325_v31 = vpop.f32.mrf.mxu3 }
 0x7b7   :  { %v4298_v52 = vadd.f32 %v4297_v14, %v4096_v53  ;;  %v4326_v11 = vadd.f32 %v4325_v31, %v4124_v35  ;;  %v3800_v14 = vadd.f32 %v8973_v7, %v3693_v30  ;;  %v6771_v7 = vld [vmem:[%s9116_s21 + $0x50] sm:$0xff] }
 0x7b8   :  { %4853 = vmatpush.bf16.msrb.mxu3 %v6771_v7 }
 0x7b9   :  { %v4312_v49 = vadd.f32 %v4311_v43, %v4298_v52  ;;  %v4340_v56 = vadd.f32 %v4339_v17, %v4326_v11  ;;  %v6779_v52 = vld [vmem:[%s9118_s23 + $0x10] sm:$0xff] }
 0x7ba   :  { %v4595_v61 = vpop.f32.mrf.mxu1  ;;  %v4623_v41 = vpop.f32.mrf.mxu0 }
 0x7bc   :  { %4854 = vmatpush.bf16.msrb.mxu3 %v6770_v16 }
 0x7be   :  { %v4579_v29 = vpop.f32.mrf.mxu2  ;;  %v4607_v47 = vpop.f32.mrf.mxu3 }
 0x7bf   :  { %v4594_v34 = vadd.f32 %v4593_v8, %v4579_v29  ;;  %v4622_v57 = vadd.f32 %v4621_v19, %v4607_v47  ;;  %v6761_v29 = vld [vmem:[%s9116_s21] sm:$0xff] }
 0x7c0   :  { %4842 = vmatpush.bf16.msrb.mxu1 %v6761_v29  ;;  %v6769_v47 = vld [vmem:[%s9116_s21 + $0x40] sm:$0xff] }
 0x7c1   :  { %v4626_v62 = vadd.f32 %v4594_v34, %v4310_v32  ;;  %v4627_v37 = vadd.f32 %v4622_v57, %v4338_v13  ;;  %4855 = vmatpush.bf16.msrb.mxu3 %v6769_v47  ;;  %v6787_v32 = vld [vmem:[%s9120_s25 + $0x10] sm:$0xff] }
 0x7c2   :  { %4994 = vmatpush.bf16.msrb.mxu0 %v6787_v32 }
 0x7c3   :  { %v4636_v28 = vadd.f32 %v4632_v45, %v4626_v62  ;;  %v4637_v43 = vadd.f32 %v4633_v3, %v4627_v37 }
 0x7c5   :  { %v4640_v17 = vadd.f32 %v4636_v28, %v3786_v4  ;;  %v4641_v46 = vadd.f32 %v4637_v43, %v3800_v14 }
 0x7c6   :  { %v4581_v39 = vpop.f32.mrf.mxu2  ;;  %v4609_v58 = vpop.f32.mrf.mxu3 }
 0x7c7   :  { %v4596_v63 = vadd.f32 %v4595_v61, %v4581_v39  ;;  %v4624_v22 = vadd.f32 %v4623_v41, %v4609_v58  ;;  %v4644_v19 = vmax.f32 %v4640_v17, 0.0  ;;  %v4645_v59 = vmax.f32 %v4641_v46, 0.0  ;;  %v6785_v39 = vld [vmem:[%s9120_s25] sm:$0xff] }
 0x7c8   :  { %v6799_v58 = vld [vmem:[%s9119_s24] ss:$0 sm:$0xff]  ;;  %s6834_s24 = smov [#allocation13]  }
 0x7c9   :  { %v4628_v20 = vadd.f32 %v4596_v63, %v4312_v49  ;;  %v4629_v2 = vadd.f32 %v4624_v22, %v4340_v56  ;;  %v6786_v49 = vld [vmem:[%s9120_s25 + $0x8] sm:$0xff]  ;;  %s5036_s25 = sshll.u32 %s6834_s24, 4  ;;  %s5037_s25 = int_to_ptr.vmem [resolvable:$true] %s5036_s25 }
 0x7ca   :  { %4995 = vmatpush.bf16.msrb.mxu0 %v6786_v49 }
 0x7cb   :  { %v4638_v26 = vadd.f32 %v4632_v45, %v4628_v20  ;;  %v4639_v6 = vadd.f32 %v4633_v3, %v4629_v2  ;;  %v6800_v3 = vld [vmem:[%s9121_s26] ss:$0 sm:$0xff] }
 0x7cd   :  { %v4642_v33 = vadd.f32 %v4638_v26, %v3788_v12  ;;  %v4643_v8 = vadd.f32 %v4639_v6, %v3802_v21 }
 0x7ce   :  { %4996 = vmatpush.bf16.msrb.mxu0 %v6785_v39 }
 0x7cf   :  { %v4646_v31 = vmax.f32 %v4642_v33, 0.0  ;;  %v4647_v44 = vmax.f32 %v4643_v8, 0.0 }
 0x7d1   :  { %4675 = vmatpush.msra.mxu2 %v4646_v31 }
 0x7d3   :  { %4676 = vmatpush.msra.mxu2 %v4644_v19 }
 0x7d4   :  { %6393 = vmatmul.msk.f32.vlgmr.msra.gmra.mxu2 %vm1243_vm9, %v4657_v9 }
 0x7d5   :  { %4695 = vmatpush.msrb.mxu2 %v4647_v44 }
 0x7d7   :  { %4696 = vmatpush.msrb.mxu2 %v4645_v59 }
 0x7d9   :  { %4933 = vmatpush.bf16.msra.mxu2 %v6784_v23 }
 0x7dc   :  { %6394 = vmatmul.msk.f32.vlgmr.msrb.gmra.mxu2 %vm1243_vm9, %v4657_v9 }
 0x7dd   :  { %4934 = vmatpush.bf16.msra.mxu2 %v6783_v51 }
 0x7e1   :  { %4935 = vmatpush.bf16.msra.mxu2 %v6782_v25 }
 0x7e5   :  { %4936 = vmatpush.bf16.msra.mxu2 %v6781_v38 }
 0x7e9   :  { %4937 = vmatpush.bf16.msra.mxu2 %v6780_v24 }
 0x7ed   :  { %4938 = vmatpush.bf16.msra.mxu2 %v6779_v52 }
 0x7f1   :  { %4939 = vmatpush.bf16.msra.mxu2 %v6778_v54 }
 0x7f5   :  { %4940 = vmatpush.bf16.msra.mxu2 %v6777_v36 }
 0x857   :  { %v4678_v0 = vpop.f32.mrf.mxu2 }
 0x858   :  { %v4701_v53 = vpack.c.bf16 %v4678_v0, %v4678_v0 }
 0x85a   :  { %4843 = vmatmul.bf16.vlgmr.msrb.gmra.mxu1 %v4701_v53 }
 0x85f   :  { %v4698_v35 = vpop.f32.mrf.mxu2 }
 0x860   :  { %v4702_v34 = vpack.c.bf16 %v4698_v35, %v4698_v35 }
 0x862   :  { %4856 = vmatmul.bf16.vlgmr.msrb.gmra.mxu3 %v4702_v34 }
 0x8d7   :  { %v4844_v11 = vpop.f32.mrf.mxu1 }
 0x8d8   :  { %v4845_v61 = vadd.f32 %v6798_v1, %v4844_v11 }
 0x8df   :  { %v4846_v55 = vpop.f32.mrf.mxu1 }
 0x8e5   :  { %v4857_v41 = vpop.f32.mrf.mxu3 }
 0x8e6   :  { %v4858_v62 = vadd.f32 %v4857_v41, %v4845_v61 }
 0x8e8   :  { %vm4861_vm9 = vcmp.ge.f32.partialorder %v4858_v62, 0.0  ;;  %v4862_v45 = vmul.f32 0.01, %v4858_v62 }
 0x8ea   :  { %v4863_v57 = vsel %vm4861_vm9, %v4858_v62, %v4862_v45 }
 0x8eb   :  { %v4864_v18 = vpack.c.bf16 %v4863_v57, %v4863_v57 }
 0x8ed   :  { %4941 = vmatmul.bf16.vlgmr.msra.gmra.mxu2 %v4864_v18  ;;  %v4859_v13 = vpop.f32.mrf.mxu3 }
 0x970   :  { %v4942_v40 = vpop.f32.mrf.mxu2 }
 0x971   :  { %v4943_v15 = vadd.f32 %v6799_v58, %v4942_v40 }
 0x973   :  { %vm4946_vm3 = vcmp.ge.f32.partialorder %v4943_v15, 0.0  ;;  %v4947_v56 = vmul.f32 0.01, %v4943_v15 }
 0x975   :  { %v4948_v63 = vsel %vm4946_vm3, %v4943_v15, %v4947_v56 }
 0x976   :  { %v4949_v22 = vpack.c.bf16 %v4948_v63, %v4948_v63 }
 0x978   :  { %v4944_v48 = vpop.f32.mrf.mxu2  ;;  %6507 = vmatmul.msk.bf16.vlgmr.msrb.gmra.mxu0 %vm236_vm0, %v4949_v22 }
 0x9f5   :  { %v4998_v28 = vpop.f32.mrf.mxu0 }
 0x9f6   :  { %v4999_v37 = vadd.f32 %v6800_v3, %v4998_v28 }
 0x9f8   :  { %v5003_v20 = vsel %vm5002_vm5, %v4999_v37, -1e+30 }
 0x9f9   :  { %v5005_v2 = vsel %vm5004_vm6, %v5003_v20, -inf }
 0x9fa   :  { %5006 = vmax.xlane.f32.xlu0 %v5005_v2 }
 0x9fd   :  { %v5000_v30 = vpop.f32.mrf.mxu0 }
 0xa6d   :  { %v5007_v4 = vpop.xlane.xlu0 %5006 }
 0xa6e   :  { %v5008_v12 = vsub.f32 %v5003_v20, %v5007_v4 }
 0xa70   :  { %v5009_v50 = vmul.f32 1.442695, %v5008_v12 }
 0xa72   :  { %6801 = vpow2.f32 %v5009_v50 }
 0xa78   :  { %v6802_v60 = vpop.eup %6801 }
 0xa79   :  { %v5011_v26 = vsel %vm5004_vm6, %v6802_v60, 0.0 }
 0xa7a   :  { %5012 = vadd.xlane.f32.xlu0 %v5011_v26 }
 0xaed   :  { %v5013_v6 = vpop.xlane.xlu0 %5012 }
 0xaee   :  { %6803 = vrcp.f32 %v5013_v6  ;;  %v5025_v17 = vand.u32 2147483648, %v5013_v6  ;;  %v5023_v5 = vand.u32 2147483647, %v5013_v6  ;;  %vm5019_vm7 = vweird.f32 %v5013_v6 }
 0xaf0   :  { %v5026_v31 = vor.u32 1.1754944e-38, %v5025_v17  ;;  %vm5024_vm1 = vcmp.eq.f32.partialorder %v5023_v5, 8.507059e+37 }
 0xaf4   :  { %v6804_v21 = vpop.eup %6803 }
 0xaf5   :  { %v5015_v43 = vmul.f32 %v6804_v21, %v5013_v6  ;;  %vm5020_vm0 = vweird.f32 %v6804_v21 }
 0xaf6   :  { %vm5021_vm8 = vmor %vm5019_vm7, %vm5020_vm0 }
 0xaf7   :  { %v5016_v33 = vsub.f32 1.0, %v5015_v43 }
 0xaf9   :  { %v5017_v27 = vmul.f32 %v6804_v21, %v5016_v33 }
 0xafb   :  { %v5018_v14 = vadd.f32 %v6804_v21, %v5017_v27 }
 0xafd   :  { %v5022_v8 = vsel %vm5021_vm8, %v6804_v21, %v5018_v14 }
 0xafe   :  { %v5027_v19 = vsel %vm5024_vm1, %v5026_v31, %v5022_v8 }
 0xaff   :  { %v5029_v9 = vmul.f32 %v6802_v60, %v5027_v19 }
 0xb01   :  { %5030 = vst [vmem:[#allocation13] sm:$0x3] %v5029_v9 }
 0xb02   :  { %5041 = dma.vmem_to_hbm [thread:$0]  %s5037_s25, 32, %s5039_s18, [#allocation14]  }
 0xb03   :  { %6831 = dma.done.wait [#allocation14], 32  }
 0xb04   :  { %6832 = vsyncadd [#allocation14], 4294967264 }
 0xb05   :  { %5046 = vsyncpa [#allocation14], 1 }

</bundles_post_ra>
